<compile_context>
chip_gen: v7x
topology: tpu7x:2x2x1
jax: 0.10.0
libtpu: 0.0.40
codegen_flags: <defaults>
</compile_context>

<pallas_src>
import functools

import jax
import jax.numpy as jnp
from jax.experimental import pallas as pl
from jax.experimental.pallas import tpu as pltpu

LANE = 128


# ----------------------------- Pallas kernels --------------------------------


def _conv_pool_kernel(c00_ref, c01_ref, c10_ref, c11_ref, w_ref, b_ref, o_ref):
    """Fused conv (im2col matmul) + 2x2 maxpool + bias + ReLU.

    c{di}{dj}: (tm, K) bf16 im2col rows for pooling-window position (di, dj).
    w: (K, N) bf16.  b: (1, N) f32.  o: (tm, N) bf16.
    relu(maxpool(conv)+b) == relu(max_k(pre_act_k)+b) since bias is shared and ReLU
    is monotone, so we pool the 4 pre-activation matmuls in-register.
    """
    w = w_ref[...]
    a00 = jnp.dot(c00_ref[...], w, preferred_element_type=jnp.float32)
    a01 = jnp.dot(c01_ref[...], w, preferred_element_type=jnp.float32)
    a10 = jnp.dot(c10_ref[...], w, preferred_element_type=jnp.float32)
    a11 = jnp.dot(c11_ref[...], w, preferred_element_type=jnp.float32)
    pooled = jnp.maximum(jnp.maximum(a00, a01), jnp.maximum(a10, a11))
    o_ref[...] = jnp.maximum(pooled + b_ref[...], 0.0).astype(o_ref.dtype)


def _mlp3_kernel(x_ref, w1_ref, b1_ref, w2_ref, b2_ref, w3_ref, b3_ref, o_ref):
    """Fused classifier: Linear+ReLU, Linear+ReLU, Linear (Dropout = identity in eval)."""
    h = jnp.dot(x_ref[...], w1_ref[...], preferred_element_type=jnp.float32)
    h = jnp.maximum(h + b1_ref[...], 0.0).astype(jnp.bfloat16)
    h = jnp.dot(h, w2_ref[...], preferred_element_type=jnp.float32)
    h = jnp.maximum(h + b2_ref[...], 0.0).astype(jnp.bfloat16)
    out = jnp.dot(h, w3_ref[...], preferred_element_type=jnp.float32) + b3_ref[...]
    o_ref[...] = out.astype(o_ref.dtype)


# ----------------------------- wrappers --------------------------------


def _row_tile(m):
    # M-tile: whole problem when small, 256 rows (multiple of 8) when it scales up.
    return m if m <= 256 else 256


def conv_relu_pool(x_nhwc, w_mat, b_row, *, kh, kw, stride, pad):
    """x: (N,H,W,Cin_pad) bf16 NHWC.  w_mat: (kh*kw*Cin_pad, Cout_pad) bf16 (im2col order).
    b_row: (1, Cout_pad) f32.  Returns pooled NHWC (N, Ho//2, Wo//2, Cout_pad) bf16."""
    n, h, w, cin = x_nhwc.shape
    k, cout = w_mat.shape
    assert k == kh * kw * cin
    ho = (h + 2 * pad - kh) // stride + 1
    wo = (w + 2 * pad - kw) // stride + 1
    po, qo = ho // 2, wo // 2                       # MaxPool2d(2,2) floor semantics
    xp = jnp.pad(x_nhwc, ((0, 0), (pad, pad), (pad, pad), (0, 0)))

    step = 2 * stride

    def phase_cols(di, dj):
        # im2col rows for conv outputs at (2*p + di, 2*q + dj); feature order (i,j,c).
        parts = []
        for i in range(kh):
            for j in range(kw):
                hs = stride * di + i
                ws = stride * dj + j
                sl = xp[:, hs:hs + step * (po - 1) + 1:step,
                        ws:ws + step * (qo - 1) + 1:step, :]
                parts.append(sl)                    # (N, po, qo, cin)
        return jnp.concatenate(parts, axis=-1).reshape(n * po * qo, k)

    cols = [phase_cols(di, dj) for di in (0, 1) for dj in (0, 1)]

    m = n * po * qo
    tm = _row_tile(m)
    flops = 4 * 2 * m * k * cout + 6 * m * cout
    bytes_accessed = (4 * m * k + k * cout + m * cout) * 2 + cout * 4

    out = pl.pallas_call(
        _conv_pool_kernel,
        out_shape=jax.ShapeDtypeStruct((m, cout), jnp.bfloat16),
        grid=(pl.cdiv(m, tm),),
        in_specs=[pl.BlockSpec((tm, k), lambda i: (i, 0)) for _ in range(4)]
        + [pl.BlockSpec((k, cout), lambda i: (0, 0)),
           pl.BlockSpec((1, cout), lambda i: (0, 0))],
        out_specs=pl.BlockSpec((tm, cout), lambda i: (i, 0)),
        compiler_params=pltpu.CompilerParams(dimension_semantics=("parallel",)),
        cost_estimate=pl.CostEstimate(
            flops=flops, transcendentals=0, bytes_accessed=bytes_accessed),
    )(*cols, w_mat, b_row)
    return out.reshape(n, po, qo, cout)


def classifier(x, w1, b1, w2, b2, w3, b3, *, num_classes):
    """x: (B, K1) bf16.  Weights pre-transposed to (K, N) bf16, biases (1, N) f32.
    w3/b3 are zero-padded to 128 output lanes; padded logits are sliced off here."""
    m, k1 = x.shape
    n1, n2, n3 = w1.shape[1], w2.shape[1], w3.shape[1]
    tm = _row_tile(m)
    flops = 2 * m * (k1 * n1 + n1 * n2 + n2 * n3)
    bytes_accessed = ((m * k1 + k1 * n1 + n1 * n2 + n2 * n3) * 2
                      + (n1 + n2 + n3) * 4 + m * n3 * 4)

    out = pl.pallas_call(
        _mlp3_kernel,
        out_shape=jax.ShapeDtypeStruct((m, n3), jnp.float32),
        grid=(pl.cdiv(m, tm),),
        in_specs=[
            pl.BlockSpec((tm, k1), lambda i: (i, 0)),
            pl.BlockSpec((k1, n1), lambda i: (0, 0)),
            pl.BlockSpec((1, n1), lambda i: (0, 0)),
            pl.BlockSpec((n1, n2), lambda i: (0, 0)),
            pl.BlockSpec((1, n2), lambda i: (0, 0)),
            pl.BlockSpec((n2, n3), lambda i: (0, 0)),
            pl.BlockSpec((1, n3), lambda i: (0, 0)),
        ],
        out_specs=pl.BlockSpec((tm, n3), lambda i: (i, 0)),
        compiler_params=pltpu.CompilerParams(dimension_semantics=("parallel",)),
        cost_estimate=pl.CostEstimate(
            flops=flops, transcendentals=0, bytes_accessed=bytes_accessed),
    )(x, w1, b1, w2, b2, w3, b3)
    return out[:, :num_classes]


# ----------------------------- params (torch layout) + one-time prep ---------------


def _round_up(v, m):
    return (v + m - 1) // m * m


def init_params(key, in_channels, num_classes, flat_features):
    """Parameters in PyTorch layouts (Conv2d: (Cout,Cin,kh,kw); Linear: (out,in))."""
    def conv_w(k, cout, cin, kh, kw):
        fan_in = cin * kh * kw
        return jax.random.normal(k, (cout, cin, kh, kw), jnp.float32) / jnp.sqrt(fan_in)

    def lin_w(k, cout, cin):
        return jax.random.normal(k, (cout, cin), jnp.float32) / jnp.sqrt(cin)

    ks = jax.random.split(key, 12)
    return {
        "w1": conv_w(ks[0], 64, in_channels, 3, 3),
        "b1": jax.random.normal(ks[1], (64,), jnp.float32) * 0.01,
        "w2": conv_w(ks[2], 128, 64, 5, 5),
        "b2": jax.random.normal(ks[3], (128,), jnp.float32) * 0.01,
        "w3": conv_w(ks[4], 256, 128, 3, 3),
        "b3": jax.random.normal(ks[5], (256,), jnp.float32) * 0.01,
        "fcw1": lin_w(ks[6], 128, flat_features),
        "fcb1": jax.random.normal(ks[7], (128,), jnp.float32) * 0.01,
        "fcw2": lin_w(ks[8], 64, 128),
        "fcb2": jax.random.normal(ks[9], (64,), jnp.float32) * 0.01,
        "fcw3": lin_w(ks[10], num_classes, 64),
        "fcb3": jax.random.normal(ks[11], (num_classes,), jnp.float32) * 0.01,
    }


def _prep_conv(w_torch, b_torch, cin_pad, cout_pad):
    cout, cin, kh, kw = w_torch.shape
    wm = jnp.transpose(w_torch, (2, 3, 1, 0))                     # (kh, kw, cin, cout)
    wm = jnp.pad(wm, ((0, 0), (0, 0), (0, cin_pad - cin), (0, cout_pad - cout)))
    wm = wm.reshape(kh * kw * cin_pad, cout_pad).astype(jnp.bfloat16)
    br = jnp.pad(b_torch, (0, cout_pad - cout)).reshape(1, cout_pad).astype(jnp.float32)
    return wm, br


def _prep_fc(w_torch, b_torch, nout_pad=None):
    nout, _ = w_torch.shape
    nout_pad = nout if nout_pad is None else nout_pad
    wm = jnp.pad(w_torch.T, ((0, 0), (0, nout_pad - nout))).astype(jnp.bfloat16)
    br = jnp.pad(b_torch, (0, nout_pad - nout)).reshape(1, nout_pad).astype(jnp.float32)
    return wm, br


def prepare_params(params, *, in_channels, pooled_hw, feat_channels):
    """One-time weight preprocessing: im2col-ordered, zero-padded, bf16, fc weights
    pre-transposed, fc1 rows permuted so torch's NCHW flatten == our NHWC flatten."""
    cin_pad = _round_up(in_channels, 8)       # 8-aligned contraction for conv1
    c1_pad = _round_up(64, LANE)              # lane-dense conv1 output store
    w1, b1 = _prep_conv(params["w1"], params["b1"], cin_pad, c1_pad)
    w2, b2 = _prep_conv(params["w2"], params["b2"], c1_pad, 128)
    w3, b3 = _prep_conv(params["w3"], params["b3"], 128, 256)

    ph, pw = pooled_hw
    fcw1 = params["fcw1"]                     # (128, C*ph*pw), torch order (c, h, w)
    fcw1 = fcw1.reshape(fcw1.shape[0], feat_channels, ph, pw)
    fcw1 = jnp.transpose(fcw1, (2, 3, 1, 0)).reshape(ph * pw * feat_channels, -1)
    fcw1 = fcw1.astype(jnp.bfloat16)
    fcb1 = params["fcb1"].reshape(1, -1).astype(jnp.float32)
    fcw2, fcb2 = _prep_fc(params["fcw2"], params["fcb2"])
    fcw3, fcb3 = _prep_fc(params["fcw3"], params["fcb3"], nout_pad=LANE)

    return {"w1": w1, "b1": b1, "w2": w2, "b2": b2, "w3": w3, "b3": b3,
            "fcw1": fcw1, "fcb1": fcb1, "fcw2": fcw2, "fcb2": fcb2,
            "fcw3": fcw3, "fcb3": fcb3}


# ----------------------------- Simplenet forward --------------------------------


def simplenet_forward(x_nchw, prep, *, num_classes):
    n, cin, _, _ = x_nchw.shape
    cin_pad = prep["w1"].shape[0] // (3 * 3)

    # NCHW -> NHWC, pad channels (4 -> 8), cast to bf16 for MXU-native matmuls.
    x = jnp.transpose(x_nchw, (0, 2, 3, 1))
    x = jnp.pad(x, ((0, 0), (0, 0), (0, 0), (0, cin_pad - cin))).astype(jnp.bfloat16)

    # fused conv + ReLU + 2x2 maxpool stages (1 Pallas kernel each)
    x = conv_relu_pool(x, prep["w1"], prep["b1"], kh=3, kw=3, stride=2, pad=2)
    x = conv_relu_pool(x, prep["w2"], prep["b2"], kh=5, kw=5, stride=1, pad=2)
    x = conv_relu_pool(x, prep["w3"], prep["b3"], kh=3, kw=3, stride=1, pad=1)

    # NHWC flatten; the NCHW-order reorder is folded into fc1's row order at init.
    feats = x.reshape(n, -1)

    # fused classifier (Dropout = identity in eval)
    return classifier(feats, prep["fcw1"], prep["fcb1"], prep["fcw2"], prep["fcb2"],
                      prep["fcw3"], prep["fcb3"], num_classes=num_classes)


# ----------------------------- main --------------------------------


if __name__ == "__main__":
    BATCH, IN_CH, H, W = 2, 4, 16, 16
    NUM_CLASSES = 2

    # spatial trace: 16 -(conv k3 s2 p2)-> 9 -(pool)-> 4 -(conv k5 p2)-> 4 -(pool)-> 2
    #                 -(conv k3 p1)-> 2 -(pool)-> 1   => flatten = 256 * 1 * 1 = 256
    POOLED_HW = (1, 1)
    FEAT_C = 256
    FLAT = FEAT_C * POOLED_HW[0] * POOLED_HW[1]

    key = jax.random.PRNGKey(0)
    k_x, k_p = jax.random.split(key)
    x = jax.random.normal(k_x, (BATCH, IN_CH, H, W), jnp.float32)
    params = init_params(k_p, IN_CH, NUM_CLASSES, FLAT)
    prep = prepare_params(params, in_channels=IN_CH, pooled_hw=POOLED_HW,
                          feat_channels=FEAT_C)

    fwd = jax.jit(functools.partial(simplenet_forward, num_classes=NUM_CLASSES))
    out = jax.block_until_ready(fwd(x, prep))

    assert out.shape == (BATCH, NUM_CLASSES), out.shape
    assert out.dtype == jnp.float32
    print("KERNEL_OK")
</pallas_src>

<mosaic_0001>
module attributes {stable_mosaic.version = 11 : i64} {
  func.func @_conv_pool_kernel(%arg0: i32, %arg1: memref<32x72xbf16, #tpu.memory_space<vmem>>, %arg2: memref<32x72xbf16, #tpu.memory_space<vmem>>, %arg3: memref<32x72xbf16, #tpu.memory_space<vmem>>, %arg4: memref<32x72xbf16, #tpu.memory_space<vmem>>, %arg5: memref<72x128xbf16, #tpu.memory_space<vmem>>, %arg6: memref<1x128xf32, #tpu.memory_space<vmem>>, %arg7: memref<32x128xbf16, #tpu.memory_space<vmem>>) attributes {dimension_semantics = [#tpu.dimension_semantics<parallel>], iteration_bounds = array<i64: 1>, scalar_prefetch = 0 : i64, scratch_operands = 0 : i64, tpu.core_type = #tpu.core_type<tc>, window_params = [{transform_indices = @transform_0, window_bounds = array<i64: 32, 72>}, {transform_indices = @transform_1, window_bounds = array<i64: 32, 72>}, {transform_indices = @transform_2, window_bounds = array<i64: 32, 72>}, {transform_indices = @transform_3, window_bounds = array<i64: 32, 72>}, {pipeline_mode = #tpu.pipeline_mode<synchronous>, transform_indices = @transform_4, window_bounds = array<i64: 72, 128>}, {pipeline_mode = #tpu.pipeline_mode<synchronous>, transform_indices = @transform_5, window_bounds = array<i64: 1, 128>}, {transform_indices = @transform_6, window_bounds = array<i64: 32, 128>}]} {
    %c0 = arith.constant 0 : index
    %c0_0 = arith.constant 0 : index
    %0 = vector.load %arg5[%c0, %c0_0] : memref<72x128xbf16, #tpu.memory_space<vmem>>, vector<72x128xbf16>
    %c0_1 = arith.constant 0 : index
    %c0_2 = arith.constant 0 : index
    %1 = vector.load %arg1[%c0_1, %c0_2] : memref<32x72xbf16, #tpu.memory_space<vmem>>, vector<32x72xbf16>
    %cst = arith.constant dense<0.000000e+00> : vector<32x128xf32>
    %2 = tpu.matmul %1, %0, %cst {dimension_numbers = #tpu.dot_dimension_numbers<[1], [0], [0], [1], [0, 0, 1, 1], [], []>} : vector<32x72xbf16>, vector<72x128xbf16>, vector<32x128xf32> -> vector<32x128xf32>
    %c0_3 = arith.constant 0 : index
    %c0_4 = arith.constant 0 : index
    %3 = vector.load %arg2[%c0_3, %c0_4] : memref<32x72xbf16, #tpu.memory_space<vmem>>, vector<32x72xbf16>
    %cst_5 = arith.constant dense<0.000000e+00> : vector<32x128xf32>
    %4 = tpu.matmul %3, %0, %cst_5 {dimension_numbers = #tpu.dot_dimension_numbers<[1], [0], [0], [1], [0, 0, 1, 1], [], []>} : vector<32x72xbf16>, vector<72x128xbf16>, vector<32x128xf32> -> vector<32x128xf32>
    %c0_6 = arith.constant 0 : index
    %c0_7 = arith.constant 0 : index
    %5 = vector.load %arg3[%c0_6, %c0_7] : memref<32x72xbf16, #tpu.memory_space<vmem>>, vector<32x72xbf16>
    %cst_8 = arith.constant dense<0.000000e+00> : vector<32x128xf32>
    %6 = tpu.matmul %5, %0, %cst_8 {dimension_numbers = #tpu.dot_dimension_numbers<[1], [0], [0], [1], [0, 0, 1, 1], [], []>} : vector<32x72xbf16>, vector<72x128xbf16>, vector<32x128xf32> -> vector<32x128xf32>
    %c0_9 = arith.constant 0 : index
    %c0_10 = arith.constant 0 : index
    %7 = vector.load %arg4[%c0_9, %c0_10] : memref<32x72xbf16, #tpu.memory_space<vmem>>, vector<32x72xbf16>
    %cst_11 = arith.constant dense<0.000000e+00> : vector<32x128xf32>
    %8 = tpu.matmul %7, %0, %cst_11 {dimension_numbers = #tpu.dot_dimension_numbers<[1], [0], [0], [1], [0, 0, 1, 1], [], []>} : vector<32x72xbf16>, vector<72x128xbf16>, vector<32x128xf32> -> vector<32x128xf32>
    %9 = arith.maximumf %2, %4 : vector<32x128xf32>
    %10 = arith.maximumf %6, %8 : vector<32x128xf32>
    %11 = arith.maximumf %9, %10 : vector<32x128xf32>
    %c0_12 = arith.constant 0 : index
    %c0_13 = arith.constant 0 : index
    %12 = vector.load %arg6[%c0_12, %c0_13] : memref<1x128xf32, #tpu.memory_space<vmem>>, vector<1x128xf32>
    %13 = vector.broadcast %12 : vector<1x128xf32> to vector<32x128xf32>
    %14 = arith.addf %11, %13 : vector<32x128xf32>
    %cst_14 = arith.constant 0.000000e+00 : f32
    %15 = vector.broadcast %cst_14 : f32 to vector<32x128xf32>
    %16 = arith.maximumf %14, %15 : vector<32x128xf32>
    %17 = arith.truncf %16 : vector<32x128xf32> to vector<32x128xbf16>
    %c0_15 = arith.constant 0 : index
    %c0_16 = arith.constant 0 : index
    %18 = vector.load %arg7[%c0_15, %c0_16] : memref<32x128xbf16, #tpu.memory_space<vmem>>, vector<32x128xbf16>
    tpu.vector_store %arg7[%c0_15, %c0_16], %17 {strides = array<i32>} : memref<32x128xbf16, #tpu.memory_space<vmem>>, vector<32x128xbf16>,
    return
  }
  func.func @transform_0(%arg0: i32) -> (i32, i32) {
    %c0_i32 = arith.constant 0 : i32
    %c0_i32_0 = arith.constant 0 : i32
    return %arg0, %c0_i32 : i32, i32
  }
  func.func @transform_1(%arg0: i32) -> (i32, i32) {
    %c0_i32 = arith.constant 0 : i32
    %c0_i32_0 = arith.constant 0 : i32
    return %arg0, %c0_i32 : i32, i32
  }
  func.func @transform_2(%arg0: i32) -> (i32, i32) {
    %c0_i32 = arith.constant 0 : i32
    %c0_i32_0 = arith.constant 0 : i32
    return %arg0, %c0_i32 : i32, i32
  }
  func.func @transform_3(%arg0: i32) -> (i32, i32) {
    %c0_i32 = arith.constant 0 : i32
    %c0_i32_0 = arith.constant 0 : i32
    return %arg0, %c0_i32 : i32, i32
  }
  func.func @transform_4(%arg0: i32) -> (i32, i32) {
    %c0_i32 = arith.constant 0 : i32
    %c0_i32_0 = arith.constant 0 : i32
    %c0_i32_1 = arith.constant 0 : i32
    return %c0_i32, %c0_i32_0 : i32, i32
  }
  func.func @transform_5(%arg0: i32) -> (i32, i32) {
    %c0_i32 = arith.constant 0 : i32
    %c0_i32_0 = arith.constant 0 : i32
    %c0_i32_1 = arith.constant 0 : i32
    return %c0_i32, %c0_i32_0 : i32, i32
  }
  func.func @transform_6(%arg0: i32) -> (i32, i32) {
    %c0_i32 = arith.constant 0 : i32
    %c0_i32_0 = arith.constant 0 : i32
    return %arg0, %c0_i32 : i32, i32
  }
}

module attributes {stable_mosaic.version = 11 : i64} {
  func.func @_conv_pool_kernel(%arg0: i32, %arg1: memref<8x3200xbf16, #tpu.memory_space<vmem>>, %arg2: memref<8x3200xbf16, #tpu.memory_space<vmem>>, %arg3: memref<8x3200xbf16, #tpu.memory_space<vmem>>, %arg4: memref<8x3200xbf16, #tpu.memory_space<vmem>>, %arg5: memref<3200x128xbf16, #tpu.memory_space<vmem>>, %arg6: memref<1x128xf32, #tpu.memory_space<vmem>>, %arg7: memref<8x128xbf16, #tpu.memory_space<vmem>>) attributes {dimension_semantics = [#tpu.dimension_semantics<parallel>], iteration_bounds = array<i64: 1>, scalar_prefetch = 0 : i64, scratch_operands = 0 : i64, tpu.core_type = #tpu.core_type<tc>, window_params = [{transform_indices = @transform_0, window_bounds = array<i64: 8, 3200>}, {transform_indices = @transform_1, window_bounds = array<i64: 8, 3200>}, {transform_indices = @transform_2, window_bounds = array<i64: 8, 3200>}, {transform_indices = @transform_3, window_bounds = array<i64: 8, 3200>}, {pipeline_mode = #tpu.pipeline_mode<synchronous>, transform_indices = @transform_4, window_bounds = array<i64: 3200, 128>}, {pipeline_mode = #tpu.pipeline_mode<synchronous>, transform_indices = @transform_5, window_bounds = array<i64: 1, 128>}, {transform_indices = @transform_6, window_bounds = array<i64: 8, 128>}]} {
    %c0 = arith.constant 0 : index
    %c0_0 = arith.constant 0 : index
    %0 = vector.load %arg5[%c0, %c0_0] : memref<3200x128xbf16, #tpu.memory_space<vmem>>, vector<3200x128xbf16>
    %c0_1 = arith.constant 0 : index
    %c0_2 = arith.constant 0 : index
    %1 = vector.load %arg1[%c0_1, %c0_2] : memref<8x3200xbf16, #tpu.memory_space<vmem>>, vector<8x3200xbf16>
    %cst = arith.constant dense<0.000000e+00> : vector<8x128xf32>
    %2 = tpu.matmul %1, %0, %cst {dimension_numbers = #tpu.dot_dimension_numbers<[1], [0], [0], [1], [0, 0, 1, 1], [], []>} : vector<8x3200xbf16>, vector<3200x128xbf16>, vector<8x128xf32> -> vector<8x128xf32>
    %c0_3 = arith.constant 0 : index
    %c0_4 = arith.constant 0 : index
    %3 = vector.load %arg2[%c0_3, %c0_4] : memref<8x3200xbf16, #tpu.memory_space<vmem>>, vector<8x3200xbf16>
    %cst_5 = arith.constant dense<0.000000e+00> : vector<8x128xf32>
    %4 = tpu.matmul %3, %0, %cst_5 {dimension_numbers = #tpu.dot_dimension_numbers<[1], [0], [0], [1], [0, 0, 1, 1], [], []>} : vector<8x3200xbf16>, vector<3200x128xbf16>, vector<8x128xf32> -> vector<8x128xf32>
    %c0_6 = arith.constant 0 : index
    %c0_7 = arith.constant 0 : index
    %5 = vector.load %arg3[%c0_6, %c0_7] : memref<8x3200xbf16, #tpu.memory_space<vmem>>, vector<8x3200xbf16>
    %cst_8 = arith.constant dense<0.000000e+00> : vector<8x128xf32>
    %6 = tpu.matmul %5, %0, %cst_8 {dimension_numbers = #tpu.dot_dimension_numbers<[1], [0], [0], [1], [0, 0, 1, 1], [], []>} : vector<8x3200xbf16>, vector<3200x128xbf16>, vector<8x128xf32> -> vector<8x128xf32>
    %c0_9 = arith.constant 0 : index
    %c0_10 = arith.constant 0 : index
    %7 = vector.load %arg4[%c0_9, %c0_10] : memref<8x3200xbf16, #tpu.memory_space<vmem>>, vector<8x3200xbf16>
    %cst_11 = arith.constant dense<0.000000e+00> : vector<8x128xf32>
    %8 = tpu.matmul %7, %0, %cst_11 {dimension_numbers = #tpu.dot_dimension_numbers<[1], [0], [0], [1], [0, 0, 1, 1], [], []>} : vector<8x3200xbf16>, vector<3200x128xbf16>, vector<8x128xf32> -> vector<8x128xf32>
    %9 = arith.maximumf %2, %4 : vector<8x128xf32>
    %10 = arith.maximumf %6, %8 : vector<8x128xf32>
    %11 = arith.maximumf %9, %10 : vector<8x128xf32>
    %c0_12 = arith.constant 0 : index
    %c0_13 = arith.constant 0 : index
    %12 = vector.load %arg6[%c0_12, %c0_13] : memref<1x128xf32, #tpu.memory_space<vmem>>, vector<1x128xf32>
    %13 = vector.broadcast %12 : vector<1x128xf32> to vector<8x128xf32>
    %14 = arith.addf %11, %13 : vector<8x128xf32>
    %cst_14 = arith.constant 0.000000e+00 : f32
    %15 = vector.broadcast %cst_14 : f32 to vector<8x128xf32>
    %16 = arith.maximumf %14, %15 : vector<8x128xf32>
    %17 = arith.truncf %16 : vector<8x128xf32> to vector<8x128xbf16>
    %c0_15 = arith.constant 0 : index
    %c0_16 = arith.constant 0 : index
    %18 = vector.load %arg7[%c0_15, %c0_16] : memref<8x128xbf16, #tpu.memory_space<vmem>>, vector<8x128xbf16>
    tpu.vector_store %arg7[%c0_15, %c0_16], %17 {strides = array<i32>} : memref<8x128xbf16, #tpu.memory_space<vmem>>, vector<8x128xbf16>,
    return
  }
  func.func @transform_0(%arg0: i32) -> (i32, i32) {
    %c0_i32 = arith.constant 0 : i32
    %c0_i32_0 = arith.constant 0 : i32
    return %arg0, %c0_i32 : i32, i32
  }
  func.func @transform_1(%arg0: i32) -> (i32, i32) {
    %c0_i32 = arith.constant 0 : i32
    %c0_i32_0 = arith.constant 0 : i32
    return %arg0, %c0_i32 : i32, i32
  }
  func.func @transform_2(%arg0: i32) -> (i32, i32) {
    %c0_i32 = arith.constant 0 : i32
    %c0_i32_0 = arith.constant 0 : i32
    return %arg0, %c0_i32 : i32, i32
  }
  func.func @transform_3(%arg0: i32) -> (i32, i32) {
    %c0_i32 = arith.constant 0 : i32
    %c0_i32_0 = arith.constant 0 : i32
    return %arg0, %c0_i32 : i32, i32
  }
  func.func @transform_4(%arg0: i32) -> (i32, i32) {
    %c0_i32 = arith.constant 0 : i32
    %c0_i32_0 = arith.constant 0 : i32
    %c0_i32_1 = arith.constant 0 : i32
    return %c0_i32, %c0_i32_0 : i32, i32
  }
  func.func @transform_5(%arg0: i32) -> (i32, i32) {
    %c0_i32 = arith.constant 0 : i32
    %c0_i32_0 = arith.constant 0 : i32
    %c0_i32_1 = arith.constant 0 : i32
    return %c0_i32, %c0_i32_0 : i32, i32
  }
  func.func @transform_6(%arg0: i32) -> (i32, i32) {
    %c0_i32 = arith.constant 0 : i32
    %c0_i32_0 = arith.constant 0 : i32
    return %arg0, %c0_i32 : i32, i32
  }
}

module attributes {stable_mosaic.version = 11 : i64} {
  func.func @_mlp3_kernel(%arg0: i32, %arg1: memref<2x256xbf16, #tpu.memory_space<vmem>>, %arg2: memref<256x128xbf16, #tpu.memory_space<vmem>>, %arg3: memref<1x128xf32, #tpu.memory_space<vmem>>, %arg4: memref<128x64xbf16, #tpu.memory_space<vmem>>, %arg5: memref<1x64xf32, #tpu.memory_space<vmem>>, %arg6: memref<64x128xbf16, #tpu.memory_space<vmem>>, %arg7: memref<1x128xf32, #tpu.memory_space<vmem>>, %arg8: memref<2x128xf32, #tpu.memory_space<vmem>>) attributes {dimension_semantics = [#tpu.dimension_semantics<parallel>], iteration_bounds = array<i64: 1>, scalar_prefetch = 0 : i64, scratch_operands = 0 : i64, tpu.core_type = #tpu.core_type<tc>, window_params = [{transform_indices = @transform_0, window_bounds = array<i64: 2, 256>}, {pipeline_mode = #tpu.pipeline_mode<synchronous>, transform_indices = @transform_1, window_bounds = array<i64: 256, 128>}, {pipeline_mode = #tpu.pipeline_mode<synchronous>, transform_indices = @transform_2, window_bounds = array<i64: 1, 128>}, {pipeline_mode = #tpu.pipeline_mode<synchronous>, transform_indices = @transform_3, window_bounds = array<i64: 128, 64>}, {pipeline_mode = #tpu.pipeline_mode<synchronous>, transform_indices = @transform_4, window_bounds = array<i64: 1, 64>}, {pipeline_mode = #tpu.pipeline_mode<synchronous>, transform_indices = @transform_5, window_bounds = array<i64: 64, 128>}, {pipeline_mode = #tpu.pipeline_mode<synchronous>, transform_indices = @transform_6, window_bounds = array<i64: 1, 128>}, {transform_indices = @transform_7, window_bounds = array<i64: 2, 128>}]} {
    %c0 = arith.constant 0 : index
    %c0_0 = arith.constant 0 : index
    %0 = vector.load %arg1[%c0, %c0_0] : memref<2x256xbf16, #tpu.memory_space<vmem>>, vector<2x256xbf16>
    %c0_1 = arith.constant 0 : index
    %c0_2 = arith.constant 0 : index
    %1 = vector.load %arg2[%c0_1, %c0_2] : memref<256x128xbf16, #tpu.memory_space<vmem>>, vector<256x128xbf16>
    %cst = arith.constant dense<0.000000e+00> : vector<2x128xf32>
    %2 = tpu.matmul %0, %1, %cst {dimension_numbers = #tpu.dot_dimension_numbers<[1], [0], [0], [1], [0, 0, 1, 1], [], []>} : vector<2x256xbf16>, vector<256x128xbf16>, vector<2x128xf32> -> vector<2x128xf32>
    %c0_3 = arith.constant 0 : index
    %c0_4 = arith.constant 0 : index
    %3 = vector.load %arg3[%c0_3, %c0_4] : memref<1x128xf32, #tpu.memory_space<vmem>>, vector<1x128xf32>
    %4 = vector.broadcast %3 : vector<1x128xf32> to vector<2x128xf32>
    %5 = arith.addf %2, %4 : vector<2x128xf32>
    %cst_5 = arith.constant 0.000000e+00 : f32
    %6 = vector.broadcast %cst_5 : f32 to vector<2x128xf32>
    %7 = arith.maximumf %5, %6 : vector<2x128xf32>
    %8 = arith.truncf %7 : vector<2x128xf32> to vector<2x128xbf16>
    %c0_6 = arith.constant 0 : index
    %c0_7 = arith.constant 0 : index
    %9 = vector.load %arg4[%c0_6, %c0_7] : memref<128x64xbf16, #tpu.memory_space<vmem>>, vector<128x64xbf16>
    %cst_8 = arith.constant dense<0.000000e+00> : vector<2x64xf32>
    %10 = tpu.matmul %8, %9, %cst_8 {dimension_numbers = #tpu.dot_dimension_numbers<[1], [0], [0], [1], [0, 0, 1, 1], [], []>} : vector<2x128xbf16>, vector<128x64xbf16>, vector<2x64xf32> -> vector<2x64xf32>
    %c0_9 = arith.constant 0 : index
    %c0_10 = arith.constant 0 : index
    %11 = vector.load %arg5[%c0_9, %c0_10] : memref<1x64xf32, #tpu.memory_space<vmem>>, vector<1x64xf32>
    %12 = vector.broadcast %11 : vector<1x64xf32> to vector<2x64xf32>
    %13 = arith.addf %10, %12 : vector<2x64xf32>
    %cst_11 = arith.constant 0.000000e+00 : f32
    %14 = vector.broadcast %cst_11 : f32 to vector<2x64xf32>
    %15 = arith.maximumf %13, %14 : vector<2x64xf32>
    %16 = arith.truncf %15 : vector<2x64xf32> to vector<2x64xbf16>
    %c0_12 = arith.constant 0 : index
    %c0_13 = arith.constant 0 : index
    %17 = vector.load %arg6[%c0_12, %c0_13] : memref<64x128xbf16, #tpu.memory_space<vmem>>, vector<64x128xbf16>
    %cst_14 = arith.constant dense<0.000000e+00> : vector<2x128xf32>
    %18 = tpu.matmul %16, %17, %cst_14 {dimension_numbers = #tpu.dot_dimension_numbers<[1], [0], [0], [1], [0, 0, 1, 1], [], []>} : vector<2x64xbf16>, vector<64x128xbf16>, vector<2x128xf32> -> vector<2x128xf32>
    %c0_15 = arith.constant 0 : index
    %c0_16 = arith.constant 0 : index
    %19 = vector.load %arg7[%c0_15, %c0_16] : memref<1x128xf32, #tpu.memory_space<vmem>>, vector<1x128xf32>
    %20 = vector.broadcast %19 : vector<1x128xf32> to vector<2x128xf32>
    %21 = arith.addf %18, %20 : vector<2x128xf32>
    %c0_17 = arith.constant 0 : index
    %c0_18 = arith.constant 0 : index
    %22 = vector.load %arg8[%c0_17, %c0_18] : memref<2x128xf32, #tpu.memory_space<vmem>>, vector<2x128xf32>
    tpu.vector_store %arg8[%c0_17, %c0_18], %21 {strides = array<i32>} : memref<2x128xf32, #tpu.memory_space<vmem>>, vector<2x128xf32>,
    return
  }
  func.func @transform_0(%arg0: i32) -> (i32, i32) {
    %c0_i32 = arith.constant 0 : i32
    %c0_i32_0 = arith.constant 0 : i32
    return %arg0, %c0_i32 : i32, i32
  }
  func.func @transform_1(%arg0: i32) -> (i32, i32) {
    %c0_i32 = arith.constant 0 : i32
    %c0_i32_0 = arith.constant 0 : i32
    %c0_i32_1 = arith.constant 0 : i32
    return %c0_i32, %c0_i32_0 : i32, i32
  }
  func.func @transform_2(%arg0: i32) -> (i32, i32) {
    %c0_i32 = arith.constant 0 : i32
    %c0_i32_0 = arith.constant 0 : i32
    %c0_i32_1 = arith.constant 0 : i32
    return %c0_i32, %c0_i32_0 : i32, i32
  }
  func.func @transform_3(%arg0: i32) -> (i32, i32) {
    %c0_i32 = arith.constant 0 : i32
    %c0_i32_0 = arith.constant 0 : i32
    %c0_i32_1 = arith.constant 0 : i32
    return %c0_i32, %c0_i32_0 : i32, i32
  }
  func.func @transform_4(%arg0: i32) -> (i32, i32) {
    %c0_i32 = arith.constant 0 : i32
    %c0_i32_0 = arith.constant 0 : i32
    %c0_i32_1 = arith.constant 0 : i32
    return %c0_i32, %c0_i32_0 : i32, i32
  }
  func.func @transform_5(%arg0: i32) -> (i32, i32) {
    %c0_i32 = arith.constant 0 : i32
    %c0_i32_0 = arith.constant 0 : i32
    %c0_i32_1 = arith.constant 0 : i32
    return %c0_i32, %c0_i32_0 : i32, i32
  }
  func.func @transform_6(%arg0: i32) -> (i32, i32) {
    %c0_i32 = arith.constant 0 : i32
    %c0_i32_0 = arith.constant 0 : i32
    %c0_i32_1 = arith.constant 0 : i32
    return %c0_i32, %c0_i32_0 : i32, i32
  }
  func.func @transform_7(%arg0: i32) -> (i32, i32) {
    %c0_i32 = arith.constant 0 : i32
    %c0_i32_0 = arith.constant 0 : i32
    return %arg0, %c0_i32 : i32, i32
  }
}

module attributes {stable_mosaic.version = 11 : i64} {
  func.func @_conv_pool_kernel(%arg0: i32, %arg1: memref<2x1152xbf16, #tpu.memory_space<vmem>>, %arg2: memref<2x1152xbf16, #tpu.memory_space<vmem>>, %arg3: memref<2x1152xbf16, #tpu.memory_space<vmem>>, %arg4: memref<2x1152xbf16, #tpu.memory_space<vmem>>, %arg5: memref<1152x256xbf16, #tpu.memory_space<vmem>>, %arg6: memref<1x256xf32, #tpu.memory_space<vmem>>, %arg7: memref<2x256xbf16, #tpu.memory_space<vmem>>) attributes {dimension_semantics = [#tpu.dimension_semantics<parallel>], iteration_bounds = array<i64: 1>, scalar_prefetch = 0 : i64, scratch_operands = 0 : i64, tpu.core_type = #tpu.core_type<tc>, window_params = [{transform_indices = @transform_0, window_bounds = array<i64: 2, 1152>}, {transform_indices = @transform_1, window_bounds = array<i64: 2, 1152>}, {transform_indices = @transform_2, window_bounds = array<i64: 2, 1152>}, {transform_indices = @transform_3, window_bounds = array<i64: 2, 1152>}, {pipeline_mode = #tpu.pipeline_mode<synchronous>, transform_indices = @transform_4, window_bounds = array<i64: 1152, 256>}, {pipeline_mode = #tpu.pipeline_mode<synchronous>, transform_indices = @transform_5, window_bounds = array<i64: 1, 256>}, {transform_indices = @transform_6, window_bounds = array<i64: 2, 256>}]} {
    %c0 = arith.constant 0 : index
    %c0_0 = arith.constant 0 : index
    %0 = vector.load %arg5[%c0, %c0_0] : memref<1152x256xbf16, #tpu.memory_space<vmem>>, vector<1152x256xbf16>
    %c0_1 = arith.constant 0 : index
    %c0_2 = arith.constant 0 : index
    %1 = vector.load %arg1[%c0_1, %c0_2] : memref<2x1152xbf16, #tpu.memory_space<vmem>>, vector<2x1152xbf16>
    %cst = arith.constant dense<0.000000e+00> : vector<2x256xf32>
    %2 = tpu.matmul %1, %0, %cst {dimension_numbers = #tpu.dot_dimension_numbers<[1], [0], [0], [1], [0, 0, 1, 1], [], []>} : vector<2x1152xbf16>, vector<1152x256xbf16>, vector<2x256xf32> -> vector<2x256xf32>
    %c0_3 = arith.constant 0 : index
    %c0_4 = arith.constant 0 : index
    %3 = vector.load %arg2[%c0_3, %c0_4] : memref<2x1152xbf16, #tpu.memory_space<vmem>>, vector<2x1152xbf16>
    %cst_5 = arith.constant dense<0.000000e+00> : vector<2x256xf32>
    %4 = tpu.matmul %3, %0, %cst_5 {dimension_numbers = #tpu.dot_dimension_numbers<[1], [0], [0], [1], [0, 0, 1, 1], [], []>} : vector<2x1152xbf16>, vector<1152x256xbf16>, vector<2x256xf32> -> vector<2x256xf32>
    %c0_6 = arith.constant 0 : index
    %c0_7 = arith.constant 0 : index
    %5 = vector.load %arg3[%c0_6, %c0_7] : memref<2x1152xbf16, #tpu.memory_space<vmem>>, vector<2x1152xbf16>
    %cst_8 = arith.constant dense<0.000000e+00> : vector<2x256xf32>
    %6 = tpu.matmul %5, %0, %cst_8 {dimension_numbers = #tpu.dot_dimension_numbers<[1], [0], [0], [1], [0, 0, 1, 1], [], []>} : vector<2x1152xbf16>, vector<1152x256xbf16>, vector<2x256xf32> -> vector<2x256xf32>
    %c0_9 = arith.constant 0 : index
    %c0_10 = arith.constant 0 : index
    %7 = vector.load %arg4[%c0_9, %c0_10] : memref<2x1152xbf16, #tpu.memory_space<vmem>>, vector<2x1152xbf16>
    %cst_11 = arith.constant dense<0.000000e+00> : vector<2x256xf32>
    %8 = tpu.matmul %7, %0, %cst_11 {dimension_numbers = #tpu.dot_dimension_numbers<[1], [0], [0], [1], [0, 0, 1, 1], [], []>} : vector<2x1152xbf16>, vector<1152x256xbf16>, vector<2x256xf32> -> vector<2x256xf32>
    %9 = arith.maximumf %2, %4 : vector<2x256xf32>
    %10 = arith.maximumf %6, %8 : vector<2x256xf32>
    %11 = arith.maximumf %9, %10 : vector<2x256xf32>
    %c0_12 = arith.constant 0 : index
    %c0_13 = arith.constant 0 : index
    %12 = vector.load %arg6[%c0_12, %c0_13] : memref<1x256xf32, #tpu.memory_space<vmem>>, vector<1x256xf32>
    %13 = vector.broadcast %12 : vector<1x256xf32> to vector<2x256xf32>
    %14 = arith.addf %11, %13 : vector<2x256xf32>
    %cst_14 = arith.constant 0.000000e+00 : f32
    %15 = vector.broadcast %cst_14 : f32 to vector<2x256xf32>
    %16 = arith.maximumf %14, %15 : vector<2x256xf32>
    %17 = arith.truncf %16 : vector<2x256xf32> to vector<2x256xbf16>
    %c0_15 = arith.constant 0 : index
    %c0_16 = arith.constant 0 : index
    %18 = vector.load %arg7[%c0_15, %c0_16] : memref<2x256xbf16, #tpu.memory_space<vmem>>, vector<2x256xbf16>
    tpu.vector_store %arg7[%c0_15, %c0_16], %17 {strides = array<i32>} : memref<2x256xbf16, #tpu.memory_space<vmem>>, vector<2x256xbf16>,
    return
  }
  func.func @transform_0(%arg0: i32) -> (i32, i32) {
    %c0_i32 = arith.constant 0 : i32
    %c0_i32_0 = arith.constant 0 : i32
    return %arg0, %c0_i32 : i32, i32
  }
  func.func @transform_1(%arg0: i32) -> (i32, i32) {
    %c0_i32 = arith.constant 0 : i32
    %c0_i32_0 = arith.constant 0 : i32
    return %arg0, %c0_i32 : i32, i32
  }
  func.func @transform_2(%arg0: i32) -> (i32, i32) {
    %c0_i32 = arith.constant 0 : i32
    %c0_i32_0 = arith.constant 0 : i32
    return %arg0, %c0_i32 : i32, i32
  }
  func.func @transform_3(%arg0: i32) -> (i32, i32) {
    %c0_i32 = arith.constant 0 : i32
    %c0_i32_0 = arith.constant 0 : i32
    return %arg0, %c0_i32 : i32, i32
  }
  func.func @transform_4(%arg0: i32) -> (i32, i32) {
    %c0_i32 = arith.constant 0 : i32
    %c0_i32_0 = arith.constant 0 : i32
    %c0_i32_1 = arith.constant 0 : i32
    return %c0_i32, %c0_i32_0 : i32, i32
  }
  func.func @transform_5(%arg0: i32) -> (i32, i32) {
    %c0_i32 = arith.constant 0 : i32
    %c0_i32_0 = arith.constant 0 : i32
    %c0_i32_1 = arith.constant 0 : i32
    return %c0_i32, %c0_i32_0 : i32, i32
  }
  func.func @transform_6(%arg0: i32) -> (i32, i32) {
    %c0_i32 = arith.constant 0 : i32
    %c0_i32_0 = arith.constant 0 : i32
    return %arg0, %c0_i32 : i32, i32
  }
}

</mosaic_0001>

<bundles_post_ra>
// kernel: simplenet_forward.4
= control target key start
LH: loop header
LB: loop body
LE: loop exit
PB: predicated region body
PF: predicated region fallthrough
CT: control target
= control target key end

     0   :  { %vm74_vm0 = vcmask 588800   ;;  %vm81_vm1 = vcmask 1043456   ;;  %s630_s4 = inlined_call_operand.vmem [shape: bf16[72,128], index: 4, kind: input, shape index: {}]   ;;  %s631_s0 = inlined_call_operand.vmem [shape: bf16[32,72], index: 0, kind: input, shape index: {}]   ;;  %s632_s1 = inlined_call_operand.vmem [shape: bf16[32,72], index: 1, kind: input, shape index: {}]   ;;  %s633_s2 = inlined_call_operand.vmem [shape: bf16[32,72], index: 2, kind: input, shape index: {}]   ;;  %s634_s3 = inlined_call_operand.vmem [shape: bf16[32,72], index: 3, kind: input, shape index: {}]   ;;  %s635_s5 = inlined_call_operand.vmem [shape: f32[1,128], index: 5, kind: input, shape index: {}]   ;;  %s636_s6 = inlined_call_operand.vmem [shape: bf16[32,128], index: 6, kind: output, shape index: {}]  }
   0x1   :  { %v521_v0 = vld [vmem:[%s630_s4] sm:$0xff]   ;;  %v522_v1 = vld [vmem:[%s630_s4 + $0x8] sm:$0xff]   ;;  %v523_v2 = vld [vmem:[%s630_s4 + $0x10] sm:$0xff]  }
   0x2   :  { %461 = vmatprep.subr.bf16.mxu0 %v521_v0  ;;  %475 = vmatprep.subr.bf16.mxu1 %v521_v0  ;;  %v526_v3 = vld [vmem:[%s631_s0] sm:$0xff]   ;;  %v524_v5 = vld [vmem:[%s630_s4 + $0x18] sm:$0xff]   ;;  %v528_v8 = vld [vmem:[%s631_s0 + $0x8] sm:$0xff]  }
   0x3   :  { %462 = vmatpush3.bf16.msra.mxu0 %v521_v0  ;;  %476 = vmatpush3.bf16.msra.mxu1 %v521_v0  ;;  %v527_v4 = vld [vmem:[%s632_s1] sm:$0xff]   ;;  %v529_v9 = vld [vmem:[%s632_s1 + $0x8] sm:$0xff]  }
   0x4   :  { %463 = vmatprep.subr.bf16.mxu0 %v522_v1  ;;  %477 = vmatprep.subr.bf16.mxu1 %v522_v1  ;;  %v525_v6 = vld [vmem:[%s630_s4 + $0x20] ss:$0 sps:$4 sm:$0xff]   ;;  %v532_v12 = vld [vmem:[%s633_s2 + $0x8] sm:$0xff]  }
   0x5   :  { %471 = vmatprep.mubr.msk.bf16.mxu0 %vm74_vm0, %v526_v3  ;;  %485 = vmatprep.mubr.msk.bf16.mxu1 %vm74_vm0, %v527_v4  ;;  %v83_v7 = vsel %vm81_vm1, %v525_v6, 0  ;;  %v530_v10 = vld [vmem:[%s633_s2] sm:$0xff]   ;;  %v533_v13 = vld [vmem:[%s634_s3 + $0x8] sm:$0xff]  }
   0x6   :  { %v531_v11 = vld [vmem:[%s634_s3] sm:$0xff]  }
   0x7   :  { %464 = vmatpush3.bf16.msra.mxu0 %v522_v1  ;;  %478 = vmatpush3.bf16.msra.mxu1 %v522_v1  ;;  %v413_v31 = vld [vmem:[%s635_s5] ss:$0 sm:$0xff] }
   0x8   :  { %465 = vmatprep.subr.bf16.mxu0 %v523_v2  ;;  %479 = vmatprep.subr.bf16.mxu1 %v523_v2 }
   0xb   :  { %466 = vmatpush3.bf16.msra.mxu0 %v523_v2  ;;  %480 = vmatpush3.bf16.msra.mxu1 %v523_v2 }
   0xc   :  { %467 = vmatprep.subr.bf16.mxu0 %v524_v5  ;;  %481 = vmatprep.subr.bf16.mxu1 %v524_v5 }
   0xf   :  { %468 = vmatpush3.bf16.msra.mxu0 %v524_v5  ;;  %482 = vmatpush3.bf16.msra.mxu1 %v524_v5 }
  0x10   :  { %517 = vmatprep.subr.msk.bf16.mxu0 %vm81_vm1, %v525_v6  ;;  %518 = vmatprep.subr.msk.bf16.mxu1 %vm81_vm1, %v525_v6 }
  0x13   :  { %470 = vmatpush3.bf16.msra.mxu0 %v83_v7  ;;  %484 = vmatpush3.bf16.msra.mxu1 %v83_v7 }
  0x14   :  { %489 = vmatprep.subr.bf16.mxu0 %v521_v0  ;;  %503 = vmatprep.subr.bf16.mxu1 %v521_v0 }
  0x16   :  { %472 = vmatmul.mubr.msk.bf16.vlgmr.msra.gmra.mrb[0].mxu0 %vm74_vm0, %v528_v8  ;;  %486 = vmatmul.mubr.msk.bf16.vlgmr.msra.gmra.mrb[0].mxu1 %vm74_vm0, %v529_v9 }
  0x17   :  { %490 = vmatpush3.bf16.msra.mxu0 %v521_v0  ;;  %504 = vmatpush3.bf16.msra.mxu1 %v521_v0 }
  0x18   :  { %491 = vmatprep.subr.bf16.mxu0 %v522_v1  ;;  %505 = vmatprep.subr.bf16.mxu1 %v522_v1 }
  0x19   :  { %499 = vmatprep.mubr.msk.bf16.mxu0 %vm74_vm0, %v530_v10  ;;  %513 = vmatprep.mubr.msk.bf16.mxu1 %vm74_vm0, %v531_v11 }
  0x1b   :  { %492 = vmatpush3.bf16.msra.mxu0 %v522_v1  ;;  %506 = vmatpush3.bf16.msra.mxu1 %v522_v1 }
  0x1c   :  { %493 = vmatprep.subr.bf16.mxu0 %v523_v2  ;;  %507 = vmatprep.subr.bf16.mxu1 %v523_v2 }
  0x1f   :  { %494 = vmatpush3.bf16.msra.mxu0 %v523_v2  ;;  %508 = vmatpush3.bf16.msra.mxu1 %v523_v2 }
  0x20   :  { %495 = vmatprep.subr.bf16.mxu0 %v524_v5  ;;  %509 = vmatprep.subr.bf16.mxu1 %v524_v5 }
  0x23   :  { %496 = vmatpush3.bf16.msra.mxu0 %v524_v5  ;;  %510 = vmatpush3.bf16.msra.mxu1 %v524_v5 }
  0x24   :  { %519 = vmatprep.subr.msk.bf16.mxu0 %vm81_vm1, %v525_v6  ;;  %520 = vmatprep.subr.msk.bf16.mxu1 %vm81_vm1, %v525_v6 }
  0x27   :  { %498 = vmatpush3.bf16.msra.mxu0 %v83_v7  ;;  %512 = vmatpush3.bf16.msra.mxu1 %v83_v7 }
  0x2a   :  { %500 = vmatmul.mubr.msk.bf16.vlgmr.msra.gmra.mrb[4].mxu0 %vm74_vm0, %v532_v12  ;;  %514 = vmatmul.mubr.msk.bf16.vlgmr.msra.gmra.mrb[4].mxu1 %vm74_vm0, %v533_v13 }
  0xe9   :  { %v473_v14 = vpop.f32.mrb[0].mxu0  ;;  %v487_v15 = vpop.f32.mrb[0].mxu1 }
  0xea   :  { %v343_v16 = vmax.f32 %v473_v14, %v487_v15  ;;  %v119_v17 = vpop.f32.mrb[1].mxu0  ;;  %v188_v18 = vpop.f32.mrb[1].mxu1 }
  0xeb   :  { %v341_v19 = vmax.f32 %v119_v17, %v188_v18  ;;  %v474_v20 = vpop.f32.mrb[2].mxu0  ;;  %v488_v21 = vpop.f32.mrb[2].mxu1 }
  0xec   :  { %v344_v22 = vmax.f32 %v474_v20, %v488_v21  ;;  %v122_v23 = vpop.f32.mrb[3].mxu0  ;;  %v191_v24 = vpop.f32.mrb[3].mxu1 }
  0xed   :  { %v342_v25 = vmax.f32 %v122_v23, %v191_v24 }
  0xfd   :  { %v501_v26 = vpop.f32.mrb[4].mxu0  ;;  %v515_v27 = vpop.f32.mrb[4].mxu1 }
  0xfe   :  { %v347_v28 = vmax.f32 %v501_v26, %v515_v27  ;;  %v257_v29 = vpop.f32.mrb[5].mxu0  ;;  %v326_v30 = vpop.f32.mrb[5].mxu1 }
  0xff   :  { %v345_v32 = vmax.f32 %v257_v29, %v326_v30  ;;  %v502_v33 = vpop.f32.mrb[6].mxu0  ;;  %v516_v34 = vpop.f32.mrb[6].mxu1 }
 0x100   :  { %v351_v35 = vmax.f32 %v343_v16, %v347_v28  ;;  %v348_v36 = vmax.f32 %v502_v33, %v516_v34  ;;  %v260_v37 = vpop.f32.mrb[7].mxu0  ;;  %v329_v38 = vpop.f32.mrb[7].mxu1 }
 0x101   :  { %v349_v39 = vmax.f32 %v341_v19, %v345_v32  ;;  %v346_v40 = vmax.f32 %v260_v37, %v329_v38 }
 0x102   :  { %v362_v41 = vadd.f32 %v413_v31, %v351_v35  ;;  %v352_v42 = vmax.f32 %v344_v22, %v348_v36 }
 0x103   :  { %v360_v43 = vadd.f32 %v413_v31, %v349_v39  ;;  %v350_v44 = vmax.f32 %v342_v25, %v346_v40 }
 0x104   :  { %v363_v45 = vadd.f32 %v413_v31, %v352_v42  ;;  %v366_v47 = vmax.f32 %v362_v41, 0.0 }
 0x105   :  { %v361_v46 = vadd.f32 %v413_v31, %v350_v44  ;;  %v364_v49 = vmax.f32 %v360_v43, 0.0 }
 0x106   :  { %v367_v48 = vmax.f32 %v363_v45, 0.0 }
 0x107   :  { %v365_v50 = vmax.f32 %v361_v46, 0.0 }
 0x108   :  { %v430_v51 = vpack.c.bf16 %v367_v48, %v366_v47 }
 0x109   :  { %v425_v52 = vpack.c.bf16 %v365_v50, %v364_v49 }
 0x10a   :  { %432 = vst [vmem:[%s636_s6 + $0x8] sm:$0xff] %v430_v51  }
 0x10b   :  { %426 = vst [vmem:[%s636_s6] sm:$0xff] %v425_v52  }

// kernel: simplenet_forward.7
= control target key start
LH: loop header
LB: loop body
LE: loop exit
PB: predicated region body
PF: predicated region fallthrough
CT: control target
= control target key end

     0   :  { %v599_v2 = vmov 0.0   ;;  %v80_v10 = vlaneseq  ;;  %v600_v14 = vmov 1966171168   ;;  %s765_s0 = inlined_call_operand.vmem [shape: bf16[2,256], index: 0, kind: input, shape index: {}]   ;;  %s766_s1 = inlined_call_operand.vmem [shape: bf16[256,128], index: 1, kind: input, shape index: {}]   ;;  %s767_s2 = inlined_call_operand.vmem [shape: f32[1,128], index: 2, kind: input, shape index: {}]   ;;  %s768_s3 = inlined_call_operand.vmem [shape: bf16[128,64], index: 3, kind: input, shape index: {}]   ;;  %s769_s4 = inlined_call_operand.vmem [shape: f32[1,64], index: 4, kind: input, shape index: {}]   ;;  %s770_s5 = inlined_call_operand.vmem [shape: bf16[64,128], index: 5, kind: input, shape index: {}]   ;;  %s771_s6 = inlined_call_operand.vmem [shape: f32[1,128], index: 6, kind: input, shape index: {}]   ;;  %s772_s7 = inlined_call_operand.hbm [shape: f32[2,128], index: 7, kind: output, shape index: {}]  }
   0x1   :  { %v547_v0 = vld [vmem:[%s766_s1 + $0x40] sm:$0xff]   ;;  %511 = vmatprep.subr.bf16.mxu1 %v599_v2  ;;  %v549_v3 = vld [vmem:[%s766_s1 + $0x48] sm:$0xff]   ;;  %v551_v5 = vld [vmem:[%s766_s1 + $0x50] sm:$0xff]   ;;  %v78_v15 = vunpack.c.l.s4 %v600_v14 }
   0x2   :  { %v548_v1 = vld [vmem:[%s766_s1] sm:$0xff]   ;;  %475 = vmatprep.subr.bf16.mxu0 %v547_v0  ;;  %v550_v4 = vld [vmem:[%s766_s1 + $0x8] sm:$0xff]   ;;  %v552_v6 = vld [vmem:[%s766_s1 + $0x10] sm:$0xff]   ;;  %v81_v16 = vshrl.u32 %v80_v10, 7 }
   0x3   :  { %476 = vmatpush3.bf16.msra.mxu0 %v548_v1  ;;  %v553_v7 = vld [vmem:[%s766_s1 + $0x58] sm:$0xff]   ;;  %v555_v9 = vld [vmem:[%s766_s1 + $0x60] sm:$0xff]   ;;  %v557_v12 = vld [vmem:[%s766_s1 + $0x68] sm:$0xff]   ;;  %v79_v20 = vunpack.c.0.s8 %v78_v15 }
   0x4   :  { %477 = vmatprep.subr.bf16.mxu0 %v549_v3  ;;  %v554_v8 = vld [vmem:[%s766_s1 + $0x18] sm:$0xff]   ;;  %v556_v11 = vld [vmem:[%s766_s1 + $0x20] sm:$0xff]   ;;  %v558_v18 = vld [vmem:[%s766_s1 + $0x28] sm:$0xff]  }
   0x5   :  { %v443_v13 = vld.sshfl [vmem:[%s765_s0] sm:$0x11 pattern:$0x75316420]  ;;  %v564_v21 = vld [vmem:[%s768_s3 + $0x8] sm:$0xff]   ;;  %v559_v22 = vld [vmem:[%s766_s1 + $0x70] sm:$0xff]   ;;  %v82_v24 = vsub.s32 %v79_v20, %v81_v16 }
   0x6   :  { %v563_v17 = vld [vmem:[%s768_s3] sm:$0xff]   ;;  %v76_v19 = vcombine.high %v443_v13, %v443_v13  ;;  %v560_v23 = vld [vmem:[%s766_s1 + $0x30] sm:$0xff]   ;;  %v561_v25 = vld [vmem:[%s766_s1 + $0x78] sm:$0xff]  }
   0x7   :  { %478 = vmatpush3.bf16.msra.mxu0 %v550_v4  ;;  %512 = vmatpush3.bf16.msra.mxu1 %v563_v17  ;;  %v565_v26 = vld [vmem:[%s768_s3 + $0x10] sm:$0xff]   ;;  %v562_v28 = vld [vmem:[%s766_s1 + $0x38] sm:$0xff]  }
   0x8   :  { %479 = vmatprep.subr.bf16.mxu0 %v551_v5  ;;  %513 = vmatprep.subr.bf16.mxu1 %v599_v2  ;;  %v90_v27 = vrot.slane %v76_v19, %v82_v24  ;;  %v566_v29 = vld [vmem:[%s768_s3 + $0x18] sm:$0xff]  }
   0xa   :  { %221 = vmatprep.mubr.bf16.mxu0 %v90_v27 }
   0xb   :  { %480 = vmatpush3.bf16.msra.mxu0 %v552_v6  ;;  %514 = vmatpush3.bf16.msra.mxu1 %v564_v21 }
   0xc   :  { %481 = vmatprep.subr.bf16.mxu0 %v553_v7  ;;  %515 = vmatprep.subr.bf16.mxu1 %v599_v2 }
   0xf   :  { %482 = vmatpush3.bf16.msra.mxu0 %v554_v8  ;;  %516 = vmatpush3.bf16.msra.mxu1 %v565_v26 }
  0x10   :  { %483 = vmatprep.subr.bf16.mxu0 %v555_v9 }
  0x13   :  { %484 = vmatpush3.bf16.msra.mxu0 %v556_v11 }
  0x14   :  { %485 = vmatprep.subr.bf16.mxu0 %v557_v12 }
  0x17   :  { %486 = vmatpush3.bf16.msra.mxu0 %v558_v18 }
  0x18   :  { %487 = vmatprep.subr.bf16.mxu0 %v559_v22 }
  0x1b   :  { %488 = vmatpush3.bf16.msra.mxu0 %v560_v23 }
  0x1c   :  { %12 = vsyncpa [#allocation3], 0  ;;  %489 = vmatprep.subr.bf16.mxu0 %v561_v25  ;;  %517 = vmatprep.subr.bf16.mxu1 %v599_v2  ;;  %v83_v30 = vrot.slane %v443_v13, %v82_v24  ;;  %v567_v31 = vld [vmem:[%s768_s3 + $0x20] sm:$0xff]   ;;  %v568_v32 = vld [vmem:[%s768_s3 + $0x28] sm:$0xff]   ;;  %vm601_vm0 = vmmov 0   ;;  %vm383_vm1 = vcmask 523264  }
  0x1d   :  { %518 = vmatpush3.bf16.msra.mxu1 %v566_v29  ;;  %v569_v33 = vld [vmem:[%s768_s3 + $0x30] sm:$0xff]   ;;  %v570_v34 = vld [vmem:[%s768_s3 + $0x38] sm:$0xff]   ;;  %527 = vmatprep.mubr.msk.bf16.mxu1 %vm601_vm0, %v599_v2  ;;  %v571_v35 = vld [vmem:[%s770_s5] sm:$0xff]   ;;  %s602_s14 = smov [#allocation2]  }
  0x1e   :  { %519 = vmatprep.subr.bf16.mxu1 %v599_v2  ;;  %v572_v36 = vld [vmem:[%s770_s5 + $0x8] sm:$0xff]   ;;  %v442_v38 = vld [vmem:[%s767_s2] ss:$0 sm:$0xff]  ;;  %v573_v46 = vld [vmem:[%s770_s5 + $0x10] sm:$0xff]  }
  0x1f   :  { %490 = vmatpush3.bf16.msra.mxu0 %v562_v28  ;;  %v574_v47 = vld [vmem:[%s770_s5 + $0x18] sm:$0xff]   ;;  %v460_v48 = vld [vmem:[%s769_s4] ss:$0 sm:$0xff]  ;;  %s434_s5 = sshll.u32 %s602_s14, 4  ;;  %s435_s5 = int_to_ptr.vmem [resolvable:$true] %s434_s5 }
  0x20   :  { %531 = vmatprep.subr.bf16.mxu0 %v599_v2  ;;  %v469_v56 = vld [vmem:[%s771_s6] ss:$0 sm:$0xff]  ;;  %s575_s4 = scalar_lea.vmem %s435_s5, 32  ;;  %p580_p1 = scmp.lt.s32.totalorder %s435_s5, %s435_s5 }
  0x21   :  { %520 = vmatpush3.bf16.msra.mxu1 %v567_v31  ;;  %p576_p0 = scmp.ne.s32.totalorder %s435_s5, %s575_s4  ;;  %p581_p2 = scmp.lt.s32.totalorder %s575_s4, %s575_s4 }
  0x22   :  { %222 = vmatmul.mubr.bf16.vlgmr.msra.gmra.mrb[0].mxu0 %v83_v30  ;;  %521 = vmatprep.subr.bf16.mxu1 %v599_v2 }
  0x23   :  { %539 = vmatprep.mubr.msk.bf16.mxu0 %vm601_vm0, %v599_v2  ;;  %532 = vmatpush3.bf16.msra.mxu0 %v571_v35  ;;  %p582_p3 = por %p581_p2, %p580_p1 }
  0x24   :  { %533 = vmatprep.subr.bf16.mxu0 %v599_v2 }
  0x25   :  { %522 = vmatpush3.bf16.msra.mxu1 %v568_v32  ;;  %p583_p4 = pnand %p582_p3, %p576_p0 }
  0x26   :  { %523 = vmatprep.subr.bf16.mxu1 %v599_v2 }
  0x27   :  { %534 = vmatpush3.bf16.msra.mxu0 %v572_v36 }
  0x28   :  { %535 = vmatprep.subr.bf16.mxu0 %v599_v2 }
  0x29   :  { %524 = vmatpush3.bf16.msra.mxu1 %v569_v33 }
  0x2a   :  { %525 = vmatprep.subr.bf16.mxu1 %v599_v2 }
  0x2b   :  { %536 = vmatpush3.bf16.msra.mxu0 %v573_v46 }
  0x2c   :  { %537 = vmatprep.subr.bf16.mxu0 %v599_v2 }
  0x2d   :  { %526 = vmatpush3.bf16.msra.mxu1 %v570_v34 }
  0x2f   :  { %538 = vmatpush3.bf16.msra.mxu0 %v574_v47 }
  0xf5   :  { %v491_v37 = vpop.f32.mrb[0].mxu0 }
  0xf6   :  { %v492_v39 = vpop.f32.mrb[1].mxu0 }
  0xf7   :  { %v493_v40 = vadd.f32 %v492_v39, %v491_v37  ;;  %v494_v41 = vpop.f32.mrb[2].mxu0 }
  0xf8   :  { %v495_v42 = vpop.f32.mrb[3].mxu0 }
  0xf9   :  { %v224_v43 = vadd.f32 %v493_v40, %v442_v38 }
  0xfb   :  { %v229_v44 = vmax.f32 %v224_v43, 0.0 }
  0xfd   :  { %v230_v45 = vpack.c.bf16 %v229_v44, %v229_v44 }
  0xff   :  { %528 = vmatmul.mubr.bf16.vlgmr.msra.gmra.mrb[0].mxu1 %v230_v45 }
 0x1d2   :  { %v336_v49 = vpop.f32.mrb[0].mxu1 }
 0x1d3   :  { %v337_v50 = vadd.f32 %v460_v48, %v336_v49  ;;  %v529_v51 = vpop.f32.mrb[1].mxu1 }
 0x1d4   :  { %v339_v52 = vpop.f32.mrb[2].mxu1 }
 0x1d5   :  { %v342_v53 = vmax.f32 %v337_v50, 0.0  ;;  %v530_v54 = vpop.f32.mrb[3].mxu1 }
 0x1d7   :  { %v343_v55 = vpack.c.bf16 %v342_v53, %v342_v53 }
 0x1d9   :  { %540 = vmatmul.mubr.msk.bf16.vlgmr.msra.gmra.mrb[4].mxu0 %vm383_vm1, %v343_v55 }
 0x2ac   :  { %v421_v57 = vpop.f32.mrb[4].mxu0 }
 0x2ad   :  { %v422_v58 = vadd.f32 %v469_v56, %v421_v57  ;;  %v541_v59 = vpop.f32.mrb[5].mxu0 }
 0x2ae   :  { %v424_v60 = vpop.f32.mrb[6].mxu0 }
 0x2af   :  { %427 = vst [vmem:[#allocation2] sm:$0x3] %v422_v58  ;;  %v542_v61 = vpop.f32.mrb[7].mxu0 }
 0x2b0   :  { %586 = shalt.err (!%p583_p4)
}
 0x2b1   :  { %s587_s6 = scalar_lea.hbm %s772_s7, 32 }
 0x2b2   :  { %p588_p5 = scmp.ne.s32.totalorder %s772_s7, %s587_s6  ;;  %p591_p6 = scmp.lt.u32.totalorder %s587_s6, %s772_s7 }
 0x2b4   :  { %p593_p7 = pnand %p591_p6, %p588_p5 }
 0x2b6   :  { %596 = shalt.err (!%p593_p7)
}
 0x2b7   :  { %437 = dma.vmem_to_hbm [thread:$0]  %s435_s5, 32, %s772_s7, [#allocation3]  }
 0x2b8   :  { %597 = dma.done.wait [#allocation3], 32  }
 0x2b9   :  { %598 = vsyncadd [#allocation3], 4294967264 }
 0x2ba   :  { %441 = vsyncpa [#allocation3], 1 }

// kernel: simplenet_forward.6
= control target key start
LH: loop header
LB: loop body
LE: loop exit
PB: predicated region body
PF: predicated region fallthrough
CT: control target
= control target key end

     0   :  { %v2528_v7 = vmov 1966171168   ;;  %v176_v9 = vlaneseq  ;;  %s3990_s4 = inlined_call_operand.vmem [shape: bf16[1152,256], index: 4, kind: input, shape index: {}]   ;;  %s3991_s0 = inlined_call_operand.vmem [shape: bf16[2,1152], index: 0, kind: input, shape index: {}]   ;;  %s3992_s1 = inlined_call_operand.vmem [shape: bf16[2,1152], index: 1, kind: input, shape index: {}]   ;;  %s3993_s2 = inlined_call_operand.vmem [shape: bf16[2,1152], index: 2, kind: input, shape index: {}]   ;;  %s3994_s3 = inlined_call_operand.vmem [shape: bf16[2,1152], index: 3, kind: input, shape index: {}]   ;;  %s3995_s5 = inlined_call_operand.vmem [shape: f32[1,256], index: 5, kind: input, shape index: {}]   ;;  %s3996_s6 = inlined_call_operand.vmem [shape: bf16[2,256], index: 6, kind: output, shape index: {}]  }
   0x1   :  { %v2275_v0 = vld [vmem:[%s3990_s4 + $0x4] ss:$8 sps:$4 sm:$0xff]   ;;  %v2277_v1 = vld [vmem:[%s3990_s4] ss:$8 sps:$4 sm:$0xff]   ;;  %v2278_v2 = vld [vmem:[%s3990_s4 + $0x14] ss:$8 sps:$4 sm:$0xff]   ;;  %v174_v8 = vunpack.c.l.s4 %v2528_v7 }
   0x2   :  { %964 = vmatprep.subr.bf16.mxu0 %v2275_v0  ;;  %1245 = vmatprep.subr.bf16.mxu1 %v2275_v0  ;;  %v2280_v3 = vld [vmem:[%s3990_s4 + $0x10] ss:$8 sps:$4 sm:$0xff]   ;;  %v2281_v4 = vld [vmem:[%s3990_s4 + $0x24] ss:$8 sps:$4 sm:$0xff]   ;;  %v2283_v5 = vld [vmem:[%s3990_s4 + $0x20] ss:$8 sps:$4 sm:$0xff]  }
   0x3   :  { %965 = vmatpush1.bf16.msra.mxu0 %v2277_v1  ;;  %1246 = vmatpush1.bf16.msra.mxu1 %v2277_v1  ;;  %v2284_v6 = vld [vmem:[%s3990_s4 + $0x34] ss:$8 sps:$4 sm:$0xff]   ;;  %v2286_v10 = vld [vmem:[%s3990_s4 + $0x30] ss:$8 sps:$4 sm:$0xff]   ;;  %v2287_v11 = vld [vmem:[%s3990_s4 + $0x44] ss:$8 sps:$4 sm:$0xff]   ;;  %v175_v12 = vunpack.c.0.s8 %v174_v8 }
   0x4   :  { %966 = vmatprep.subr.bf16.mxu0 %v2278_v2  ;;  %1247 = vmatprep.subr.bf16.mxu1 %v2278_v2  ;;  %v2592_v13 = vshrl.u32 %v176_v9, 7  ;;  %v2289_v14 = vld [vmem:[%s3990_s4 + $0x40] ss:$8 sps:$4 sm:$0xff]   ;;  %v2290_v15 = vld [vmem:[%s3990_s4 + $0x54] ss:$8 sps:$4 sm:$0xff]  }
   0x5   :  { %v2292_v17 = vld [vmem:[%s3990_s4 + $0x50] ss:$8 sps:$4 sm:$0xff]   ;;  %v2293_v18 = vld [vmem:[%s3990_s4 + $0x64] ss:$8 sps:$4 sm:$0xff]   ;;  %v2295_v22 = vld [vmem:[%s3990_s4 + $0x60] ss:$8 sps:$4 sm:$0xff]  }
   0x6   :  { %4123 = vst [vmem:[#allocation2_spill] sm:$0xff] %v2592_v13  ;;  %v2601_v16 = vsub.s32 %v175_v12, %v2592_v13  ;;  %v2612_v19 = vld [vmem:[%s3991_s0] sm:$0xff]  ;;  %v2296_v24 = vld [vmem:[%s3990_s4 + $0x74] ss:$8 sps:$4 sm:$0xff]   ;;  %v2298_v28 = vld [vmem:[%s3990_s4 + $0x70] ss:$8 sps:$4 sm:$0xff]  }
   0x7   :  { %967 = vmatpush1.bf16.msra.mxu0 %v2280_v3  ;;  %1248 = vmatpush1.bf16.msra.mxu1 %v2280_v3  ;;  %v2621_v21 = vld [vmem:[%s3992_s1] sm:$0xff]  ;;  %v2302_v32 = vld [vmem:[%s3990_s4 + $0x94] ss:$8 sps:$4 sm:$0xff]   ;;  %v2304_v33 = vld [vmem:[%s3990_s4 + $0x90] ss:$8 sps:$4 sm:$0xff]  }
   0x8   :  { %968 = vmatprep.subr.bf16.mxu0 %v2281_v4  ;;  %1249 = vmatprep.subr.bf16.mxu1 %v2281_v4  ;;  %v2616_v20 = vrot.slane %v2612_v19, %v2601_v16  ;;  %v2628_v23 = vrot.slane %v2621_v21, %v2601_v16  ;;  %v2299_v30 = vld [vmem:[%s3990_s4 + $0x84] ss:$8 sps:$4 sm:$0xff]   ;;  %v2301_v31 = vld [vmem:[%s3990_s4 + $0x80] ss:$8 sps:$4 sm:$0xff]   ;;  %v2308_v36 = vld [vmem:[%s3990_s4 + $0xb4] ss:$8 sps:$4 sm:$0xff]  }
   0x9   :  { %v2305_v34 = vld [vmem:[%s3990_s4 + $0xa4] ss:$8 sps:$4 sm:$0xff]   ;;  %v2307_v35 = vld [vmem:[%s3990_s4 + $0xa0] ss:$8 sps:$4 sm:$0xff]   ;;  %v2310_v37 = vld [vmem:[%s3990_s4 + $0xb0] ss:$8 sps:$4 sm:$0xff]  }
   0xa   :  { %v187_v25 = vcombine.high %v2616_v20, %v2616_v20  ;;  %v1188_v26 = vcombine.high %v2628_v23, %v2628_v23  ;;  %v2311_v38 = vld [vmem:[%s3990_s4 + $0xc4] ss:$8 sps:$4 sm:$0xff]   ;;  %v2313_v39 = vld [vmem:[%s3990_s4 + $0xc0] ss:$8 sps:$4 sm:$0xff]   ;;  %v2314_v40 = vld [vmem:[%s3990_s4 + $0xd4] ss:$8 sps:$4 sm:$0xff]   ;;  %v2701_v47 = vrot.slane %v2616_v20, %v2601_v16  ;;  %v2705_v48 = vrot.slane %v2628_v23, %v2601_v16 }
   0xb   :  { %969 = vmatpush1.bf16.msra.mxu0 %v2283_v5  ;;  %1250 = vmatpush1.bf16.msra.mxu1 %v2283_v5  ;;  %v2316_v41 = vld [vmem:[%s3990_s4 + $0xd0] ss:$8 sps:$4 sm:$0xff]   ;;  %v2317_v42 = vld [vmem:[%s3990_s4 + $0xe4] ss:$8 sps:$4 sm:$0xff]   ;;  %v2319_v43 = vld [vmem:[%s3990_s4 + $0xe0] ss:$8 sps:$4 sm:$0xff]  }
   0xc   :  { %970 = vmatprep.subr.bf16.mxu0 %v2284_v6  ;;  %1251 = vmatprep.subr.bf16.mxu1 %v2284_v6  ;;  %v2638_v27 = vrot.slane %v187_v25, %v2601_v16  ;;  %v2644_v29 = vrot.slane %v1188_v26, %v2601_v16  ;;  %v2320_v44 = vld [vmem:[%s3990_s4 + $0xf4] ss:$8 sps:$4 sm:$0xff]   ;;  %v2322_v45 = vld [vmem:[%s3990_s4 + $0xf0] ss:$8 sps:$4 sm:$0xff]   ;;  %v2324_v46 = vld [vmem:[%s3990_s4 + $0x104] ss:$8 sps:$4 sm:$0xff]  }
   0xd   :  { %v2710_v49 = vld [vmem:[%s3990_s4 + $0x100] ss:$8 sps:$4 sm:$0xff]   ;;  %v2715_v50 = vld [vmem:[%s3990_s4 + $0x114] ss:$8 sps:$4 sm:$0xff]   ;;  %v2728_v53 = vld [vmem:[%s3990_s4 + $0x110] ss:$8 sps:$4 sm:$0xff]  }
   0xe   :  { %996 = vmatprep.mubr.bf16.mxu0 %v2638_v27  ;;  %1277 = vmatprep.mubr.bf16.mxu1 %v2644_v29  ;;  %v219_v51 = vcombine.high %v2638_v27, %v2638_v27  ;;  %v1220_v52 = vcombine.high %v2644_v29, %v2644_v29  ;;  %v2735_v54 = vld [vmem:[%s3990_s4 + $0x124] ss:$8 sps:$4 sm:$0xff]   ;;  %v2742_v55 = vld [vmem:[%s3990_s4 + $0x120] ss:$8 sps:$4 sm:$0xff]   ;;  %v2749_v56 = vld [vmem:[%s3990_s4 + $0x134] ss:$8 sps:$4 sm:$0xff]   ;;  %v217_v27 = vcombine.high %v2701_v47, %v2701_v47 }
   0xf   :  { %971 = vmatpush1.bf16.msra.mxu0 %v2286_v10  ;;  %1252 = vmatpush1.bf16.msra.mxu1 %v2286_v10  ;;  %v2756_v57 = vld [vmem:[%s3990_s4 + $0x130] ss:$8 sps:$4 sm:$0xff]   ;;  %v2763_v58 = vld [vmem:[%s3990_s4 + $0x144] ss:$8 sps:$4 sm:$0xff]   ;;  %v2770_v59 = vld [vmem:[%s3990_s4 + $0x140] ss:$8 sps:$4 sm:$0xff]  }
  0x10   :  { %972 = vmatprep.subr.bf16.mxu0 %v2287_v11  ;;  %1253 = vmatprep.subr.bf16.mxu1 %v2287_v11  ;;  %v2777_v60 = vld [vmem:[%s3990_s4 + $0x154] ss:$8 sps:$4 sm:$0xff]   ;;  %v2784_v61 = vld [vmem:[%s3990_s4 + $0x150] ss:$8 sps:$4 sm:$0xff]   ;;  %v2791_v62 = vld [vmem:[%s3990_s4 + $0x164] ss:$8 sps:$4 sm:$0xff]  }
  0x11   :  { %v2798_v63 = vld [vmem:[%s3990_s4 + $0x160] ss:$8 sps:$4 sm:$0xff]   ;;  %v2805_v0 = vld [vmem:[%s3990_s4 + $0x174] ss:$8 sps:$4 sm:$0xff]   ;;  %v2812_v1 = vld [vmem:[%s3990_s4 + $0x170] ss:$8 sps:$4 sm:$0xff]  }
  0x12   :  { %v2819_v2 = vld [vmem:[%s3990_s4 + $0x184] ss:$8 sps:$4 sm:$0xff]   ;;  %v2826_v3 = vld [vmem:[%s3990_s4 + $0x180] ss:$8 sps:$4 sm:$0xff]   ;;  %v2833_v4 = vld [vmem:[%s3990_s4 + $0x194] ss:$8 sps:$4 sm:$0xff]  }
  0x13   :  { %973 = vmatpush1.bf16.msra.mxu0 %v2289_v14  ;;  %1254 = vmatpush1.bf16.msra.mxu1 %v2289_v14  ;;  %v2840_v5 = vld [vmem:[%s3990_s4 + $0x190] ss:$8 sps:$4 sm:$0xff]   ;;  %v2847_v6 = vld [vmem:[%s3990_s4 + $0x1a4] ss:$8 sps:$4 sm:$0xff]   ;;  %v2854_v7 = vld [vmem:[%s3990_s4 + $0x1a0] ss:$8 sps:$4 sm:$0xff]  }
  0x14   :  { %974 = vmatprep.subr.bf16.mxu0 %v2290_v15  ;;  %1255 = vmatprep.subr.bf16.mxu1 %v2290_v15  ;;  %v2861_v8 = vld [vmem:[%s3990_s4 + $0x1b4] ss:$8 sps:$4 sm:$0xff]   ;;  %v2868_v9 = vld [vmem:[%s3990_s4 + $0x1b0] ss:$8 sps:$4 sm:$0xff]   ;;  %v2875_v10 = vld [vmem:[%s3990_s4 + $0x1c4] ss:$8 sps:$4 sm:$0xff]  }
  0x15   :  { %v2882_v11 = vld [vmem:[%s3990_s4 + $0x1c0] ss:$8 sps:$4 sm:$0xff]   ;;  %v2889_v12 = vld [vmem:[%s3990_s4 + $0x1d4] ss:$8 sps:$4 sm:$0xff]   ;;  %v2896_v14 = vld [vmem:[%s3990_s4 + $0x1d0] ss:$8 sps:$4 sm:$0xff]  }
  0x16   :  { %v2903_v15 = vld [vmem:[%s3990_s4 + $0x1e4] ss:$8 sps:$4 sm:$0xff]   ;;  %v2914_v20 = vld [vmem:[%s3990_s4 + $0x1e0] ss:$8 sps:$4 sm:$0xff]   ;;  %v2934_v23 = vld [vmem:[%s3990_s4 + $0x1f0] ss:$8 sps:$4 sm:$0xff]  }
  0x17   :  { %975 = vmatpush1.bf16.msra.mxu0 %v2292_v17  ;;  %1256 = vmatpush1.bf16.msra.mxu1 %v2292_v17  ;;  %v172_v17 = vcombine.high %v2612_v19, %v2612_v19  ;;  %v2921_v19 = vld [vmem:[%s3990_s4 + $0x1f4] ss:$8 sps:$4 sm:$0xff]   ;;  %v2956_v29 = vld [vmem:[%s3990_s4 + $0x200] ss:$8 sps:$4 sm:$0xff]   ;;  %v3146_v13 = vld [vmem:[%s3990_s4 + $0x2d0] ss:$8 sps:$4 sm:$0xff]  }
  0x18   :  { %976 = vmatprep.subr.bf16.mxu0 %v2293_v18  ;;  %1257 = vmatprep.subr.bf16.mxu1 %v2293_v18  ;;  %v1173_v18 = vcombine.high %v2621_v21, %v2621_v21  ;;  %4133 = vst [vmem:[#allocation12_spill] sm:$0xff] %v3146_v13 }
  0x19   :  { %v2924_v21 = vrot.slane %v172_v17, %v2601_v16  ;;  %v3104_v17 = vld [vmem:[%s3990_s4 + $0x2a0] ss:$8 sps:$4 sm:$0xff]  }
  0x1a   :  { %4127 = vst [vmem:[#allocation6_spill] sm:$0xff] %v3104_v17 }
  0x1b   :  { %977 = vmatpush1.bf16.msra.mxu0 %v2295_v22  ;;  %1258 = vmatpush1.bf16.msra.mxu1 %v2295_v22  ;;  %v2927_v22 = vrot.slane %v1173_v18, %v2601_v16  ;;  %v188_v25 = vcombine.high %v2924_v21, %v2924_v21  ;;  %v3111_v18 = vld [vmem:[%s3990_s4 + $0x2b4] ss:$8 sps:$4 sm:$0xff]  }
  0x1c   :  { %978 = vmatprep.subr.bf16.mxu0 %v2296_v24  ;;  %1259 = vmatprep.subr.bf16.mxu1 %v2296_v24  ;;  %v2941_v24 = vld [vmem:[%s3990_s4 + $0x204] ss:$8 sps:$4 sm:$0xff]   ;;  %4128 = vst [vmem:[#allocation7_spill] sm:$0xff] %v3111_v18 }
  0x1d   :  { %v1189_v26 = vcombine.high %v2927_v22, %v2927_v22 }
  0x1f   :  { %979 = vmatpush1.bf16.msra.mxu0 %v2298_v28  ;;  %1260 = vmatpush1.bf16.msra.mxu1 %v2298_v28  ;;  %v1218_v28 = vcombine.high %v2705_v48, %v2705_v48 }
  0x20   :  { %980 = vmatprep.subr.bf16.mxu0 %v2299_v30  ;;  %1261 = vmatprep.subr.bf16.mxu1 %v2299_v30  ;;  %v2963_v30 = vld [vmem:[%s3990_s4 + $0x214] ss:$8 sps:$4 sm:$0xff]  }
  0x23   :  { %981 = vmatpush1.bf16.msra.mxu0 %v2301_v31  ;;  %1262 = vmatpush1.bf16.msra.mxu1 %v2301_v31  ;;  %v2966_v31 = vrot.slane %v188_v25, %v2601_v16  ;;  %v3118_v25 = vld [vmem:[%s3990_s4 + $0x2b0] ss:$8 sps:$4 sm:$0xff]  }
  0x24   :  { %982 = vmatprep.subr.bf16.mxu0 %v2302_v32  ;;  %1263 = vmatprep.subr.bf16.mxu1 %v2302_v32  ;;  %v2969_v32 = vrot.slane %v1189_v26, %v2601_v16  ;;  %4129 = vst [vmem:[#allocation8_spill] sm:$0xff] %v3118_v25  ;;  %v3125_v26 = vld [vmem:[%s3990_s4 + $0x2c4] ss:$8 sps:$4 sm:$0xff]  }
  0x25   :  { %4130 = vst [vmem:[#allocation9_spill] sm:$0xff] %v3125_v26 }
  0x27   :  { %983 = vmatpush1.bf16.msra.mxu0 %v2304_v33  ;;  %1264 = vmatpush1.bf16.msra.mxu1 %v2304_v33  ;;  %v2976_v33 = vld [vmem:[%s3990_s4 + $0x210] ss:$8 sps:$4 sm:$0xff]  }
  0x28   :  { %984 = vmatprep.subr.bf16.mxu0 %v2305_v34  ;;  %1265 = vmatprep.subr.bf16.mxu1 %v2305_v34  ;;  %v2983_v34 = vld [vmem:[%s3990_s4 + $0x224] ss:$8 sps:$4 sm:$0xff]  }
  0x2b   :  { %985 = vmatpush1.bf16.msra.mxu0 %v2307_v35  ;;  %1266 = vmatpush1.bf16.msra.mxu1 %v2307_v35  ;;  %v2992_v35 = vld [vmem:[%s3990_s4 + $0x220] ss:$8 sps:$4 sm:$0xff]  }
  0x2c   :  { %986 = vmatprep.subr.bf16.mxu0 %v2308_v36  ;;  %1267 = vmatprep.subr.bf16.mxu1 %v2308_v36  ;;  %v2999_v36 = vld [vmem:[%s3990_s4 + $0x234] ss:$8 sps:$4 sm:$0xff]  }
  0x2f   :  { %987 = vmatpush1.bf16.msra.mxu0 %v2310_v37  ;;  %1268 = vmatpush1.bf16.msra.mxu1 %v2310_v37  ;;  %v3006_v37 = vld [vmem:[%s3990_s4 + $0x230] ss:$8 sps:$4 sm:$0xff]  }
  0x30   :  { %988 = vmatprep.subr.bf16.mxu0 %v2311_v38  ;;  %1269 = vmatprep.subr.bf16.mxu1 %v2311_v38  ;;  %v3013_v38 = vld [vmem:[%s3990_s4 + $0x244] ss:$8 sps:$4 sm:$0xff]  }
  0x33   :  { %989 = vmatpush1.bf16.msra.mxu0 %v2313_v39  ;;  %1270 = vmatpush1.bf16.msra.mxu1 %v2313_v39  ;;  %v3020_v39 = vld [vmem:[%s3990_s4 + $0x240] ss:$8 sps:$4 sm:$0xff]  }
  0x34   :  { %990 = vmatprep.subr.bf16.mxu0 %v2314_v40  ;;  %1271 = vmatprep.subr.bf16.mxu1 %v2314_v40  ;;  %v3027_v40 = vld [vmem:[%s3990_s4 + $0x254] ss:$8 sps:$4 sm:$0xff]  }
  0x37   :  { %991 = vmatpush1.bf16.msra.mxu0 %v2316_v41  ;;  %1272 = vmatpush1.bf16.msra.mxu1 %v2316_v41  ;;  %v3034_v41 = vld [vmem:[%s3990_s4 + $0x250] ss:$8 sps:$4 sm:$0xff]  }
  0x38   :  { %992 = vmatprep.subr.bf16.mxu0 %v2317_v42  ;;  %1273 = vmatprep.subr.bf16.mxu1 %v2317_v42  ;;  %v3041_v42 = vld [vmem:[%s3990_s4 + $0x264] ss:$8 sps:$4 sm:$0xff]  }
  0x3b   :  { %993 = vmatpush1.bf16.msra.mxu0 %v2319_v43  ;;  %1274 = vmatpush1.bf16.msra.mxu1 %v2319_v43  ;;  %v3048_v43 = vld [vmem:[%s3990_s4 + $0x260] ss:$8 sps:$4 sm:$0xff]  }
  0x3c   :  { %994 = vmatprep.subr.bf16.mxu0 %v2320_v44  ;;  %1275 = vmatprep.subr.bf16.mxu1 %v2320_v44  ;;  %v3055_v44 = vld [vmem:[%s3990_s4 + $0x274] ss:$8 sps:$4 sm:$0xff]  }
  0x3f   :  { %995 = vmatpush1.bf16.msra.mxu0 %v2322_v45  ;;  %1276 = vmatpush1.bf16.msra.mxu1 %v2322_v45  ;;  %v3062_v45 = vld [vmem:[%s3990_s4 + $0x270] ss:$8 sps:$4 sm:$0xff]  }
  0x40   :  { %1005 = vmatprep.subr.bf16.mxu0 %v2324_v46  ;;  %1286 = vmatprep.subr.bf16.mxu1 %v2324_v46  ;;  %v3069_v46 = vld [vmem:[%s3990_s4 + $0x284] ss:$8 sps:$4 sm:$0xff]  }
  0x42   :  { %997 = vmatmul.mubr.bf16.vlgmr.msra.gmra.mrb[0].mxu0 %v2701_v47  ;;  %1278 = vmatmul.mubr.bf16.vlgmr.msra.gmra.mrb[0].mxu1 %v2705_v48  ;;  %v3076_v47 = vld [vmem:[%s3990_s4 + $0x280] ss:$8 sps:$4 sm:$0xff]   ;;  %v3083_v48 = vld [vmem:[%s3990_s4 + $0x294] ss:$8 sps:$4 sm:$0xff]  }
  0x43   :  { %1006 = vmatpush1.bf16.msra.mxu0 %v2710_v49  ;;  %1287 = vmatpush1.bf16.msra.mxu1 %v2710_v49  ;;  %4124 = vst [vmem:[#allocation3_spill] sm:$0xff] %v3083_v48 }
  0x44   :  { %1007 = vmatprep.subr.bf16.mxu0 %v2715_v50  ;;  %1288 = vmatprep.subr.bf16.mxu1 %v2715_v50 }
  0x45   :  { %1037 = vmatprep.mubr.bf16.mxu0 %v219_v51  ;;  %1318 = vmatprep.mubr.bf16.mxu1 %v1220_v52  ;;  %v3090_v51 = vld [vmem:[%s3990_s4 + $0x290] ss:$8 sps:$4 sm:$0xff]   ;;  %v3097_v52 = vld [vmem:[%s3990_s4 + $0x2a4] ss:$8 sps:$4 sm:$0xff]  }
  0x46   :  { %4125 = vst [vmem:[#allocation4_spill] sm:$0xff] %v3090_v51  ;;  %4126 = vst [vmem:[#allocation5_spill] sm:$0xff] %v3097_v52 }
  0x47   :  { %1008 = vmatpush1.bf16.msra.mxu0 %v2728_v53  ;;  %1289 = vmatpush1.bf16.msra.mxu1 %v2728_v53 }
  0x48   :  { %1009 = vmatprep.subr.bf16.mxu0 %v2735_v54  ;;  %1290 = vmatprep.subr.bf16.mxu1 %v2735_v54 }
  0x4b   :  { %1010 = vmatpush1.bf16.msra.mxu0 %v2742_v55  ;;  %1291 = vmatpush1.bf16.msra.mxu1 %v2742_v55 }
  0x4c   :  { %1011 = vmatprep.subr.bf16.mxu0 %v2749_v56  ;;  %1292 = vmatprep.subr.bf16.mxu1 %v2749_v56 }
  0x4f   :  { %1012 = vmatpush1.bf16.msra.mxu0 %v2756_v57  ;;  %1293 = vmatpush1.bf16.msra.mxu1 %v2756_v57 }
  0x50   :  { %1013 = vmatprep.subr.bf16.mxu0 %v2763_v58  ;;  %1294 = vmatprep.subr.bf16.mxu1 %v2763_v58 }
  0x53   :  { %1014 = vmatpush1.bf16.msra.mxu0 %v2770_v59  ;;  %1295 = vmatpush1.bf16.msra.mxu1 %v2770_v59 }
  0x54   :  { %1015 = vmatprep.subr.bf16.mxu0 %v2777_v60  ;;  %1296 = vmatprep.subr.bf16.mxu1 %v2777_v60 }
  0x57   :  { %1016 = vmatpush1.bf16.msra.mxu0 %v2784_v61  ;;  %1297 = vmatpush1.bf16.msra.mxu1 %v2784_v61 }
  0x58   :  { %1017 = vmatprep.subr.bf16.mxu0 %v2791_v62  ;;  %1298 = vmatprep.subr.bf16.mxu1 %v2791_v62 }
  0x5b   :  { %1018 = vmatpush1.bf16.msra.mxu0 %v2798_v63  ;;  %1299 = vmatpush1.bf16.msra.mxu1 %v2798_v63 }
  0x5c   :  { %1019 = vmatprep.subr.bf16.mxu0 %v2805_v0  ;;  %1300 = vmatprep.subr.bf16.mxu1 %v2805_v0 }
  0x5f   :  { %1020 = vmatpush1.bf16.msra.mxu0 %v2812_v1  ;;  %1301 = vmatpush1.bf16.msra.mxu1 %v2812_v1 }
  0x60   :  { %1021 = vmatprep.subr.bf16.mxu0 %v2819_v2  ;;  %1302 = vmatprep.subr.bf16.mxu1 %v2819_v2 }
  0x63   :  { %1022 = vmatpush1.bf16.msra.mxu0 %v2826_v3  ;;  %1303 = vmatpush1.bf16.msra.mxu1 %v2826_v3 }
  0x64   :  { %1023 = vmatprep.subr.bf16.mxu0 %v2833_v4  ;;  %1304 = vmatprep.subr.bf16.mxu1 %v2833_v4 }
  0x67   :  { %1024 = vmatpush1.bf16.msra.mxu0 %v2840_v5  ;;  %1305 = vmatpush1.bf16.msra.mxu1 %v2840_v5 }
  0x68   :  { %1025 = vmatprep.subr.bf16.mxu0 %v2847_v6  ;;  %1306 = vmatprep.subr.bf16.mxu1 %v2847_v6 }
  0x6b   :  { %1026 = vmatpush1.bf16.msra.mxu0 %v2854_v7  ;;  %1307 = vmatpush1.bf16.msra.mxu1 %v2854_v7 }
  0x6c   :  { %1027 = vmatprep.subr.bf16.mxu0 %v2861_v8  ;;  %1308 = vmatprep.subr.bf16.mxu1 %v2861_v8 }
  0x6f   :  { %1028 = vmatpush1.bf16.msra.mxu0 %v2868_v9  ;;  %1309 = vmatpush1.bf16.msra.mxu1 %v2868_v9 }
  0x70   :  { %1029 = vmatprep.subr.bf16.mxu0 %v2875_v10  ;;  %1310 = vmatprep.subr.bf16.mxu1 %v2875_v10 }
  0x73   :  { %1030 = vmatpush1.bf16.msra.mxu0 %v2882_v11  ;;  %1311 = vmatpush1.bf16.msra.mxu1 %v2882_v11 }
  0x74   :  { %1031 = vmatprep.subr.bf16.mxu0 %v2889_v12  ;;  %1312 = vmatprep.subr.bf16.mxu1 %v2889_v12 }
  0x77   :  { %1032 = vmatpush1.bf16.msra.mxu0 %v2896_v14  ;;  %1313 = vmatpush1.bf16.msra.mxu1 %v2896_v14 }
  0x78   :  { %1033 = vmatprep.subr.bf16.mxu0 %v2903_v15  ;;  %1314 = vmatprep.subr.bf16.mxu1 %v2903_v15 }
  0x7b   :  { %1034 = vmatpush1.bf16.msra.mxu0 %v2914_v20  ;;  %1315 = vmatpush1.bf16.msra.mxu1 %v2914_v20 }
  0x7c   :  { %1035 = vmatprep.subr.bf16.mxu0 %v2921_v19  ;;  %1316 = vmatprep.subr.bf16.mxu1 %v2921_v19 }
  0x7f   :  { %1036 = vmatpush1.bf16.msra.mxu0 %v2934_v23  ;;  %1317 = vmatpush1.bf16.msra.mxu1 %v2934_v23 }
  0x80   :  { %1046 = vmatprep.subr.bf16.mxu0 %v2941_v24  ;;  %1327 = vmatprep.subr.bf16.mxu1 %v2941_v24 }
  0x82   :  { %1038 = vmatmul.mubr.bf16.vlgmr.msra.gmra.mrb[0].mxu0 %v217_v27  ;;  %1319 = vmatmul.mubr.bf16.vlgmr.msra.gmra.mrb[0].mxu1 %v1218_v28  ;;  %v3132_v27 = vld [vmem:[%s3990_s4 + $0x2c0] ss:$8 sps:$4 sm:$0xff]   ;;  %v3139_v28 = vld [vmem:[%s3990_s4 + $0x2d4] ss:$8 sps:$4 sm:$0xff]  }
  0x83   :  { %1047 = vmatpush1.bf16.msra.mxu0 %v2956_v29  ;;  %1328 = vmatpush1.bf16.msra.mxu1 %v2956_v29  ;;  %4131 = vst [vmem:[#allocation10_spill] sm:$0xff] %v3132_v27  ;;  %4132 = vst [vmem:[#allocation11_spill] sm:$0xff] %v3139_v28 }
  0x84   :  { %1048 = vmatprep.subr.bf16.mxu0 %v2963_v30  ;;  %1329 = vmatprep.subr.bf16.mxu1 %v2963_v30 }
  0x85   :  { %1078 = vmatprep.mubr.bf16.mxu0 %v2966_v31  ;;  %1359 = vmatprep.mubr.bf16.mxu1 %v2969_v32 }
  0x87   :  { %1049 = vmatpush1.bf16.msra.mxu0 %v2976_v33  ;;  %1330 = vmatpush1.bf16.msra.mxu1 %v2976_v33 }
  0x88   :  { %1050 = vmatprep.subr.bf16.mxu0 %v2983_v34  ;;  %1331 = vmatprep.subr.bf16.mxu1 %v2983_v34 }
  0x8b   :  { %1051 = vmatpush1.bf16.msra.mxu0 %v2992_v35  ;;  %1332 = vmatpush1.bf16.msra.mxu1 %v2992_v35 }
  0x8c   :  { %1052 = vmatprep.subr.bf16.mxu0 %v2999_v36  ;;  %1333 = vmatprep.subr.bf16.mxu1 %v2999_v36 }
  0x8f   :  { %1053 = vmatpush1.bf16.msra.mxu0 %v3006_v37  ;;  %1334 = vmatpush1.bf16.msra.mxu1 %v3006_v37 }
  0x90   :  { %1054 = vmatprep.subr.bf16.mxu0 %v3013_v38  ;;  %1335 = vmatprep.subr.bf16.mxu1 %v3013_v38 }
  0x93   :  { %1055 = vmatpush1.bf16.msra.mxu0 %v3020_v39  ;;  %1336 = vmatpush1.bf16.msra.mxu1 %v3020_v39 }
  0x94   :  { %1056 = vmatprep.subr.bf16.mxu0 %v3027_v40  ;;  %1337 = vmatprep.subr.bf16.mxu1 %v3027_v40 }
  0x97   :  { %1057 = vmatpush1.bf16.msra.mxu0 %v3034_v41  ;;  %1338 = vmatpush1.bf16.msra.mxu1 %v3034_v41 }
  0x98   :  { %1058 = vmatprep.subr.bf16.mxu0 %v3041_v42  ;;  %1339 = vmatprep.subr.bf16.mxu1 %v3041_v42 }
  0x9b   :  { %1059 = vmatpush1.bf16.msra.mxu0 %v3048_v43  ;;  %1340 = vmatpush1.bf16.msra.mxu1 %v3048_v43 }
  0x9c   :  { %1060 = vmatprep.subr.bf16.mxu0 %v3055_v44  ;;  %1341 = vmatprep.subr.bf16.mxu1 %v3055_v44 }
  0x9f   :  { %1061 = vmatpush1.bf16.msra.mxu0 %v3062_v45  ;;  %1342 = vmatpush1.bf16.msra.mxu1 %v3062_v45 }
  0xa0   :  { %1062 = vmatprep.subr.bf16.mxu0 %v3069_v46  ;;  %1343 = vmatprep.subr.bf16.mxu1 %v3069_v46 }
  0xa3   :  { %1063 = vmatpush1.bf16.msra.mxu0 %v3076_v47  ;;  %1344 = vmatpush1.bf16.msra.mxu1 %v3076_v47 }
  0xa4   :  { %1064 = vmatprep.subr.bf16.mxu0 %v3083_v48  ;;  %1345 = vmatprep.subr.bf16.mxu1 %v3083_v48 }
  0xa7   :  { %1065 = vmatpush1.bf16.msra.mxu0 %v3090_v51  ;;  %1346 = vmatpush1.bf16.msra.mxu1 %v3090_v51  ;;  %v2495_v51 = vld [vmem:[%s3990_s4 + $0x4] ss:$8 sps:$4 sm:$0xff]  }
  0xa8   :  { %1066 = vmatprep.subr.bf16.mxu0 %v3097_v52  ;;  %1347 = vmatprep.subr.bf16.mxu1 %v3097_v52 }
  0xab   :  { %1067 = vmatpush1.bf16.msra.mxu0 %v3104_v17  ;;  %1348 = vmatpush1.bf16.msra.mxu1 %v3104_v17 }
  0xac   :  { %1068 = vmatprep.subr.bf16.mxu0 %v3111_v18  ;;  %1349 = vmatprep.subr.bf16.mxu1 %v3111_v18 }
  0xaf   :  { %1069 = vmatpush1.bf16.msra.mxu0 %v3118_v25  ;;  %1350 = vmatpush1.bf16.msra.mxu1 %v3118_v25  ;;  %v3185_v25 = vrot.slane %v2924_v21, %v2601_v16  ;;  %v3203_v21 = vld [vmem:[%s3990_s4 + $0x314] ss:$8 sps:$4 sm:$0xff]  }
  0xb0   :  { %1070 = vmatprep.subr.bf16.mxu0 %v3125_v26  ;;  %1351 = vmatprep.subr.bf16.mxu1 %v3125_v26  ;;  %v3153_v26 = vld [vmem:[%s3990_s4 + $0x2e4] ss:$8 sps:$4 sm:$0xff]   ;;  %4140 = vst [vmem:[#allocation19_spill] sm:$0xff] %v3203_v21 }
  0xb1   :  { %4134 = vst [vmem:[#allocation13_spill] sm:$0xff] %v3153_v26 }
  0xb3   :  { %1071 = vmatpush1.bf16.msra.mxu0 %v3132_v27  ;;  %1352 = vmatpush1.bf16.msra.mxu1 %v3132_v27  ;;  %v3160_v27 = vld [vmem:[%s3990_s4 + $0x2e0] ss:$8 sps:$4 sm:$0xff]  }
  0xb4   :  { %1072 = vmatprep.subr.bf16.mxu0 %v3139_v28  ;;  %1353 = vmatprep.subr.bf16.mxu1 %v3139_v28  ;;  %4135 = vst [vmem:[#allocation14_spill] sm:$0xff] %v3160_v27  ;;  %v3167_v28 = vld [vmem:[%s3990_s4 + $0x2f4] ss:$8 sps:$4 sm:$0xff]  }
  0xb5   :  { %4136 = vst [vmem:[#allocation15_spill] sm:$0xff] %v3167_v28 }
  0xb7   :  { %1073 = vmatpush1.bf16.msra.mxu0 %v3146_v13  ;;  %1354 = vmatpush1.bf16.msra.mxu1 %v3146_v13  ;;  %v3174_v13 = vld [vmem:[%s3990_s4 + $0x2f0] ss:$8 sps:$4 sm:$0xff]  }
  0xb8   :  { %1074 = vmatprep.subr.bf16.mxu0 %v3153_v26  ;;  %1355 = vmatprep.subr.bf16.mxu1 %v3153_v26  ;;  %4137 = vst [vmem:[#allocation16_spill] sm:$0xff] %v3174_v13  ;;  %v3181_v26 = vld [vmem:[%s3990_s4 + $0x304] ss:$8 sps:$4 sm:$0xff]  }
  0xb9   :  { %4138 = vst [vmem:[#allocation17_spill] sm:$0xff] %v3181_v26 }
  0xbb   :  { %1075 = vmatpush1.bf16.msra.mxu0 %v3160_v27  ;;  %1356 = vmatpush1.bf16.msra.mxu1 %v3160_v27  ;;  %v3189_v27 = vrot.slane %v2927_v22, %v2601_v16  ;;  %v220_v22 = vcombine.high %v2966_v31, %v2966_v31  ;;  %v3223_v31 = vld [vmem:[%s3990_s4 + $0x324] ss:$8 sps:$4 sm:$0xff]  }
  0xbc   :  { %1076 = vmatprep.subr.bf16.mxu0 %v3167_v28  ;;  %1357 = vmatprep.subr.bf16.mxu1 %v3167_v28  ;;  %v3196_v28 = vld [vmem:[%s3990_s4 + $0x300] ss:$8 sps:$4 sm:$0xff]   ;;  %4142 = vst [vmem:[#allocation21_spill] sm:$0xff] %v3223_v31 }
  0xbd   :  { %4139 = vst [vmem:[#allocation18_spill] sm:$0xff] %v3196_v28 }
  0xbf   :  { %1077 = vmatpush1.bf16.msra.mxu0 %v3174_v13  ;;  %1358 = vmatpush1.bf16.msra.mxu1 %v3174_v13  ;;  %v1221_v13 = vcombine.high %v2969_v32, %v2969_v32  ;;  %v3230_v32 = vld [vmem:[%s3990_s4 + $0x320] ss:$8 sps:$4 sm:$0xff]  }
  0xc0   :  { %1087 = vmatprep.subr.bf16.mxu0 %v3181_v26  ;;  %1368 = vmatprep.subr.bf16.mxu1 %v3181_v26  ;;  %v3216_v26 = vld [vmem:[%s3990_s4 + $0x310] ss:$8 sps:$4 sm:$0xff]   ;;  %4143 = vst [vmem:[#allocation22_spill] sm:$0xff] %v3230_v32 }
  0xc1   :  { %4141 = vst [vmem:[#allocation20_spill] sm:$0xff] %v3216_v26 }
  0xc2   :  { %1079 = vmatmul.mubr.bf16.vlgmr.msra.gmra.mrb[0].mxu0 %v3185_v25  ;;  %1360 = vmatmul.mubr.bf16.vlgmr.msra.gmra.mrb[0].mxu1 %v3189_v27 }
  0xc3   :  { %1088 = vmatpush1.bf16.msra.mxu0 %v3196_v28  ;;  %1369 = vmatpush1.bf16.msra.mxu1 %v3196_v28  ;;  %v2204_v28 = vld.sshfl [vmem:[%s3992_s1 + $0x8] sm:$0x1 pattern:$0x75316420] }
  0xc4   :  { %1089 = vmatprep.subr.bf16.mxu0 %v3203_v21  ;;  %1370 = vmatprep.subr.bf16.mxu1 %v3203_v21  ;;  %v3237_v21 = vld [vmem:[%s3990_s4 + $0x334] ss:$8 sps:$4 sm:$0xff]   ;;  %v1235_v52 = vrot.slane %v2204_v28, %v2601_v16  ;;  %v2496_v28 = vld [vmem:[%s3990_s4] ss:$8 sps:$4 sm:$0xff]  }
  0xc5   :  { %1119 = vmatprep.mubr.bf16.mxu0 %v220_v22  ;;  %1400 = vmatprep.mubr.bf16.mxu1 %v1221_v13  ;;  %4144 = vst [vmem:[#allocation23_spill] sm:$0xff] %v3237_v21  ;;  %v3244_v13 = vld [vmem:[%s3990_s4 + $0x330] ss:$8 sps:$4 sm:$0xff]   ;;  %v3251_v22 = vld [vmem:[%s3990_s4 + $0x344] ss:$8 sps:$4 sm:$0xff]  }
  0xc6   :  { %4145 = vst [vmem:[#allocation24_spill] sm:$0xff] %v3244_v13  ;;  %4146 = vst [vmem:[#allocation25_spill] sm:$0xff] %v3251_v22 }
  0xc7   :  { %1090 = vmatpush1.bf16.msra.mxu0 %v3216_v26  ;;  %1371 = vmatpush1.bf16.msra.mxu1 %v3216_v26  ;;  %v3430_v26 = vld [vmem:[%s3990_s4 + $0x400] ss:$8 sps:$4 sm:$0xff]  }
  0xc8   :  { %1091 = vmatprep.subr.bf16.mxu0 %v3223_v31  ;;  %1372 = vmatprep.subr.bf16.mxu1 %v3223_v31  ;;  %v218_v31 = vcombine.high %v3185_v25, %v3185_v25  ;;  %4171 = vst [vmem:[#allocation50_spill] sm:$0xff] %v3430_v26  ;;  %v3437_v25 = vld [vmem:[%s3990_s4 + $0x414] ss:$8 sps:$4 sm:$0xff]  }
  0xc9   :  { %4172 = vst [vmem:[#allocation51_spill] sm:$0xff] %v3437_v25 }
  0xcb   :  { %1092 = vmatpush1.bf16.msra.mxu0 %v3230_v32  ;;  %1373 = vmatpush1.bf16.msra.mxu1 %v3230_v32  ;;  %v3258_v32 = vld [vmem:[%s3990_s4 + $0x340] ss:$8 sps:$4 sm:$0xff]  }
  0xcc   :  { %1093 = vmatprep.subr.bf16.mxu0 %v3237_v21  ;;  %1374 = vmatprep.subr.bf16.mxu1 %v3237_v21  ;;  %4147 = vst [vmem:[#allocation26_spill] sm:$0xff] %v3258_v32  ;;  %v3265_v21 = vld [vmem:[%s3990_s4 + $0x354] ss:$8 sps:$4 sm:$0xff]  }
  0xcd   :  { %4148 = vst [vmem:[#allocation27_spill] sm:$0xff] %v3265_v21 }
  0xcf   :  { %1094 = vmatpush1.bf16.msra.mxu0 %v3244_v13  ;;  %1375 = vmatpush1.bf16.msra.mxu1 %v3244_v13  ;;  %v3272_v13 = vld [vmem:[%s3990_s4 + $0x350] ss:$8 sps:$4 sm:$0xff]  }
  0xd0   :  { %1095 = vmatprep.subr.bf16.mxu0 %v3251_v22  ;;  %1376 = vmatprep.subr.bf16.mxu1 %v3251_v22  ;;  %4149 = vst [vmem:[#allocation28_spill] sm:$0xff] %v3272_v13  ;;  %v3279_v22 = vld [vmem:[%s3990_s4 + $0x364] ss:$8 sps:$4 sm:$0xff]  }
  0xd1   :  { %4150 = vst [vmem:[#allocation29_spill] sm:$0xff] %v3279_v22 }
  0xd3   :  { %1096 = vmatpush1.bf16.msra.mxu0 %v3258_v32  ;;  %1377 = vmatpush1.bf16.msra.mxu1 %v3258_v32  ;;  %v3286_v32 = vld [vmem:[%s3990_s4 + $0x360] ss:$8 sps:$4 sm:$0xff]  }
  0xd4   :  { %1097 = vmatprep.subr.bf16.mxu0 %v3265_v21  ;;  %1378 = vmatprep.subr.bf16.mxu1 %v3265_v21  ;;  %4151 = vst [vmem:[#allocation30_spill] sm:$0xff] %v3286_v32  ;;  %v3293_v21 = vld [vmem:[%s3990_s4 + $0x374] ss:$8 sps:$4 sm:$0xff]  }
  0xd5   :  { %4152 = vst [vmem:[#allocation31_spill] sm:$0xff] %v3293_v21 }
  0xd7   :  { %1098 = vmatpush1.bf16.msra.mxu0 %v3272_v13  ;;  %1379 = vmatpush1.bf16.msra.mxu1 %v3272_v13  ;;  %v3300_v13 = vld [vmem:[%s3990_s4 + $0x370] ss:$8 sps:$4 sm:$0xff]  }
  0xd8   :  { %1099 = vmatprep.subr.bf16.mxu0 %v3279_v22  ;;  %1380 = vmatprep.subr.bf16.mxu1 %v3279_v22  ;;  %4153 = vst [vmem:[#allocation32_spill] sm:$0xff] %v3300_v13  ;;  %v3307_v22 = vld [vmem:[%s3990_s4 + $0x384] ss:$8 sps:$4 sm:$0xff]  }
  0xd9   :  { %4154 = vst [vmem:[#allocation33_spill] sm:$0xff] %v3307_v22 }
  0xdb   :  { %1100 = vmatpush1.bf16.msra.mxu0 %v3286_v32  ;;  %1381 = vmatpush1.bf16.msra.mxu1 %v3286_v32  ;;  %v3314_v32 = vld [vmem:[%s3990_s4 + $0x380] ss:$8 sps:$4 sm:$0xff]  }
  0xdc   :  { %1101 = vmatprep.subr.bf16.mxu0 %v3293_v21  ;;  %1382 = vmatprep.subr.bf16.mxu1 %v3293_v21  ;;  %4155 = vst [vmem:[#allocation34_spill] sm:$0xff] %v3314_v32  ;;  %v3321_v21 = vld [vmem:[%s3990_s4 + $0x394] ss:$8 sps:$4 sm:$0xff]  }
  0xdd   :  { %4156 = vst [vmem:[#allocation35_spill] sm:$0xff] %v3321_v21 }
  0xdf   :  { %1102 = vmatpush1.bf16.msra.mxu0 %v3300_v13  ;;  %1383 = vmatpush1.bf16.msra.mxu1 %v3300_v13  ;;  %v3328_v13 = vld [vmem:[%s3990_s4 + $0x390] ss:$8 sps:$4 sm:$0xff]  }
  0xe0   :  { %1103 = vmatprep.subr.bf16.mxu0 %v3307_v22  ;;  %1384 = vmatprep.subr.bf16.mxu1 %v3307_v22  ;;  %4157 = vst [vmem:[#allocation36_spill] sm:$0xff] %v3328_v13  ;;  %v3335_v22 = vld [vmem:[%s3990_s4 + $0x3a4] ss:$8 sps:$4 sm:$0xff]  }
  0xe1   :  { %4158 = vst [vmem:[#allocation37_spill] sm:$0xff] %v3335_v22 }
  0xe3   :  { %1104 = vmatpush1.bf16.msra.mxu0 %v3314_v32  ;;  %1385 = vmatpush1.bf16.msra.mxu1 %v3314_v32  ;;  %v3342_v32 = vld [vmem:[%s3990_s4 + $0x3a0] ss:$8 sps:$4 sm:$0xff]  }
  0xe4   :  { %1105 = vmatprep.subr.bf16.mxu0 %v3321_v21  ;;  %1386 = vmatprep.subr.bf16.mxu1 %v3321_v21  ;;  %4159 = vst [vmem:[#allocation38_spill] sm:$0xff] %v3342_v32  ;;  %v3349_v21 = vld [vmem:[%s3990_s4 + $0x3b4] ss:$8 sps:$4 sm:$0xff]  }
  0xe5   :  { %4160 = vst [vmem:[#allocation39_spill] sm:$0xff] %v3349_v21 }
  0xe7   :  { %1106 = vmatpush1.bf16.msra.mxu0 %v3328_v13  ;;  %1387 = vmatpush1.bf16.msra.mxu1 %v3328_v13  ;;  %v3356_v13 = vld [vmem:[%s3990_s4 + $0x3b0] ss:$8 sps:$4 sm:$0xff]  }
  0xe8   :  { %1107 = vmatprep.subr.bf16.mxu0 %v3335_v22  ;;  %1388 = vmatprep.subr.bf16.mxu1 %v3335_v22  ;;  %4161 = vst [vmem:[#allocation40_spill] sm:$0xff] %v3356_v13  ;;  %v3363_v22 = vld [vmem:[%s3990_s4 + $0x3c4] ss:$8 sps:$4 sm:$0xff]  }
  0xe9   :  { %4162 = vst [vmem:[#allocation41_spill] sm:$0xff] %v3363_v22 }
  0xeb   :  { %1108 = vmatpush1.bf16.msra.mxu0 %v3342_v32  ;;  %1389 = vmatpush1.bf16.msra.mxu1 %v3342_v32  ;;  %v3370_v32 = vld [vmem:[%s3990_s4 + $0x3c0] ss:$8 sps:$4 sm:$0xff]  }
  0xec   :  { %1109 = vmatprep.subr.bf16.mxu0 %v3349_v21  ;;  %1390 = vmatprep.subr.bf16.mxu1 %v3349_v21  ;;  %4163 = vst [vmem:[#allocation42_spill] sm:$0xff] %v3370_v32  ;;  %v3377_v21 = vld [vmem:[%s3990_s4 + $0x3d4] ss:$8 sps:$4 sm:$0xff]  }
  0xed   :  { %4164 = vst [vmem:[#allocation43_spill] sm:$0xff] %v3377_v21 }
  0xef   :  { %1110 = vmatpush1.bf16.msra.mxu0 %v3356_v13  ;;  %1391 = vmatpush1.bf16.msra.mxu1 %v3356_v13  ;;  %v3384_v13 = vld [vmem:[%s3990_s4 + $0x3d0] ss:$8 sps:$4 sm:$0xff]  }
  0xf0   :  { %1111 = vmatprep.subr.bf16.mxu0 %v3363_v22  ;;  %1392 = vmatprep.subr.bf16.mxu1 %v3363_v22  ;;  %4165 = vst [vmem:[#allocation44_spill] sm:$0xff] %v3384_v13  ;;  %v3391_v22 = vld [vmem:[%s3990_s4 + $0x3e4] ss:$8 sps:$4 sm:$0xff]  }
  0xf1   :  { %4166 = vst [vmem:[#allocation45_spill] sm:$0xff] %v3391_v22 }
  0xf3   :  { %1112 = vmatpush1.bf16.msra.mxu0 %v3370_v32  ;;  %1393 = vmatpush1.bf16.msra.mxu1 %v3370_v32  ;;  %v3398_v32 = vld [vmem:[%s3990_s4 + $0x3e0] ss:$8 sps:$4 sm:$0xff]  }
  0xf4   :  { %1113 = vmatprep.subr.bf16.mxu0 %v3377_v21  ;;  %1394 = vmatprep.subr.bf16.mxu1 %v3377_v21  ;;  %4167 = vst [vmem:[#allocation46_spill] sm:$0xff] %v3398_v32  ;;  %v3405_v21 = vld [vmem:[%s3990_s4 + $0x3f4] ss:$8 sps:$4 sm:$0xff]  }
  0xf5   :  { %4168 = vst [vmem:[#allocation47_spill] sm:$0xff] %v3405_v21 }
  0xf7   :  { %1114 = vmatpush1.bf16.msra.mxu0 %v3384_v13  ;;  %1395 = vmatpush1.bf16.msra.mxu1 %v3384_v13  ;;  %v3412_v13 = vld [vmem:[%s3990_s4 + $0x3f0] ss:$8 sps:$4 sm:$0xff]  }
  0xf8   :  { %1115 = vmatprep.subr.bf16.mxu0 %v3391_v22  ;;  %1396 = vmatprep.subr.bf16.mxu1 %v3391_v22  ;;  %4169 = vst [vmem:[#allocation48_spill] sm:$0xff] %v3412_v13  ;;  %v3419_v22 = vld [vmem:[%s3990_s4 + $0x404] ss:$8 sps:$4 sm:$0xff]  }
  0xf9   :  { %4170 = vst [vmem:[#allocation49_spill] sm:$0xff] %v3419_v22 }
  0xfb   :  { %1116 = vmatpush1.bf16.msra.mxu0 %v3398_v32  ;;  %1397 = vmatpush1.bf16.msra.mxu1 %v3398_v32  ;;  %v1219_v32 = vcombine.high %v3189_v27, %v3189_v27  ;;  %v3444_v27 = vld [vmem:[%s3990_s4 + $0x410] ss:$8 sps:$4 sm:$0xff]  }
  0xfc   :  { %1117 = vmatprep.subr.bf16.mxu0 %v3405_v21  ;;  %1398 = vmatprep.subr.bf16.mxu1 %v3405_v21  ;;  %4173 = vst [vmem:[#allocation52_spill] sm:$0xff] %v3444_v27  ;;  %v2059_v21 = vld.sshfl [vmem:[%s3991_s0 + $0x8] sm:$0x1 pattern:$0x75316420] }
  0xff   :  { %1118 = vmatpush1.bf16.msra.mxu0 %v3412_v13  ;;  %1399 = vmatpush1.bf16.msra.mxu1 %v3412_v13 }
 0x100   :  { %1128 = vmatprep.subr.bf16.mxu0 %v3419_v22  ;;  %1409 = vmatprep.subr.bf16.mxu1 %v3419_v22  ;;  %v3451_v22 = vld [vmem:[%s3990_s4 + $0x424] ss:$8 sps:$4 sm:$0xff]  }
 0x101   :  { %4174 = vst [vmem:[#allocation53_spill] sm:$0xff] %v3451_v22 }
 0x102   :  { %1120 = vmatmul.mubr.bf16.vlgmr.msra.gmra.mrb[0].mxu0 %v218_v31  ;;  %1401 = vmatmul.mubr.bf16.vlgmr.msra.gmra.mrb[0].mxu1 %v1219_v32  ;;  %v4079_v31 = vmov 0   ;;  %v3460_v32 = vld [vmem:[%s3990_s4 + $0x420] ss:$8 sps:$4 sm:$0xff]  }
 0x103   :  { %1129 = vmatpush1.bf16.msra.mxu0 %v3430_v26  ;;  %1410 = vmatpush1.bf16.msra.mxu1 %v3430_v26  ;;  %4175 = vst [vmem:[#allocation54_spill] sm:$0xff] %v3460_v32  ;;  %v3533_v26 = vld [vmem:[%s3990_s4 + $0x474] ss:$8 sps:$4 sm:$0xff]  }
 0x104   :  { %1130 = vmatprep.subr.bf16.mxu0 %v3437_v25  ;;  %1411 = vmatprep.subr.bf16.mxu1 %v3437_v25  ;;  %v3467_v25 = vld [vmem:[%s3990_s4 + $0x434] ss:$8 sps:$4 sm:$0xff]   ;;  %4184 = vst [vmem:[#allocation63_spill] sm:$0xff] %v3533_v26 }
 0x105   :  { %1160 = vmatprep.mubr.bf16.mxu0 %v4079_v31  ;;  %1441 = vmatprep.mubr.bf16.mxu1 %v4079_v31  ;;  %4176 = vst [vmem:[#allocation55_spill] sm:$0xff] %v3467_v25  ;;  %v3474_v31 = vld [vmem:[%s3990_s4 + $0x430] ss:$8 sps:$4 sm:$0xff]  }
 0x106   :  { %4177 = vst [vmem:[#allocation56_spill] sm:$0xff] %v3474_v31 }
 0x107   :  { %1131 = vmatpush1.bf16.msra.mxu0 %v3444_v27  ;;  %1412 = vmatpush1.bf16.msra.mxu1 %v3444_v27  ;;  %v3514_v27 = vld [vmem:[%s3993_s2] sm:$0xff] }
 0x108   :  { %1132 = vmatprep.subr.bf16.mxu0 %v3451_v22  ;;  %1413 = vmatprep.subr.bf16.mxu1 %v3451_v22  ;;  %v3481_v22 = vld [vmem:[%s3990_s4 + $0x444] ss:$8 sps:$4 sm:$0xff]   ;;  %v3537_v13 = vrot.slane %v3514_v27, %v2601_v16 }
 0x109   :  { %4178 = vst [vmem:[#allocation57_spill] sm:$0xff] %v3481_v22 }
 0x10a   :  { %v1469_v18 = vcombine.high %v3537_v13, %v3537_v13 }
 0x10b   :  { %1133 = vmatpush1.bf16.msra.mxu0 %v3460_v32  ;;  %1414 = vmatpush1.bf16.msra.mxu1 %v3460_v32  ;;  %v3488_v32 = vld [vmem:[%s3990_s4 + $0x440] ss:$8 sps:$4 sm:$0xff]  }
 0x10c   :  { %1134 = vmatprep.subr.bf16.mxu0 %v3467_v25  ;;  %1415 = vmatprep.subr.bf16.mxu1 %v3467_v25  ;;  %4179 = vst [vmem:[#allocation58_spill] sm:$0xff] %v3488_v32  ;;  %v3495_v25 = vld [vmem:[%s3990_s4 + $0x454] ss:$8 sps:$4 sm:$0xff]  }
 0x10d   :  { %4180 = vst [vmem:[#allocation59_spill] sm:$0xff] %v3495_v25 }
 0x10f   :  { %1135 = vmatpush1.bf16.msra.mxu0 %v3474_v31  ;;  %1416 = vmatpush1.bf16.msra.mxu1 %v3474_v31  ;;  %v3502_v31 = vld [vmem:[%s3990_s4 + $0x450] ss:$8 sps:$4 sm:$0xff]  }
 0x110   :  { %1136 = vmatprep.subr.bf16.mxu0 %v3481_v22  ;;  %1417 = vmatprep.subr.bf16.mxu1 %v3481_v22  ;;  %4181 = vst [vmem:[#allocation60_spill] sm:$0xff] %v3502_v31  ;;  %v3509_v22 = vld [vmem:[%s3990_s4 + $0x464] ss:$8 sps:$4 sm:$0xff]  }
 0x111   :  { %4182 = vst [vmem:[#allocation61_spill] sm:$0xff] %v3509_v22 }
 0x113   :  { %1137 = vmatpush1.bf16.msra.mxu0 %v3488_v32  ;;  %1418 = vmatpush1.bf16.msra.mxu1 %v3488_v32  ;;  %v3519_v32 = vld [vmem:[%s3994_s3] sm:$0xff] }
 0x114   :  { %1138 = vmatprep.subr.bf16.mxu0 %v3495_v25  ;;  %1419 = vmatprep.subr.bf16.mxu1 %v3495_v25  ;;  %v3526_v25 = vld [vmem:[%s3990_s4 + $0x460] ss:$8 sps:$4 sm:$0xff]  }
 0x115   :  { %4183 = vst [vmem:[#allocation62_spill] sm:$0xff] %v3526_v25 }
 0x117   :  { %1139 = vmatpush1.bf16.msra.mxu0 %v3502_v31  ;;  %1420 = vmatpush1.bf16.msra.mxu1 %v3502_v31  ;;  %v3541_v31 = vrot.slane %v3519_v32, %v2601_v16 }
 0x118   :  { %1140 = vmatprep.subr.bf16.mxu0 %v3509_v22  ;;  %1421 = vmatprep.subr.bf16.mxu1 %v3509_v22  ;;  %v3551_v22 = vld [vmem:[%s3990_s4 + $0x470] ss:$8 sps:$4 sm:$0xff]  }
 0x119   :  { %v1750_v17 = vcombine.high %v3541_v31, %v3541_v31 }
 0x11b   :  { %1141 = vmatpush1.bf16.msra.mxu0 %v3526_v25  ;;  %1422 = vmatpush1.bf16.msra.mxu1 %v3526_v25  ;;  %v234_v25 = vrot.slane %v2059_v21, %v2601_v16  ;;  %v3573_v48 = vrot.slane %v1750_v17, %v2601_v16  ;;  %v2497_v21 = vld [vmem:[%s3990_s4 + $0x14] ss:$8 sps:$4 sm:$0xff]   ;;  %v2500_v17 = vld [vmem:[%s3990_s4 + $0x20] ss:$8 sps:$4 sm:$0xff]  }
 0x11c   :  { %1142 = vmatprep.subr.bf16.mxu0 %v3533_v26  ;;  %1423 = vmatprep.subr.bf16.mxu1 %v3533_v26  ;;  %v3570_v26 = vrot.slane %v1469_v18, %v2601_v16  ;;  %v2501_v18 = vld [vmem:[%s3990_s4 + $0x34] ss:$8 sps:$4 sm:$0xff]  }
 0x11f   :  { %1143 = vmatpush1.bf16.msra.mxu0 %v3551_v22  ;;  %1424 = vmatpush1.bf16.msra.mxu1 %v3551_v22 }
 0x120   :  { %1526 = vmatprep.subr.bf16.mxu0 %v2495_v51  ;;  %1807 = vmatprep.subr.bf16.mxu1 %v2495_v51  ;;  %v2498_v51 = vld [vmem:[%s3990_s4 + $0x10] ss:$8 sps:$4 sm:$0xff]  }
 0x122   :  { %1161 = vmatmul.mubr.bf16.vlgmr.msra.gmra.mrb[0].mxu0 %v234_v25  ;;  %1442 = vmatmul.mubr.bf16.vlgmr.msra.gmra.mrb[0].mxu1 %v1235_v52  ;;  %v2499_v52 = vld [vmem:[%s3990_s4 + $0x24] ss:$8 sps:$4 sm:$0xff]   ;;  %v2502_v25 = vld [vmem:[%s3990_s4 + $0x30] ss:$8 sps:$4 sm:$0xff]  }
 0x123   :  { %1527 = vmatpush1.bf16.msra.mxu0 %v2496_v28  ;;  %1808 = vmatpush1.bf16.msra.mxu1 %v2496_v28  ;;  %v2503_v28 = vld [vmem:[%s3990_s4 + $0x44] ss:$8 sps:$4 sm:$0xff]  }
 0x124   :  { %1528 = vmatprep.subr.bf16.mxu0 %v2497_v21  ;;  %1809 = vmatprep.subr.bf16.mxu1 %v2497_v21  ;;  %v2504_v21 = vld [vmem:[%s3990_s4 + $0x40] ss:$8 sps:$4 sm:$0xff]  }
 0x125   :  { %1558 = vmatprep.mubr.bf16.mxu0 %v3570_v26  ;;  %1839 = vmatprep.mubr.bf16.mxu1 %v3573_v48 }
 0x127   :  { %1529 = vmatpush1.bf16.msra.mxu0 %v2498_v51  ;;  %1810 = vmatpush1.bf16.msra.mxu1 %v2498_v51  ;;  %v2505_v51 = vld [vmem:[%s3990_s4 + $0x54] ss:$8 sps:$4 sm:$0xff]  }
 0x128   :  { %1530 = vmatprep.subr.bf16.mxu0 %v2499_v52  ;;  %1811 = vmatprep.subr.bf16.mxu1 %v2499_v52  ;;  %v2506_v52 = vld [vmem:[%s3990_s4 + $0x50] ss:$8 sps:$4 sm:$0xff]  }
 0x12b   :  { %1531 = vmatpush1.bf16.msra.mxu0 %v2500_v17  ;;  %1812 = vmatpush1.bf16.msra.mxu1 %v2500_v17  ;;  %v2507_v17 = vld [vmem:[%s3990_s4 + $0x64] ss:$8 sps:$4 sm:$0xff]  }
 0x12c   :  { %1532 = vmatprep.subr.bf16.mxu0 %v2501_v18  ;;  %1813 = vmatprep.subr.bf16.mxu1 %v2501_v18  ;;  %v2508_v18 = vld [vmem:[%s3990_s4 + $0x60] ss:$8 sps:$4 sm:$0xff]  }
 0x12f   :  { %1533 = vmatpush1.bf16.msra.mxu0 %v2502_v25  ;;  %1814 = vmatpush1.bf16.msra.mxu1 %v2502_v25  ;;  %v2509_v25 = vld [vmem:[%s3990_s4 + $0x74] ss:$8 sps:$4 sm:$0xff]  }
 0x130   :  { %1534 = vmatprep.subr.bf16.mxu0 %v2503_v28  ;;  %1815 = vmatprep.subr.bf16.mxu1 %v2503_v28  ;;  %v2510_v28 = vld [vmem:[%s3990_s4 + $0x70] ss:$8 sps:$4 sm:$0xff]  }
 0x133   :  { %1535 = vmatpush1.bf16.msra.mxu0 %v2504_v21  ;;  %1816 = vmatpush1.bf16.msra.mxu1 %v2504_v21  ;;  %v2511_v21 = vld [vmem:[%s3990_s4 + $0x84] ss:$8 sps:$4 sm:$0xff]  }
 0x134   :  { %1536 = vmatprep.subr.bf16.mxu0 %v2505_v51  ;;  %1817 = vmatprep.subr.bf16.mxu1 %v2505_v51  ;;  %v2512_v51 = vld [vmem:[%s3990_s4 + $0x80] ss:$8 sps:$4 sm:$0xff]  }
 0x137   :  { %1537 = vmatpush1.bf16.msra.mxu0 %v2506_v52  ;;  %1818 = vmatpush1.bf16.msra.mxu1 %v2506_v52  ;;  %v2513_v52 = vld [vmem:[%s3990_s4 + $0x94] ss:$8 sps:$4 sm:$0xff]  }
 0x138   :  { %1538 = vmatprep.subr.bf16.mxu0 %v2507_v17  ;;  %1819 = vmatprep.subr.bf16.mxu1 %v2507_v17  ;;  %v2514_v17 = vld [vmem:[%s3990_s4 + $0x90] ss:$8 sps:$4 sm:$0xff]  }
 0x13b   :  { %1539 = vmatpush1.bf16.msra.mxu0 %v2508_v18  ;;  %1820 = vmatpush1.bf16.msra.mxu1 %v2508_v18  ;;  %v2515_v18 = vld [vmem:[%s3990_s4 + $0xa4] ss:$8 sps:$4 sm:$0xff]  }
 0x13c   :  { %1540 = vmatprep.subr.bf16.mxu0 %v2509_v25  ;;  %1821 = vmatprep.subr.bf16.mxu1 %v2509_v25  ;;  %v2516_v25 = vld [vmem:[%s3990_s4 + $0xa0] ss:$8 sps:$4 sm:$0xff]  }
 0x13f   :  { %1541 = vmatpush1.bf16.msra.mxu0 %v2510_v28  ;;  %1822 = vmatpush1.bf16.msra.mxu1 %v2510_v28  ;;  %v2517_v28 = vld [vmem:[%s3990_s4 + $0xb4] ss:$8 sps:$4 sm:$0xff]  }
 0x140   :  { %1542 = vmatprep.subr.bf16.mxu0 %v2511_v21  ;;  %1823 = vmatprep.subr.bf16.mxu1 %v2511_v21  ;;  %v2518_v21 = vld [vmem:[%s3990_s4 + $0xb0] ss:$8 sps:$4 sm:$0xff]  }
 0x143   :  { %1543 = vmatpush1.bf16.msra.mxu0 %v2512_v51  ;;  %1824 = vmatpush1.bf16.msra.mxu1 %v2512_v51  ;;  %v2519_v51 = vld [vmem:[%s3990_s4 + $0xc4] ss:$8 sps:$4 sm:$0xff]  }
 0x144   :  { %1544 = vmatprep.subr.bf16.mxu0 %v2513_v52  ;;  %1825 = vmatprep.subr.bf16.mxu1 %v2513_v52  ;;  %v2520_v52 = vld [vmem:[%s3990_s4 + $0xc0] ss:$8 sps:$4 sm:$0xff]  }
 0x147   :  { %1545 = vmatpush1.bf16.msra.mxu0 %v2514_v17  ;;  %1826 = vmatpush1.bf16.msra.mxu1 %v2514_v17  ;;  %v2521_v17 = vld [vmem:[%s3990_s4 + $0xd4] ss:$8 sps:$4 sm:$0xff]  }
 0x148   :  { %1546 = vmatprep.subr.bf16.mxu0 %v2515_v18  ;;  %1827 = vmatprep.subr.bf16.mxu1 %v2515_v18  ;;  %v2522_v18 = vld [vmem:[%s3990_s4 + $0xd0] ss:$8 sps:$4 sm:$0xff]  }
 0x14b   :  { %1547 = vmatpush1.bf16.msra.mxu0 %v2516_v25  ;;  %1828 = vmatpush1.bf16.msra.mxu1 %v2516_v25  ;;  %v2523_v25 = vld [vmem:[%s3990_s4 + $0xe4] ss:$8 sps:$4 sm:$0xff]  }
 0x14c   :  { %1548 = vmatprep.subr.bf16.mxu0 %v2517_v28  ;;  %1829 = vmatprep.subr.bf16.mxu1 %v2517_v28  ;;  %v2524_v28 = vld [vmem:[%s3990_s4 + $0xe0] ss:$8 sps:$4 sm:$0xff]  }
 0x14f   :  { %1549 = vmatpush1.bf16.msra.mxu0 %v2518_v21  ;;  %1830 = vmatpush1.bf16.msra.mxu1 %v2518_v21  ;;  %v2525_v21 = vld [vmem:[%s3990_s4 + $0xf4] ss:$8 sps:$4 sm:$0xff]  }
 0x150   :  { %1550 = vmatprep.subr.bf16.mxu0 %v2519_v51  ;;  %1831 = vmatprep.subr.bf16.mxu1 %v2519_v51  ;;  %v3669_v51 = vrot.slane %v3537_v13, %v2601_v16  ;;  %v1501_v13 = vcombine.high %v3570_v26, %v3570_v26  ;;  %v4211_v26 = vld [vmem:[#allocation29_spill] sm:$0xff] }
 0x153   :  { %1551 = vmatpush1.bf16.msra.mxu0 %v2520_v52  ;;  %1832 = vmatpush1.bf16.msra.mxu1 %v2520_v52  ;;  %v3673_v52 = vrot.slane %v3541_v31, %v2601_v16  ;;  %v4213_v31 = vld [vmem:[#allocation31_spill] sm:$0xff] }
 0x154   :  { %1552 = vmatprep.subr.bf16.mxu0 %v2521_v17  ;;  %1833 = vmatprep.subr.bf16.mxu1 %v2521_v17  ;;  %v2526_v17 = vld [vmem:[%s3990_s4 + $0xf0] ss:$8 sps:$4 sm:$0xff]  }
 0x157   :  { %1553 = vmatpush1.bf16.msra.mxu0 %v2522_v18  ;;  %1834 = vmatpush1.bf16.msra.mxu1 %v2522_v18  ;;  %v2527_v18 = vld [vmem:[%s3990_s4 + $0x104] ss:$8 sps:$4 sm:$0xff]  }
 0x158   :  { %1554 = vmatprep.subr.bf16.mxu0 %v2523_v25  ;;  %1835 = vmatprep.subr.bf16.mxu1 %v2523_v25  ;;  %v1782_v25 = vcombine.high %v3573_v48, %v3573_v48 }
 0x15b   :  { %1555 = vmatpush1.bf16.msra.mxu0 %v2524_v28  ;;  %1836 = vmatpush1.bf16.msra.mxu1 %v2524_v28  ;;  %v4215_v28 = vld [vmem:[#allocation33_spill] sm:$0xff] }
 0x15c   :  { %1556 = vmatprep.subr.bf16.mxu0 %v2525_v21  ;;  %1837 = vmatprep.subr.bf16.mxu1 %v2525_v21  ;;  %v4216_v21 = vld [vmem:[#allocation34_spill] sm:$0xff] }
 0x15f   :  { %1557 = vmatpush1.bf16.msra.mxu0 %v2526_v17  ;;  %1838 = vmatpush1.bf16.msra.mxu1 %v2526_v17  ;;  %v4219_v17 = vld [vmem:[#allocation37_spill] sm:$0xff] }
 0x160   :  { %1567 = vmatprep.subr.bf16.mxu0 %v2527_v18  ;;  %1848 = vmatprep.subr.bf16.mxu1 %v2527_v18  ;;  %v4220_v18 = vld [vmem:[#allocation38_spill] sm:$0xff] }
 0x162   :  { %1559 = vmatmul.mubr.bf16.vlgmr.msra.gmra.mrb[4].mxu0 %v3669_v51  ;;  %1840 = vmatmul.mubr.bf16.vlgmr.msra.gmra.mrb[4].mxu1 %v3673_v52 }
 0x163   :  { %1568 = vmatpush1.bf16.msra.mxu0 %v2710_v49  ;;  %1849 = vmatpush1.bf16.msra.mxu1 %v2710_v49  ;;  %v1454_v49 = vcombine.high %v3514_v27, %v3514_v27  ;;  %v4212_v27 = vld [vmem:[#allocation30_spill] sm:$0xff] }
 0x164   :  { %1569 = vmatprep.subr.bf16.mxu0 %v2715_v50  ;;  %1850 = vmatprep.subr.bf16.mxu1 %v2715_v50  ;;  %v1735_v50 = vcombine.high %v3519_v32, %v3519_v32  ;;  %v4214_v32 = vld [vmem:[#allocation32_spill] sm:$0xff] }
 0x165   :  { %1599 = vmatprep.mubr.bf16.mxu0 %v1501_v13  ;;  %1880 = vmatprep.mubr.bf16.mxu1 %v1782_v25  ;;  %v4221_v13 = vld [vmem:[#allocation39_spill] sm:$0xff]  ;;  %v4222_v25 = vld [vmem:[#allocation40_spill] sm:$0xff] }
 0x167   :  { %1570 = vmatpush1.bf16.msra.mxu0 %v2728_v53  ;;  %1851 = vmatpush1.bf16.msra.mxu1 %v2728_v53  ;;  %v3748_v53 = vrot.slane %v1454_v49, %v2601_v16  ;;  %v4223_v49 = vld [vmem:[#allocation41_spill] sm:$0xff] }
 0x168   :  { %1571 = vmatprep.subr.bf16.mxu0 %v2735_v54  ;;  %1852 = vmatprep.subr.bf16.mxu1 %v2735_v54  ;;  %v3751_v54 = vrot.slane %v1735_v50, %v2601_v16  ;;  %v4224_v50 = vld [vmem:[#allocation42_spill] sm:$0xff] }
 0x16b   :  { %1572 = vmatpush1.bf16.msra.mxu0 %v2742_v55  ;;  %1853 = vmatpush1.bf16.msra.mxu1 %v2742_v55  ;;  %v1470_v55 = vcombine.high %v3748_v53, %v3748_v53 }
 0x16c   :  { %1573 = vmatprep.subr.bf16.mxu0 %v2749_v56  ;;  %1854 = vmatprep.subr.bf16.mxu1 %v2749_v56  ;;  %v1751_v56 = vcombine.high %v3751_v54, %v3751_v54 }
 0x16f   :  { %1574 = vmatpush1.bf16.msra.mxu0 %v2756_v57  ;;  %1855 = vmatpush1.bf16.msra.mxu1 %v2756_v57  ;;  %v1499_v57 = vcombine.high %v3669_v51, %v3669_v51  ;;  %v4217_v51 = vld [vmem:[#allocation35_spill] sm:$0xff] }
 0x170   :  { %1575 = vmatprep.subr.bf16.mxu0 %v2763_v58  ;;  %1856 = vmatprep.subr.bf16.mxu1 %v2763_v58  ;;  %v1780_v58 = vcombine.high %v3673_v52, %v3673_v52  ;;  %v4218_v52 = vld [vmem:[#allocation36_spill] sm:$0xff] }
 0x173   :  { %1576 = vmatpush1.bf16.msra.mxu0 %v2770_v59  ;;  %1857 = vmatpush1.bf16.msra.mxu1 %v2770_v59  ;;  %v3770_v59 = vrot.slane %v1470_v55, %v2601_v16  ;;  %v4227_v55 = vld [vmem:[#allocation45_spill] sm:$0xff] }
 0x174   :  { %1577 = vmatprep.subr.bf16.mxu0 %v2777_v60  ;;  %1858 = vmatprep.subr.bf16.mxu1 %v2777_v60  ;;  %v3773_v60 = vrot.slane %v1751_v56, %v2601_v16  ;;  %v4228_v56 = vld [vmem:[#allocation46_spill] sm:$0xff] }
 0x177   :  { %1578 = vmatpush1.bf16.msra.mxu0 %v2784_v61  ;;  %1859 = vmatpush1.bf16.msra.mxu1 %v2784_v61  ;;  %v4185_v61 = vld [vmem:[#allocation3_spill] sm:$0xff] }
 0x178   :  { %1579 = vmatprep.subr.bf16.mxu0 %v2791_v62  ;;  %1860 = vmatprep.subr.bf16.mxu1 %v2791_v62  ;;  %v4186_v62 = vld [vmem:[#allocation4_spill] sm:$0xff] }
 0x17b   :  { %1580 = vmatpush1.bf16.msra.mxu0 %v2798_v63  ;;  %1861 = vmatpush1.bf16.msra.mxu1 %v2798_v63  ;;  %v4187_v63 = vld [vmem:[#allocation5_spill] sm:$0xff] }
 0x17c   :  { %1581 = vmatprep.subr.bf16.mxu0 %v2805_v0  ;;  %1862 = vmatprep.subr.bf16.mxu1 %v2805_v0  ;;  %v4188_v0 = vld [vmem:[#allocation6_spill] sm:$0xff] }
 0x17f   :  { %1582 = vmatpush1.bf16.msra.mxu0 %v2812_v1  ;;  %1863 = vmatpush1.bf16.msra.mxu1 %v2812_v1  ;;  %v4189_v1 = vld [vmem:[#allocation7_spill] sm:$0xff] }
 0x180   :  { %1583 = vmatprep.subr.bf16.mxu0 %v2819_v2  ;;  %1864 = vmatprep.subr.bf16.mxu1 %v2819_v2  ;;  %v4190_v2 = vld [vmem:[#allocation8_spill] sm:$0xff] }
 0x183   :  { %1584 = vmatpush1.bf16.msra.mxu0 %v2826_v3  ;;  %1865 = vmatpush1.bf16.msra.mxu1 %v2826_v3  ;;  %v4191_v3 = vld [vmem:[#allocation9_spill] sm:$0xff] }
 0x184   :  { %1585 = vmatprep.subr.bf16.mxu0 %v2833_v4  ;;  %1866 = vmatprep.subr.bf16.mxu1 %v2833_v4  ;;  %v4192_v4 = vld [vmem:[#allocation10_spill] sm:$0xff] }
 0x187   :  { %1586 = vmatpush1.bf16.msra.mxu0 %v2840_v5  ;;  %1867 = vmatpush1.bf16.msra.mxu1 %v2840_v5  ;;  %v4193_v5 = vld [vmem:[#allocation11_spill] sm:$0xff] }
 0x188   :  { %1587 = vmatprep.subr.bf16.mxu0 %v2847_v6  ;;  %1868 = vmatprep.subr.bf16.mxu1 %v2847_v6  ;;  %v4194_v6 = vld [vmem:[#allocation12_spill] sm:$0xff] }
 0x18b   :  { %1588 = vmatpush1.bf16.msra.mxu0 %v2854_v7  ;;  %1869 = vmatpush1.bf16.msra.mxu1 %v2854_v7  ;;  %v4195_v7 = vld [vmem:[#allocation13_spill] sm:$0xff] }
 0x18c   :  { %1589 = vmatprep.subr.bf16.mxu0 %v2861_v8  ;;  %1870 = vmatprep.subr.bf16.mxu1 %v2861_v8  ;;  %v4196_v8 = vld [vmem:[#allocation14_spill] sm:$0xff] }
 0x18f   :  { %1590 = vmatpush1.bf16.msra.mxu0 %v2868_v9  ;;  %1871 = vmatpush1.bf16.msra.mxu1 %v2868_v9  ;;  %v4197_v9 = vld [vmem:[#allocation15_spill] sm:$0xff] }
 0x190   :  { %1591 = vmatprep.subr.bf16.mxu0 %v2875_v10  ;;  %1872 = vmatprep.subr.bf16.mxu1 %v2875_v10  ;;  %v3839_v10 = vrot.slane %v3748_v53, %v2601_v16  ;;  %v4225_v53 = vld [vmem:[#allocation43_spill] sm:$0xff] }
 0x193   :  { %1592 = vmatpush1.bf16.msra.mxu0 %v2882_v11  ;;  %1873 = vmatpush1.bf16.msra.mxu1 %v2882_v11  ;;  %v3843_v11 = vrot.slane %v3751_v54, %v2601_v16  ;;  %v4226_v54 = vld [vmem:[#allocation44_spill] sm:$0xff] }
 0x194   :  { %1593 = vmatprep.subr.bf16.mxu0 %v2889_v12  ;;  %1874 = vmatprep.subr.bf16.mxu1 %v2889_v12  ;;  %v4198_v12 = vld [vmem:[#allocation16_spill] sm:$0xff] }
 0x197   :  { %1594 = vmatpush1.bf16.msra.mxu0 %v2896_v14  ;;  %1875 = vmatpush1.bf16.msra.mxu1 %v2896_v14  ;;  %v4199_v14 = vld [vmem:[#allocation17_spill] sm:$0xff] }
 0x198   :  { %1595 = vmatprep.subr.bf16.mxu0 %v2903_v15  ;;  %1876 = vmatprep.subr.bf16.mxu1 %v2903_v15  ;;  %v1502_v15 = vcombine.high %v3770_v59, %v3770_v59 }
 0x19b   :  { %1596 = vmatpush1.bf16.msra.mxu0 %v2914_v20  ;;  %1877 = vmatpush1.bf16.msra.mxu1 %v2914_v20  ;;  %v1783_v20 = vcombine.high %v3773_v60, %v3773_v60 }
 0x19c   :  { %1597 = vmatprep.subr.bf16.mxu0 %v2921_v19  ;;  %1878 = vmatprep.subr.bf16.mxu1 %v2921_v19  ;;  %v4200_v19 = vld [vmem:[#allocation18_spill] sm:$0xff] }
 0x19f   :  { %1598 = vmatpush1.bf16.msra.mxu0 %v2934_v23  ;;  %1879 = vmatpush1.bf16.msra.mxu1 %v2934_v23  ;;  %v4201_v23 = vld [vmem:[#allocation19_spill] sm:$0xff] }
 0x1a0   :  { %1608 = vmatprep.subr.bf16.mxu0 %v2941_v24  ;;  %1889 = vmatprep.subr.bf16.mxu1 %v2941_v24  ;;  %v4202_v24 = vld [vmem:[#allocation20_spill] sm:$0xff] }
 0x1a2   :  { %1600 = vmatmul.mubr.bf16.vlgmr.msra.gmra.mrb[4].mxu0 %v1499_v57  ;;  %1881 = vmatmul.mubr.bf16.vlgmr.msra.gmra.mrb[4].mxu1 %v1780_v58  ;;  %v4229_v57 = vld [vmem:[#allocation47_spill] sm:$0xff]  ;;  %v1500_v58 = vcombine.high %v3839_v10, %v3839_v10 }
 0x1a3   :  { %1609 = vmatpush1.bf16.msra.mxu0 %v2956_v29  ;;  %1890 = vmatpush1.bf16.msra.mxu1 %v2956_v29  ;;  %v4203_v29 = vld [vmem:[#allocation21_spill] sm:$0xff] }
 0x1a4   :  { %1610 = vmatprep.subr.bf16.mxu0 %v2963_v30  ;;  %1891 = vmatprep.subr.bf16.mxu1 %v2963_v30  ;;  %v4204_v30 = vld [vmem:[#allocation22_spill] sm:$0xff] }
 0x1a5   :  { %1640 = vmatprep.mubr.bf16.mxu0 %v3770_v59  ;;  %1921 = vmatprep.mubr.bf16.mxu1 %v3773_v60  ;;  %v1781_v59 = vcombine.high %v3843_v11, %v3843_v11  ;;  %v4230_v60 = vld [vmem:[#allocation48_spill] sm:$0xff] }
 0x1a7   :  { %1611 = vmatpush1.bf16.msra.mxu0 %v2976_v33  ;;  %1892 = vmatpush1.bf16.msra.mxu1 %v2976_v33  ;;  %v4205_v33 = vld [vmem:[#allocation23_spill] sm:$0xff] }
 0x1a8   :  { %1612 = vmatprep.subr.bf16.mxu0 %v2983_v34  ;;  %1893 = vmatprep.subr.bf16.mxu1 %v2983_v34  ;;  %v4206_v34 = vld [vmem:[#allocation24_spill] sm:$0xff] }
 0x1ab   :  { %1613 = vmatpush1.bf16.msra.mxu0 %v2992_v35  ;;  %1894 = vmatpush1.bf16.msra.mxu1 %v2992_v35  ;;  %v4207_v35 = vld [vmem:[#allocation25_spill] sm:$0xff] }
 0x1ac   :  { %1614 = vmatprep.subr.bf16.mxu0 %v2999_v36  ;;  %1895 = vmatprep.subr.bf16.mxu1 %v2999_v36  ;;  %v4208_v36 = vld [vmem:[#allocation26_spill] sm:$0xff] }
 0x1af   :  { %1615 = vmatpush1.bf16.msra.mxu0 %v3006_v37  ;;  %1896 = vmatpush1.bf16.msra.mxu1 %v3006_v37  ;;  %v4209_v37 = vld [vmem:[#allocation27_spill] sm:$0xff] }
 0x1b0   :  { %1616 = vmatprep.subr.bf16.mxu0 %v3013_v38  ;;  %1897 = vmatprep.subr.bf16.mxu1 %v3013_v38 }
 0x1b3   :  { %1617 = vmatpush1.bf16.msra.mxu0 %v3020_v39  ;;  %1898 = vmatpush1.bf16.msra.mxu1 %v3020_v39 }
 0x1b4   :  { %1618 = vmatprep.subr.bf16.mxu0 %v3027_v40  ;;  %1899 = vmatprep.subr.bf16.mxu1 %v3027_v40 }
 0x1b7   :  { %1619 = vmatpush1.bf16.msra.mxu0 %v3034_v41  ;;  %1900 = vmatpush1.bf16.msra.mxu1 %v3034_v41 }
 0x1b8   :  { %1620 = vmatprep.subr.bf16.mxu0 %v3041_v42  ;;  %1901 = vmatprep.subr.bf16.mxu1 %v3041_v42 }
 0x1bb   :  { %1621 = vmatpush1.bf16.msra.mxu0 %v3048_v43  ;;  %1902 = vmatpush1.bf16.msra.mxu1 %v3048_v43 }
 0x1bc   :  { %1622 = vmatprep.subr.bf16.mxu0 %v3055_v44  ;;  %1903 = vmatprep.subr.bf16.mxu1 %v3055_v44 }
 0x1bf   :  { %1623 = vmatpush1.bf16.msra.mxu0 %v3062_v45  ;;  %1904 = vmatpush1.bf16.msra.mxu1 %v3062_v45 }
 0x1c0   :  { %1624 = vmatprep.subr.bf16.mxu0 %v3069_v46  ;;  %1905 = vmatprep.subr.bf16.mxu1 %v3069_v46  ;;  %v4210_v46 = vld [vmem:[#allocation28_spill] sm:$0xff] }
 0x1c3   :  { %1625 = vmatpush1.bf16.msra.mxu0 %v3076_v47  ;;  %1906 = vmatpush1.bf16.msra.mxu1 %v3076_v47 }
 0x1c4   :  { %1626 = vmatprep.subr.bf16.mxu0 %v4185_v61  ;;  %1907 = vmatprep.subr.bf16.mxu1 %v4185_v61  ;;  %v4231_v61 = vld [vmem:[#allocation49_spill] sm:$0xff] }
 0x1c7   :  { %1627 = vmatpush1.bf16.msra.mxu0 %v4186_v62  ;;  %1908 = vmatpush1.bf16.msra.mxu1 %v4186_v62  ;;  %v4232_v62 = vld [vmem:[#allocation50_spill] sm:$0xff] }
 0x1c8   :  { %1628 = vmatprep.subr.bf16.mxu0 %v4187_v63  ;;  %1909 = vmatprep.subr.bf16.mxu1 %v4187_v63  ;;  %v4233_v63 = vld [vmem:[#allocation51_spill] sm:$0xff] }
 0x1cb   :  { %1629 = vmatpush1.bf16.msra.mxu0 %v4188_v0  ;;  %1910 = vmatpush1.bf16.msra.mxu1 %v4188_v0  ;;  %v4234_v0 = vmov 0  }
 0x1cc   :  { %1630 = vmatprep.subr.bf16.mxu0 %v4189_v1  ;;  %1911 = vmatprep.subr.bf16.mxu1 %v4189_v1  ;;  %v4235_v1 = vld [vmem:[#allocation52_spill] sm:$0xff] }
 0x1cf   :  { %1631 = vmatpush1.bf16.msra.mxu0 %v4190_v2  ;;  %1912 = vmatpush1.bf16.msra.mxu1 %v4190_v2  ;;  %v4236_v2 = vld [vmem:[#allocation53_spill] sm:$0xff] }
 0x1d0   :  { %1632 = vmatprep.subr.bf16.mxu0 %v4191_v3  ;;  %1913 = vmatprep.subr.bf16.mxu1 %v4191_v3  ;;  %v4237_v3 = vld [vmem:[#allocation54_spill] sm:$0xff] }
 0x1d3   :  { %1633 = vmatpush1.bf16.msra.mxu0 %v4192_v4  ;;  %1914 = vmatpush1.bf16.msra.mxu1 %v4192_v4  ;;  %v4238_v4 = vld [vmem:[#allocation55_spill] sm:$0xff] }
 0x1d4   :  { %1634 = vmatprep.subr.bf16.mxu0 %v4193_v5  ;;  %1915 = vmatprep.subr.bf16.mxu1 %v4193_v5  ;;  %v4239_v5 = vld [vmem:[#allocation56_spill] sm:$0xff] }
 0x1d7   :  { %1635 = vmatpush1.bf16.msra.mxu0 %v4194_v6  ;;  %1916 = vmatpush1.bf16.msra.mxu1 %v4194_v6  ;;  %v4240_v6 = vld [vmem:[#allocation57_spill] sm:$0xff] }
 0x1d8   :  { %1636 = vmatprep.subr.bf16.mxu0 %v4195_v7  ;;  %1917 = vmatprep.subr.bf16.mxu1 %v4195_v7  ;;  %v4241_v7 = vld [vmem:[#allocation58_spill] sm:$0xff] }
 0x1db   :  { %1637 = vmatpush1.bf16.msra.mxu0 %v4196_v8  ;;  %1918 = vmatpush1.bf16.msra.mxu1 %v4196_v8  ;;  %v4242_v8 = vld [vmem:[#allocation59_spill] sm:$0xff] }
 0x1dc   :  { %1638 = vmatprep.subr.bf16.mxu0 %v4197_v9  ;;  %1919 = vmatprep.subr.bf16.mxu1 %v4197_v9  ;;  %v4243_v9 = vld [vmem:[#allocation60_spill] sm:$0xff] }
 0x1df   :  { %1639 = vmatpush1.bf16.msra.mxu0 %v4198_v12  ;;  %1920 = vmatpush1.bf16.msra.mxu1 %v4198_v12  ;;  %v4245_v12 = vld [vmem:[#allocation62_spill] sm:$0xff] }
 0x1e0   :  { %1649 = vmatprep.subr.bf16.mxu0 %v4199_v14  ;;  %1930 = vmatprep.subr.bf16.mxu1 %v4199_v14  ;;  %v2206_v14 = vld.sshfl [vmem:[%s3994_s3 + $0x8] sm:$0x1 pattern:$0x75316420] }
 0x1e2   :  { %1641 = vmatmul.mubr.bf16.vlgmr.msra.gmra.mrb[4].mxu0 %v3839_v10  ;;  %1922 = vmatmul.mubr.bf16.vlgmr.msra.gmra.mrb[4].mxu1 %v3843_v11  ;;  %v4244_v10 = vld [vmem:[#allocation61_spill] sm:$0xff]  ;;  %v2205_v11 = vld.sshfl [vmem:[%s3993_s2 + $0x8] sm:$0x1 pattern:$0x75316420] }
 0x1e3   :  { %1650 = vmatpush1.bf16.msra.mxu0 %v4200_v19  ;;  %1931 = vmatpush1.bf16.msra.mxu1 %v4200_v19  ;;  %v1797_v19 = vrot.slane %v2206_v14, %v2601_v16 }
 0x1e4   :  { %1651 = vmatprep.subr.bf16.mxu0 %v4201_v23  ;;  %1932 = vmatprep.subr.bf16.mxu1 %v4201_v23  ;;  %v4247_v23 = vld [vmem:[#allocation2_spill] sm:$0xff] }
 0x1e5   :  { %1681 = vmatprep.mubr.bf16.mxu0 %v1502_v15  ;;  %1962 = vmatprep.mubr.bf16.mxu1 %v1783_v20  ;;  %v4246_v15 = vld [vmem:[#allocation63_spill] sm:$0xff]  ;;  %v1516_v20 = vrot.slane %v2205_v11, %v2601_v16 }
 0x1e7   :  { %1652 = vmatpush1.bf16.msra.mxu0 %v4202_v24  ;;  %1933 = vmatpush1.bf16.msra.mxu1 %v4202_v24  ;;  %v2022_v24 = vsub.s32 0, %v4247_v23 }
 0x1e8   :  { %1653 = vmatprep.subr.bf16.mxu0 %v4203_v29  ;;  %1934 = vmatprep.subr.bf16.mxu1 %v4203_v29  ;;  %v2018_v29 = vld [vmem:[%s3995_s5] sm:$0x3] }
 0x1eb   :  { %1654 = vmatpush1.bf16.msra.mxu0 %v4204_v30  ;;  %1935 = vmatpush1.bf16.msra.mxu1 %v4204_v30  ;;  %v2026_v30 = vsub.s32 1, %v4247_v23 }
 0x1ec   :  { %1655 = vmatprep.subr.bf16.mxu0 %v4205_v33  ;;  %1936 = vmatprep.subr.bf16.mxu1 %v4205_v33 }
 0x1ef   :  { %1656 = vmatpush1.bf16.msra.mxu0 %v4206_v34  ;;  %1937 = vmatpush1.bf16.msra.mxu1 %v4206_v34 }
 0x1f0   :  { %1657 = vmatprep.subr.bf16.mxu0 %v4207_v35  ;;  %1938 = vmatprep.subr.bf16.mxu1 %v4207_v35 }
 0x1f3   :  { %1658 = vmatpush1.bf16.msra.mxu0 %v4208_v36  ;;  %1939 = vmatpush1.bf16.msra.mxu1 %v4208_v36  ;;  %v2023_v36 = vrot.slane %v2018_v29, %v2022_v24 }
 0x1f4   :  { %1659 = vmatprep.subr.bf16.mxu0 %v4209_v37  ;;  %1940 = vmatprep.subr.bf16.mxu1 %v4209_v37 }
 0x1f5   :  { %v3875_v38 = vpop.f32.mrb[0].mxu0  ;;  %v3877_v39 = vpop.f32.mrb[0].mxu1 }
 0x1f6   :  { %v2012_v40 = vmax.f32 %v3875_v38, %v3877_v39  ;;  %v3881_v41 = vpop.f32.mrb[1].mxu0  ;;  %v3883_v42 = vpop.f32.mrb[1].mxu1 }
 0x1f7   :  { %v2013_v43 = vmax.f32 %v3881_v41, %v3883_v42  ;;  %v1166_v44 = vpop.f32.mrb[2].mxu0  ;;  %v1447_v45 = vpop.f32.mrb[2].mxu1  ;;  %1660 = vmatpush1.bf16.msra.mxu0 %v4210_v46  ;;  %1941 = vmatpush1.bf16.msra.mxu1 %v4210_v46  ;;  %v2027_v46 = vrot.slane %v2018_v29, %v2026_v30 }
 0x1f8   :  { %v1167_v47 = vpop.f32.mrb[3].mxu0  ;;  %v1448_v48 = vpop.f32.mrb[3].mxu1  ;;  %1661 = vmatprep.subr.bf16.mxu0 %v4211_v26  ;;  %1942 = vmatprep.subr.bf16.mxu1 %v4211_v26 }
 0x1fb   :  { %1662 = vmatpush1.bf16.msra.mxu0 %v4212_v27  ;;  %1943 = vmatpush1.bf16.msra.mxu1 %v4212_v27 }
 0x1fc   :  { %1663 = vmatprep.subr.bf16.mxu0 %v4213_v31  ;;  %1944 = vmatprep.subr.bf16.mxu1 %v4213_v31 }
 0x1ff   :  { %1664 = vmatpush1.bf16.msra.mxu0 %v4214_v32  ;;  %1945 = vmatpush1.bf16.msra.mxu1 %v4214_v32 }
 0x200   :  { %1665 = vmatprep.subr.bf16.mxu0 %v4215_v28  ;;  %1946 = vmatprep.subr.bf16.mxu1 %v4215_v28 }
 0x203   :  { %1666 = vmatpush1.bf16.msra.mxu0 %v4216_v21  ;;  %1947 = vmatpush1.bf16.msra.mxu1 %v4216_v21 }
 0x204   :  { %1667 = vmatprep.subr.bf16.mxu0 %v4217_v51  ;;  %1948 = vmatprep.subr.bf16.mxu1 %v4217_v51 }
 0x207   :  { %1668 = vmatpush1.bf16.msra.mxu0 %v4218_v52  ;;  %1949 = vmatpush1.bf16.msra.mxu1 %v4218_v52 }
 0x208   :  { %1669 = vmatprep.subr.bf16.mxu0 %v4219_v17  ;;  %1950 = vmatprep.subr.bf16.mxu1 %v4219_v17 }
 0x20b   :  { %1670 = vmatpush1.bf16.msra.mxu0 %v4220_v18  ;;  %1951 = vmatpush1.bf16.msra.mxu1 %v4220_v18 }
 0x20c   :  { %1671 = vmatprep.subr.bf16.mxu0 %v4221_v13  ;;  %1952 = vmatprep.subr.bf16.mxu1 %v4221_v13 }
 0x20f   :  { %1672 = vmatpush1.bf16.msra.mxu0 %v4222_v25  ;;  %1953 = vmatpush1.bf16.msra.mxu1 %v4222_v25 }
 0x210   :  { %1673 = vmatprep.subr.bf16.mxu0 %v4223_v49  ;;  %1954 = vmatprep.subr.bf16.mxu1 %v4223_v49 }
 0x213   :  { %1674 = vmatpush1.bf16.msra.mxu0 %v4224_v50  ;;  %1955 = vmatpush1.bf16.msra.mxu1 %v4224_v50 }
 0x214   :  { %1675 = vmatprep.subr.bf16.mxu0 %v4225_v53  ;;  %1956 = vmatprep.subr.bf16.mxu1 %v4225_v53 }
 0x217   :  { %1676 = vmatpush1.bf16.msra.mxu0 %v4226_v54  ;;  %1957 = vmatpush1.bf16.msra.mxu1 %v4226_v54 }
 0x218   :  { %1677 = vmatprep.subr.bf16.mxu0 %v4227_v55  ;;  %1958 = vmatprep.subr.bf16.mxu1 %v4227_v55 }
 0x21b   :  { %1678 = vmatpush1.bf16.msra.mxu0 %v4228_v56  ;;  %1959 = vmatpush1.bf16.msra.mxu1 %v4228_v56 }
 0x21c   :  { %1679 = vmatprep.subr.bf16.mxu0 %v4229_v57  ;;  %1960 = vmatprep.subr.bf16.mxu1 %v4229_v57 }
 0x21f   :  { %1680 = vmatpush1.bf16.msra.mxu0 %v4230_v60  ;;  %1961 = vmatpush1.bf16.msra.mxu1 %v4230_v60 }
 0x220   :  { %1690 = vmatprep.subr.bf16.mxu0 %v4231_v61  ;;  %1971 = vmatprep.subr.bf16.mxu1 %v4231_v61 }
 0x222   :  { %1682 = vmatmul.mubr.bf16.vlgmr.msra.gmra.mrb[4].mxu0 %v1500_v58  ;;  %1963 = vmatmul.mubr.bf16.vlgmr.msra.gmra.mrb[4].mxu1 %v1781_v59 }
 0x223   :  { %1691 = vmatpush1.bf16.msra.mxu0 %v4232_v62  ;;  %1972 = vmatpush1.bf16.msra.mxu1 %v4232_v62 }
 0x224   :  { %1692 = vmatprep.subr.bf16.mxu0 %v4233_v63  ;;  %1973 = vmatprep.subr.bf16.mxu1 %v4233_v63 }
 0x225   :  { %1722 = vmatprep.mubr.bf16.mxu0 %v4234_v0  ;;  %2003 = vmatprep.mubr.bf16.mxu1 %v4234_v0 }
 0x227   :  { %1693 = vmatpush1.bf16.msra.mxu0 %v4235_v1  ;;  %1974 = vmatpush1.bf16.msra.mxu1 %v4235_v1 }
 0x228   :  { %1694 = vmatprep.subr.bf16.mxu0 %v4236_v2  ;;  %1975 = vmatprep.subr.bf16.mxu1 %v4236_v2 }
 0x22b   :  { %1695 = vmatpush1.bf16.msra.mxu0 %v4237_v3  ;;  %1976 = vmatpush1.bf16.msra.mxu1 %v4237_v3 }
 0x22c   :  { %1696 = vmatprep.subr.bf16.mxu0 %v4238_v4  ;;  %1977 = vmatprep.subr.bf16.mxu1 %v4238_v4 }
 0x22f   :  { %1697 = vmatpush1.bf16.msra.mxu0 %v4239_v5  ;;  %1978 = vmatpush1.bf16.msra.mxu1 %v4239_v5 }
 0x230   :  { %1698 = vmatprep.subr.bf16.mxu0 %v4240_v6  ;;  %1979 = vmatprep.subr.bf16.mxu1 %v4240_v6 }
 0x233   :  { %1699 = vmatpush1.bf16.msra.mxu0 %v4241_v7  ;;  %1980 = vmatpush1.bf16.msra.mxu1 %v4241_v7 }
 0x234   :  { %1700 = vmatprep.subr.bf16.mxu0 %v4242_v8  ;;  %1981 = vmatprep.subr.bf16.mxu1 %v4242_v8 }
 0x237   :  { %1701 = vmatpush1.bf16.msra.mxu0 %v4243_v9  ;;  %1982 = vmatpush1.bf16.msra.mxu1 %v4243_v9 }
 0x238   :  { %1702 = vmatprep.subr.bf16.mxu0 %v4244_v10  ;;  %1983 = vmatprep.subr.bf16.mxu1 %v4244_v10 }
 0x23b   :  { %1703 = vmatpush1.bf16.msra.mxu0 %v4245_v12  ;;  %1984 = vmatpush1.bf16.msra.mxu1 %v4245_v12 }
 0x23c   :  { %1704 = vmatprep.subr.bf16.mxu0 %v4246_v15  ;;  %1985 = vmatprep.subr.bf16.mxu1 %v4246_v15 }
 0x23f   :  { %1705 = vmatpush1.bf16.msra.mxu0 %v3551_v22  ;;  %1986 = vmatpush1.bf16.msra.mxu1 %v3551_v22 }
 0x242   :  { %1723 = vmatmul.mubr.bf16.vlgmr.msra.gmra.mrb[4].mxu0 %v1516_v20  ;;  %2004 = vmatmul.mubr.bf16.vlgmr.msra.gmra.mrb[4].mxu1 %v1797_v19 }
 0x315   :  { %v1724_v33 = vpop.f32.mrb[4].mxu0  ;;  %v2005_v34 = vpop.f32.mrb[4].mxu1 }
 0x316   :  { %v2014_v35 = vmax.f32 %v1724_v33, %v2005_v34  ;;  %v1726_v37 = vpop.f32.mrb[5].mxu0  ;;  %v2007_v44 = vpop.f32.mrb[5].mxu1 }
 0x317   :  { %v2015_v45 = vmax.f32 %v1726_v37, %v2007_v44  ;;  %v1728_v47 = vpop.f32.mrb[6].mxu0  ;;  %v2009_v22 = vpop.f32.mrb[6].mxu1 }
 0x318   :  { %v2016_v48 = vmax.f32 %v2012_v40, %v2014_v35  ;;  %v1729_v26 = vpop.f32.mrb[7].mxu0  ;;  %v2010_v27 = vpop.f32.mrb[7].mxu1 }
 0x319   :  { %v2017_v31 = vmax.f32 %v2013_v43, %v2015_v45 }
 0x31a   :  { %v2030_v32 = vadd.f32 %v2023_v36, %v2016_v48 }
 0x31b   :  { %v2031_v28 = vadd.f32 %v2027_v46, %v2017_v31 }
 0x31c   :  { %v2032_v21 = vmax.f32 %v2030_v32, 0.0 }
 0x31d   :  { %v2033_v51 = vmax.f32 %v2031_v28, 0.0 }
 0x31f   :  { %v2207_v52 = vpack.c.bf16 %v2033_v51, %v2032_v21 }
 0x321   :  { %v2045_v17 = vrot.slane %v2207_v52, %v2601_v16 }
 0x323   :  { %2208 = vst.sshfl [vmem:[%s3996_s6] sm:$0x5 pattern:$0x73625140] %v2045_v17 }

// kernel: simplenet_forward.5
= control target key start
LH: loop header
LB: loop body
LE: loop exit
PB: predicated region body
PF: predicated region fallthrough
CT: control target
= control target key end

     0   :  { %vm6240_vm0 = vmmov 0   ;;  %s9359_s4 = inlined_call_operand.vmem [shape: bf16[3200,128], index: 4, kind: input, shape index: {}]   ;;  %s9360_s0 = inlined_call_operand.vmem [shape: bf16[8,3200], index: 0, kind: input, shape index: {}]   ;;  %s9361_s1 = inlined_call_operand.vmem [shape: bf16[8,3200], index: 1, kind: input, shape index: {}]   ;;  %s9362_s2 = inlined_call_operand.vmem [shape: bf16[8,3200], index: 2, kind: input, shape index: {}]   ;;  %s9363_s3 = inlined_call_operand.vmem [shape: bf16[8,3200], index: 3, kind: input, shape index: {}]   ;;  %s9364_s5 = inlined_call_operand.vmem [shape: f32[1,128], index: 5, kind: input, shape index: {}]   ;;  %s9365_s6 = inlined_call_operand.vmem [shape: bf16[8,128], index: 6, kind: output, shape index: {}]  }
   0x1   :  { %v5601_v0 = vld [vmem:[%s9359_s4 + $0x40] sm:$0xff]   ;;  %v5605_v4 = vld [vmem:[%s9359_s4 + $0x48] sm:$0xff]   ;;  %v5609_v8 = vld [vmem:[%s9359_s4 + $0x50] sm:$0xff]  }
   0x2   :  { %v5602_v1 = vld [vmem:[%s9359_s4 + $0xc0] sm:$0xff]   ;;  %4427 = vmatprep.subr.bf16.mxu0 %v5601_v0  ;;  %v5606_v5 = vld [vmem:[%s9359_s4 + $0xc8] sm:$0xff]   ;;  %v5610_v9 = vld [vmem:[%s9359_s4 + $0xd0] sm:$0xff]  }
   0x3   :  { %v5603_v2 = vld [vmem:[%s9359_s4] sm:$0xff]   ;;  %4449 = vmatprep.subr.bf16.mxu1 %v5602_v1  ;;  %v5607_v6 = vld [vmem:[%s9359_s4 + $0x8] sm:$0xff]   ;;  %v5611_v10 = vld [vmem:[%s9359_s4 + $0x10] sm:$0xff]  }
   0x4   :  { %v5604_v3 = vld [vmem:[%s9359_s4 + $0x80] sm:$0xff]   ;;  %4428 = vmatpush3.bf16.msra.mxu0 %v5603_v2  ;;  %v5608_v7 = vld [vmem:[%s9359_s4 + $0x88] sm:$0xff]   ;;  %v5612_v11 = vld [vmem:[%s9359_s4 + $0x90] sm:$0xff]  }
   0x5   :  { %4450 = vmatpush3.bf16.msra.mxu1 %v5604_v3  ;;  %4429 = vmatprep.subr.bf16.mxu0 %v5605_v4  ;;  %v5613_v12 = vld [vmem:[%s9359_s4 + $0x58] sm:$0xff]   ;;  %v5617_v16 = vld [vmem:[%s9359_s4 + $0x60] sm:$0xff]   ;;  %v5621_v20 = vld [vmem:[%s9359_s4 + $0x68] sm:$0xff]  }
   0x6   :  { %4451 = vmatprep.subr.bf16.mxu1 %v5606_v5  ;;  %v5614_v13 = vld [vmem:[%s9359_s4 + $0xd8] sm:$0xff]   ;;  %v5618_v17 = vld [vmem:[%s9359_s4 + $0xe0] sm:$0xff]   ;;  %v5622_v21 = vld [vmem:[%s9359_s4 + $0xe8] sm:$0xff]  }
   0x7   :  { %v5615_v14 = vld [vmem:[%s9359_s4 + $0x18] sm:$0xff]   ;;  %v5619_v18 = vld [vmem:[%s9359_s4 + $0x20] sm:$0xff]   ;;  %v5623_v22 = vld [vmem:[%s9359_s4 + $0x28] sm:$0xff]  }
   0x8   :  { %4430 = vmatpush3.bf16.msra.mxu0 %v5607_v6  ;;  %v5616_v15 = vld [vmem:[%s9359_s4 + $0x98] sm:$0xff]   ;;  %v5620_v19 = vld [vmem:[%s9359_s4 + $0xa0] sm:$0xff]   ;;  %v5624_v23 = vld [vmem:[%s9359_s4 + $0xa8] sm:$0xff]  }
   0x9   :  { %4452 = vmatpush3.bf16.msra.mxu1 %v5608_v7  ;;  %4431 = vmatprep.subr.bf16.mxu0 %v5609_v8  ;;  %v5625_v24 = vld [vmem:[%s9359_s4 + $0x70] sm:$0xff]   ;;  %v5629_v28 = vld [vmem:[%s9359_s4 + $0x78] sm:$0xff]   ;;  %v424_v32 = vld [vmem:[%s9360_s0] sm:$0xff] }
   0xa   :  { %4453 = vmatprep.subr.bf16.mxu1 %v5610_v9  ;;  %v5626_v25 = vld [vmem:[%s9359_s4 + $0xf0] sm:$0xff]   ;;  %v5630_v29 = vld [vmem:[%s9359_s4 + $0xf8] sm:$0xff]   ;;  %v425_v33 = vld [vmem:[%s9360_s0 + $0x8] sm:$0xff]  ;;  %v4126_v34 = vcombine.low %v424_v32, %v424_v32  ;;  %v4127_v35 = vcombine.high %v424_v32, %v424_v32 }
   0xb   :  { %v5627_v26 = vld [vmem:[%s9359_s4 + $0x30] sm:$0xff]   ;;  %v5631_v30 = vld [vmem:[%s9359_s4 + $0x38] sm:$0xff]   ;;  %v4128_v36 = vcombine.low %v425_v33, %v425_v33  ;;  %v4129_v37 = vcombine.high %v425_v33, %v425_v33  ;;  %v5637_v38 = vld [vmem:[%s9359_s4 + $0x140] sm:$0xff]  }
   0xc   :  { %4432 = vmatpush3.bf16.msra.mxu0 %v5611_v10  ;;  %v5628_v27 = vld [vmem:[%s9359_s4 + $0xb0] sm:$0xff]   ;;  %v5632_v31 = vld [vmem:[%s9359_s4 + $0xb8] sm:$0xff]   ;;  %v5638_v39 = vld [vmem:[%s9359_s4 + $0x1c0] sm:$0xff]   ;;  %1757 = vmatprep.mubr.bf16.mxu0 %v4127_v35 }
   0xd   :  { %4454 = vmatpush3.bf16.msra.mxu1 %v5612_v11  ;;  %4433 = vmatprep.subr.bf16.mxu0 %v5613_v12  ;;  %v5639_v40 = vld [vmem:[%s9359_s4 + $0x100] sm:$0xff]   ;;  %v5641_v42 = vld [vmem:[%s9359_s4 + $0x148] sm:$0xff]   ;;  %v5645_v46 = vld [vmem:[%s9359_s4 + $0x150] sm:$0xff]  }
   0xe   :  { %4455 = vmatprep.subr.bf16.mxu1 %v5614_v13  ;;  %1797 = vmatprep.mubr.bf16.mxu1 %v4129_v37  ;;  %v5640_v41 = vld [vmem:[%s9359_s4 + $0x180] sm:$0xff]   ;;  %v5642_v43 = vld [vmem:[%s9359_s4 + $0x1c8] sm:$0xff]   ;;  %v5646_v47 = vld [vmem:[%s9359_s4 + $0x1d0] sm:$0xff]  }
   0xf   :  { %v5643_v44 = vld [vmem:[%s9359_s4 + $0x108] sm:$0xff]   ;;  %v5647_v48 = vld [vmem:[%s9359_s4 + $0x110] sm:$0xff]   ;;  %v5649_v50 = vld [vmem:[%s9359_s4 + $0x158] sm:$0xff]  }
  0x10   :  { %4434 = vmatpush3.bf16.msra.mxu0 %v5615_v14  ;;  %v5644_v45 = vld [vmem:[%s9359_s4 + $0x188] sm:$0xff]   ;;  %v5648_v49 = vld [vmem:[%s9359_s4 + $0x190] sm:$0xff]   ;;  %v5650_v51 = vld [vmem:[%s9359_s4 + $0x1d8] sm:$0xff]  }
  0x11   :  { %4456 = vmatpush3.bf16.msra.mxu1 %v5616_v15  ;;  %4435 = vmatprep.subr.bf16.mxu0 %v5617_v16  ;;  %v5651_v52 = vld [vmem:[%s9359_s4 + $0x118] sm:$0xff]   ;;  %v5653_v54 = vld [vmem:[%s9359_s4 + $0x160] sm:$0xff]   ;;  %v5657_v58 = vld [vmem:[%s9359_s4 + $0x168] sm:$0xff]  }
  0x12   :  { %4457 = vmatprep.subr.bf16.mxu1 %v5618_v17  ;;  %v5652_v53 = vld [vmem:[%s9359_s4 + $0x198] sm:$0xff]   ;;  %v5654_v55 = vld [vmem:[%s9359_s4 + $0x1e0] sm:$0xff]   ;;  %v5658_v59 = vld [vmem:[%s9359_s4 + $0x1e8] sm:$0xff]  }
  0x13   :  { %v5655_v56 = vld [vmem:[%s9359_s4 + $0x120] sm:$0xff]   ;;  %v5659_v60 = vld [vmem:[%s9359_s4 + $0x128] sm:$0xff]   ;;  %v5661_v62 = vld [vmem:[%s9359_s4 + $0x170] sm:$0xff]  }
  0x14   :  { %4436 = vmatpush3.bf16.msra.mxu0 %v5619_v18  ;;  %v5656_v57 = vld [vmem:[%s9359_s4 + $0x1a0] sm:$0xff]   ;;  %v5660_v61 = vld [vmem:[%s9359_s4 + $0x1a8] sm:$0xff]   ;;  %v5662_v63 = vld [vmem:[%s9359_s4 + $0x1f0] sm:$0xff]  }
  0x15   :  { %4458 = vmatpush3.bf16.msra.mxu1 %v5620_v19  ;;  %4437 = vmatprep.subr.bf16.mxu0 %v5621_v20  ;;  %v5663_v0 = vld [vmem:[%s9359_s4 + $0x130] sm:$0xff]   ;;  %v5665_v2 = vld [vmem:[%s9359_s4 + $0x178] sm:$0xff]   ;;  %v5673_v12 = vld [vmem:[%s9359_s4 + $0x240] sm:$0xff]  }
  0x16   :  { %4459 = vmatprep.subr.bf16.mxu1 %v5622_v21  ;;  %v5664_v1 = vld [vmem:[%s9359_s4 + $0x1b0] sm:$0xff]   ;;  %v5666_v3 = vld [vmem:[%s9359_s4 + $0x1f8] sm:$0xff]   ;;  %v5674_v13 = vld [vmem:[%s9359_s4 + $0x2c0] sm:$0xff]  }
  0x17   :  { %v5667_v4 = vld [vmem:[%s9359_s4 + $0x138] sm:$0xff]   ;;  %v426_v6 = vld [vmem:[%s9360_s0 + $0x10] sm:$0xff]  ;;  %v5675_v14 = vld [vmem:[%s9359_s4 + $0x200] sm:$0xff]  }
  0x18   :  { %4438 = vmatpush3.bf16.msra.mxu0 %v5623_v22  ;;  %v5668_v5 = vld [vmem:[%s9359_s4 + $0x1b8] sm:$0xff]   ;;  %v4130_v7 = vcombine.low %v426_v6, %v426_v6  ;;  %v4131_v8 = vcombine.high %v426_v6, %v426_v6  ;;  %v5676_v15 = vld [vmem:[%s9359_s4 + $0x280] sm:$0xff]   ;;  %v5677_v16 = vld [vmem:[%s9359_s4 + $0x248] sm:$0xff]  }
  0x19   :  { %4460 = vmatpush3.bf16.msra.mxu1 %v5624_v23  ;;  %4439 = vmatprep.subr.bf16.mxu0 %v5625_v24  ;;  %v427_v9 = vld [vmem:[%s9360_s0 + $0x18] sm:$0xff]  ;;  %v5678_v17 = vld [vmem:[%s9359_s4 + $0x2c8] sm:$0xff]   ;;  %v5681_v20 = vld [vmem:[%s9359_s4 + $0x250] sm:$0xff]  }
  0x1a   :  { %4461 = vmatprep.subr.bf16.mxu1 %v5626_v25  ;;  %v4132_v10 = vcombine.low %v427_v9, %v427_v9  ;;  %v4133_v11 = vcombine.high %v427_v9, %v427_v9  ;;  %v5679_v18 = vld [vmem:[%s9359_s4 + $0x208] sm:$0xff]   ;;  %v5682_v21 = vld [vmem:[%s9359_s4 + $0x2d0] sm:$0xff]   ;;  %v5685_v24 = vld [vmem:[%s9359_s4 + $0x258] sm:$0xff]  }
  0x1b   :  { %v5680_v19 = vld [vmem:[%s9359_s4 + $0x288] sm:$0xff]   ;;  %v5683_v22 = vld [vmem:[%s9359_s4 + $0x210] sm:$0xff]   ;;  %v5686_v25 = vld [vmem:[%s9359_s4 + $0x2d8] sm:$0xff]  }
  0x1c   :  { %4440 = vmatpush3.bf16.msra.mxu0 %v5627_v26  ;;  %v5684_v23 = vld [vmem:[%s9359_s4 + $0x290] sm:$0xff]   ;;  %v5687_v26 = vld [vmem:[%s9359_s4 + $0x218] sm:$0xff]   ;;  %v5693_v32 = vld [vmem:[%s9359_s4 + $0x268] sm:$0xff]  }
  0x1d   :  { %4462 = vmatpush3.bf16.msra.mxu1 %v5628_v27  ;;  %4441 = vmatprep.subr.bf16.mxu0 %v5629_v28  ;;  %v5688_v27 = vld [vmem:[%s9359_s4 + $0x298] sm:$0xff]   ;;  %v5689_v28 = vld [vmem:[%s9359_s4 + $0x260] sm:$0xff]   ;;  %v5694_v33 = vld [vmem:[%s9359_s4 + $0x2e8] sm:$0xff]  }
  0x1e   :  { %4463 = vmatprep.subr.bf16.mxu1 %v5630_v29  ;;  %v5690_v29 = vld [vmem:[%s9359_s4 + $0x2e0] sm:$0xff]   ;;  %v5696_v35 = vld [vmem:[%s9359_s4 + $0x2a8] sm:$0xff]   ;;  %v5698_v37 = vld [vmem:[%s9359_s4 + $0x2f0] sm:$0xff]  }
  0x1f   :  { %v5729_v6 = vld [vmem:[%s9359_s4 + $0x368] sm:$0xff]  }
  0x20   :  { %4442 = vmatpush3.bf16.msra.mxu0 %v5631_v30  ;;  %v5691_v30 = vld [vmem:[%s9359_s4 + $0x220] sm:$0xff]   ;;  %v5732_v9 = vld [vmem:[%s9359_s4 + $0x3a8] sm:$0xff]  }
  0x21   :  { %4464 = vmatpush3.bf16.msra.mxu1 %v5632_v31  ;;  %4471 = vmatprep.subr.bf16.mxu0 %v5637_v38  ;;  %v5692_v31 = vld [vmem:[%s9359_s4 + $0x2a0] sm:$0xff]   ;;  %v5699_v38 = vld [vmem:[%s9359_s4 + $0x230] sm:$0xff]  }
  0x22   :  { %4493 = vmatprep.subr.bf16.mxu1 %v5638_v39  ;;  %v5700_v39 = vld [vmem:[%s9359_s4 + $0x2b0] sm:$0xff]  }
  0x23   :  { %1758 = vmatmul.mubr.bf16.vlgmr.msra.gmra.mrb[0].mxu0 %v4126_v34  ;;  %v5695_v34 = vld [vmem:[%s9359_s4 + $0x228] sm:$0xff]  }
  0x24   :  { %1798 = vmatmul.mubr.bf16.vlgmr.msra.gmra.mrb[0].mxu1 %v4128_v36  ;;  %4472 = vmatpush3.bf16.msra.mxu0 %v5639_v40  ;;  %v5697_v36 = vld [vmem:[%s9359_s4 + $0x270] sm:$0xff]   ;;  %v5701_v40 = vld [vmem:[%s9359_s4 + $0x278] sm:$0xff]  }
  0x25   :  { %4494 = vmatpush3.bf16.msra.mxu1 %v5640_v41  ;;  %4473 = vmatprep.subr.bf16.mxu0 %v5641_v42  ;;  %v5702_v41 = vld [vmem:[%s9359_s4 + $0x2f8] sm:$0xff]  }
  0x26   :  { %4495 = vmatprep.subr.bf16.mxu1 %v5642_v43  ;;  %1837 = vmatprep.mubr.bf16.mxu0 %v4131_v8  ;;  %v5703_v42 = vld [vmem:[%s9359_s4 + $0x238] sm:$0xff]   ;;  %v5731_v8 = vld [vmem:[%s9359_s4 + $0x328] sm:$0xff]  }
  0x27   :  { %1877 = vmatprep.mubr.bf16.mxu1 %v4133_v11  ;;  %v5704_v43 = vld [vmem:[%s9359_s4 + $0x2b8] sm:$0xff]   ;;  %v5734_v11 = vld [vmem:[%s9359_s4 + $0x3f0] sm:$0xff]  }
  0x28   :  { %4474 = vmatpush3.bf16.msra.mxu0 %v5643_v44  ;;  %v428_v44 = vld [vmem:[%s9360_s0 + $0x20] sm:$0xff] }
  0x29   :  { %4496 = vmatpush3.bf16.msra.mxu1 %v5644_v45  ;;  %4475 = vmatprep.subr.bf16.mxu0 %v5645_v46  ;;  %v429_v45 = vld [vmem:[%s9360_s0 + $0x28] sm:$0xff]  ;;  %v4134_v46 = vcombine.low %v428_v44, %v428_v44 }
  0x2a   :  { %4497 = vmatprep.subr.bf16.mxu1 %v5646_v47  ;;  %v4135_v47 = vcombine.high %v428_v44, %v428_v44  ;;  %v6775_v44 = vld [vmem:[%s9359_s4 + $0x468] sm:$0xff]  }
  0x2c   :  { %4476 = vmatpush3.bf16.msra.mxu0 %v5647_v48  ;;  %v4136_v48 = vcombine.low %v429_v45, %v429_v45 }
  0x2d   :  { %4498 = vmatpush3.bf16.msra.mxu1 %v5648_v49  ;;  %4477 = vmatprep.subr.bf16.mxu0 %v5649_v50  ;;  %v4137_v49 = vcombine.high %v429_v45, %v429_v45  ;;  %v5709_v50 = vld [vmem:[%s9359_s4 + $0x340] sm:$0xff]   ;;  %v6782_v45 = vld [vmem:[%s9359_s4 + $0x4e8] sm:$0xff]  }
  0x2e   :  { %4499 = vmatprep.subr.bf16.mxu1 %v5650_v51  ;;  %v5710_v51 = vld [vmem:[%s9359_s4 + $0x3c0] sm:$0xff]  }
  0x30   :  { %4478 = vmatpush3.bf16.msra.mxu0 %v5651_v52  ;;  %v5711_v52 = vld [vmem:[%s9359_s4 + $0x300] sm:$0xff]  }
  0x31   :  { %4500 = vmatpush3.bf16.msra.mxu1 %v5652_v53  ;;  %4479 = vmatprep.subr.bf16.mxu0 %v5653_v54  ;;  %v5712_v53 = vld [vmem:[%s9359_s4 + $0x380] sm:$0xff]   ;;  %v5713_v54 = vld [vmem:[%s9359_s4 + $0x348] sm:$0xff]  }
  0x32   :  { %4501 = vmatprep.subr.bf16.mxu1 %v5654_v55  ;;  %v5714_v55 = vld [vmem:[%s9359_s4 + $0x3c8] sm:$0xff]  }
  0x34   :  { %4480 = vmatpush3.bf16.msra.mxu0 %v5655_v56  ;;  %v5715_v56 = vld [vmem:[%s9359_s4 + $0x308] sm:$0xff]  }
  0x35   :  { %4502 = vmatpush3.bf16.msra.mxu1 %v5656_v57  ;;  %4481 = vmatprep.subr.bf16.mxu0 %v5657_v58  ;;  %v5716_v57 = vld [vmem:[%s9359_s4 + $0x388] sm:$0xff]   ;;  %v5717_v58 = vld [vmem:[%s9359_s4 + $0x350] sm:$0xff]  }
  0x36   :  { %4503 = vmatprep.subr.bf16.mxu1 %v5658_v59  ;;  %v5718_v59 = vld [vmem:[%s9359_s4 + $0x3d0] sm:$0xff]  }
  0x38   :  { %4482 = vmatpush3.bf16.msra.mxu0 %v5659_v60  ;;  %v5719_v60 = vld [vmem:[%s9359_s4 + $0x310] sm:$0xff]  }
  0x39   :  { %4504 = vmatpush3.bf16.msra.mxu1 %v5660_v61  ;;  %4483 = vmatprep.subr.bf16.mxu0 %v5661_v62  ;;  %v5720_v61 = vld [vmem:[%s9359_s4 + $0x390] sm:$0xff]   ;;  %v5721_v62 = vld [vmem:[%s9359_s4 + $0x358] sm:$0xff]  }
  0x3a   :  { %4505 = vmatprep.subr.bf16.mxu1 %v5662_v63  ;;  %v5722_v63 = vld [vmem:[%s9359_s4 + $0x3d8] sm:$0xff]  }
  0x3c   :  { %4484 = vmatpush3.bf16.msra.mxu0 %v5663_v0  ;;  %v5723_v0 = vld [vmem:[%s9359_s4 + $0x318] sm:$0xff]  }
  0x3d   :  { %4506 = vmatpush3.bf16.msra.mxu1 %v5664_v1  ;;  %4485 = vmatprep.subr.bf16.mxu0 %v5665_v2  ;;  %v5724_v1 = vld [vmem:[%s9359_s4 + $0x398] sm:$0xff]   ;;  %v5725_v2 = vld [vmem:[%s9359_s4 + $0x360] sm:$0xff]  }
  0x3e   :  { %4507 = vmatprep.subr.bf16.mxu1 %v5666_v3  ;;  %v5726_v3 = vld [vmem:[%s9359_s4 + $0x3e0] sm:$0xff]  }
  0x40   :  { %4486 = vmatpush3.bf16.msra.mxu0 %v5667_v4  ;;  %v5727_v4 = vld [vmem:[%s9359_s4 + $0x320] sm:$0xff]  }
  0x41   :  { %4508 = vmatpush3.bf16.msra.mxu1 %v5668_v5  ;;  %4515 = vmatprep.subr.bf16.mxu0 %v5673_v12  ;;  %v5728_v5 = vld [vmem:[%s9359_s4 + $0x3a0] sm:$0xff]   ;;  %v5735_v12 = vld [vmem:[%s9359_s4 + $0x330] sm:$0xff]  }
  0x42   :  { %4537 = vmatprep.subr.bf16.mxu1 %v5674_v13  ;;  %v5736_v13 = vld [vmem:[%s9359_s4 + $0x3b0] sm:$0xff]  }
  0x43   :  { %1838 = vmatmul.mubr.bf16.vlgmr.msra.gmra.mrb[4].mxu0 %v4130_v7  ;;  %v5730_v7 = vld [vmem:[%s9359_s4 + $0x3e8] sm:$0xff]  }
  0x44   :  { %1878 = vmatmul.mubr.bf16.vlgmr.msra.gmra.mrb[4].mxu1 %v4132_v10  ;;  %4516 = vmatpush3.bf16.msra.mxu0 %v5675_v14  ;;  %v5733_v10 = vld [vmem:[%s9359_s4 + $0x370] sm:$0xff]   ;;  %v5737_v14 = vld [vmem:[%s9359_s4 + $0x378] sm:$0xff]  }
  0x45   :  { %4538 = vmatpush3.bf16.msra.mxu1 %v5676_v15  ;;  %4517 = vmatprep.subr.bf16.mxu0 %v5677_v16  ;;  %v5738_v15 = vld [vmem:[%s9359_s4 + $0x3f8] sm:$0xff]  }
  0x46   :  { %4539 = vmatprep.subr.bf16.mxu1 %v5678_v17  ;;  %1917 = vmatprep.mubr.bf16.mxu0 %v4135_v47  ;;  %v5739_v16 = vld [vmem:[%s9359_s4 + $0x338] sm:$0xff]   ;;  %v6794_v47 = vld [vmem:[%s9359_s4 + $0x4a8] sm:$0xff]  }
  0x47   :  { %1957 = vmatprep.mubr.bf16.mxu1 %v4137_v49  ;;  %v5740_v17 = vld [vmem:[%s9359_s4 + $0x3b8] sm:$0xff]   ;;  %v6806_v49 = vld [vmem:[%s9359_s4 + $0x4f0] sm:$0xff]  }
  0x48   :  { %4518 = vmatpush3.bf16.msra.mxu0 %v5679_v18  ;;  %v430_v18 = vld [vmem:[%s9360_s0 + $0x30] sm:$0xff] }
  0x49   :  { %4540 = vmatpush3.bf16.msra.mxu1 %v5680_v19  ;;  %4519 = vmatprep.subr.bf16.mxu0 %v5681_v20  ;;  %v431_v19 = vld [vmem:[%s9360_s0 + $0x38] sm:$0xff]  ;;  %v4138_v20 = vcombine.low %v430_v18, %v430_v18 }
  0x4a   :  { %4541 = vmatprep.subr.bf16.mxu1 %v5682_v21  ;;  %v4139_v21 = vcombine.high %v430_v18, %v430_v18  ;;  %v6974_v18 = vld [vmem:[%s9359_s4 + $0x568] sm:$0xff]  }
  0x4c   :  { %4520 = vmatpush3.bf16.msra.mxu0 %v5683_v22  ;;  %v4140_v22 = vcombine.low %v431_v19, %v431_v19 }
  0x4d   :  { %4542 = vmatpush3.bf16.msra.mxu1 %v5684_v23  ;;  %4521 = vmatprep.subr.bf16.mxu0 %v5685_v24  ;;  %v5745_v23 = vld [vmem:[%s9359_s4 + $0x440] sm:$0xff]   ;;  %v4141_v24 = vcombine.high %v431_v19, %v431_v19  ;;  %v6980_v19 = vld [vmem:[%s9359_s4 + $0x5e8] sm:$0xff]  }
  0x4e   :  { %4543 = vmatprep.subr.bf16.mxu1 %v5686_v25  ;;  %v5746_v25 = vld [vmem:[%s9359_s4 + $0x4c0] sm:$0xff]   ;;  %9515 = vst [vmem:[#allocation5_spill] sm:$0xff] %v6980_v19 }
  0x50   :  { %4522 = vmatpush3.bf16.msra.mxu0 %v5687_v26  ;;  %v6693_v26 = vld [vmem:[%s9359_s4 + $0x400] sm:$0xff]  }
  0x51   :  { %4544 = vmatpush3.bf16.msra.mxu1 %v5688_v27  ;;  %4523 = vmatprep.subr.bf16.mxu0 %v5689_v28  ;;  %v5748_v27 = vld [vmem:[%s9359_s4 + $0x480] sm:$0xff]   ;;  %v6701_v28 = vld [vmem:[%s9359_s4 + $0x448] sm:$0xff]  }
  0x52   :  { %4545 = vmatprep.subr.bf16.mxu1 %v5690_v29  ;;  %v5750_v29 = vld [vmem:[%s9359_s4 + $0x4c8] sm:$0xff]  }
  0x54   :  { %4524 = vmatpush3.bf16.msra.mxu0 %v5691_v30  ;;  %v6711_v30 = vld [vmem:[%s9359_s4 + $0x408] sm:$0xff]  }
  0x55   :  { %4546 = vmatpush3.bf16.msra.mxu1 %v5692_v31  ;;  %4525 = vmatprep.subr.bf16.mxu0 %v5693_v32  ;;  %v5752_v31 = vld [vmem:[%s9359_s4 + $0x488] sm:$0xff]   ;;  %v6719_v32 = vld [vmem:[%s9359_s4 + $0x450] sm:$0xff]  }
  0x56   :  { %4547 = vmatprep.subr.bf16.mxu1 %v5694_v33  ;;  %v5754_v33 = vld [vmem:[%s9359_s4 + $0x4d0] sm:$0xff]  }
  0x58   :  { %4526 = vmatpush3.bf16.msra.mxu0 %v5695_v34  ;;  %v6729_v34 = vld [vmem:[%s9359_s4 + $0x410] sm:$0xff]  }
  0x59   :  { %4548 = vmatpush3.bf16.msra.mxu1 %v5696_v35  ;;  %4527 = vmatprep.subr.bf16.mxu0 %v5697_v36  ;;  %v5756_v35 = vld [vmem:[%s9359_s4 + $0x490] sm:$0xff]   ;;  %v6737_v36 = vld [vmem:[%s9359_s4 + $0x458] sm:$0xff]  }
  0x5a   :  { %4549 = vmatprep.subr.bf16.mxu1 %v5698_v37  ;;  %v5758_v37 = vld [vmem:[%s9359_s4 + $0x4d8] sm:$0xff]  }
  0x5c   :  { %4528 = vmatpush3.bf16.msra.mxu0 %v5699_v38  ;;  %v6747_v38 = vld [vmem:[%s9359_s4 + $0x418] sm:$0xff]  }
  0x5d   :  { %4550 = vmatpush3.bf16.msra.mxu1 %v5700_v39  ;;  %4529 = vmatprep.subr.bf16.mxu0 %v5701_v40  ;;  %v5760_v39 = vld [vmem:[%s9359_s4 + $0x498] sm:$0xff]   ;;  %v6755_v40 = vld [vmem:[%s9359_s4 + $0x460] sm:$0xff]  }
  0x5e   :  { %4551 = vmatprep.subr.bf16.mxu1 %v5702_v41  ;;  %v5762_v41 = vld [vmem:[%s9359_s4 + $0x4e0] sm:$0xff]  }
  0x60   :  { %4530 = vmatpush3.bf16.msra.mxu0 %v5703_v42  ;;  %v6765_v42 = vld [vmem:[%s9359_s4 + $0x420] sm:$0xff]  }
  0x61   :  { %4552 = vmatpush3.bf16.msra.mxu1 %v5704_v43  ;;  %4559 = vmatprep.subr.bf16.mxu0 %v5709_v50  ;;  %v6770_v43 = vld [vmem:[%s9359_s4 + $0x4a0] sm:$0xff]   ;;  %v6812_v50 = vld [vmem:[%s9359_s4 + $0x430] sm:$0xff]  }
  0x62   :  { %4581 = vmatprep.subr.bf16.mxu1 %v5710_v51  ;;  %v6818_v51 = vld [vmem:[%s9359_s4 + $0x4b0] sm:$0xff]  }
  0x63   :  { %1918 = vmatmul.mubr.bf16.vlgmr.msra.gmra.mrb[8].mxu0 %v4134_v46  ;;  %v6788_v46 = vld [vmem:[%s9359_s4 + $0x428] sm:$0xff]  }
  0x64   :  { %1958 = vmatmul.mubr.bf16.vlgmr.msra.gmra.mrb[8].mxu1 %v4136_v48  ;;  %4560 = vmatpush3.bf16.msra.mxu0 %v5711_v52  ;;  %v6799_v48 = vld [vmem:[%s9359_s4 + $0x470] sm:$0xff]   ;;  %v6823_v52 = vld [vmem:[%s9359_s4 + $0x478] sm:$0xff]  }
  0x65   :  { %4582 = vmatpush3.bf16.msra.mxu1 %v5712_v53  ;;  %4561 = vmatprep.subr.bf16.mxu0 %v5713_v54  ;;  %v6830_v53 = vld [vmem:[%s9359_s4 + $0x4f8] sm:$0xff]  }
  0x66   :  { %4583 = vmatprep.subr.bf16.mxu1 %v5714_v55  ;;  %1997 = vmatprep.mubr.bf16.mxu0 %v4139_v21  ;;  %v6836_v54 = vld [vmem:[%s9359_s4 + $0x438] sm:$0xff]   ;;  %v6992_v21 = vld [vmem:[%s9359_s4 + $0x5a8] sm:$0xff]  }
  0x67   :  { %2037 = vmatprep.mubr.bf16.mxu1 %v4141_v24  ;;  %v6842_v55 = vld [vmem:[%s9359_s4 + $0x4b8] sm:$0xff]   ;;  %9516 = vst [vmem:[#allocation6_spill] sm:$0xff] %v6992_v21  ;;  %v7010_v24 = vld [vmem:[%s9359_s4 + $0x530] sm:$0xff]  }
  0x68   :  { %4562 = vmatpush3.bf16.msra.mxu0 %v5715_v56  ;;  %v432_v56 = vld [vmem:[%s9360_s0 + $0x40] sm:$0xff] }
  0x69   :  { %4584 = vmatpush3.bf16.msra.mxu1 %v5716_v57  ;;  %4563 = vmatprep.subr.bf16.mxu0 %v5717_v58  ;;  %v4142_v57 = vcombine.low %v432_v56, %v432_v56  ;;  %v4143_v58 = vcombine.high %v432_v56, %v432_v56 }
  0x6a   :  { %4585 = vmatprep.subr.bf16.mxu1 %v5718_v59  ;;  %v433_v59 = vld [vmem:[%s9360_s0 + $0x48] sm:$0xff] }
  0x6c   :  { %4564 = vmatpush3.bf16.msra.mxu0 %v5719_v60  ;;  %v4144_v60 = vcombine.low %v433_v59, %v433_v59 }
  0x6d   :  { %4586 = vmatpush3.bf16.msra.mxu1 %v5720_v61  ;;  %4565 = vmatprep.subr.bf16.mxu0 %v5721_v62  ;;  %v4145_v61 = vcombine.high %v433_v59, %v433_v59  ;;  %v6855_v62 = vld [vmem:[%s9359_s4 + $0x540] sm:$0xff]   ;;  %v9368_v59 = vmov 0.0  }
  0x6e   :  { %4587 = vmatprep.subr.bf16.mxu1 %v5722_v63  ;;  %v6860_v63 = vld [vmem:[%s9359_s4 + $0x5c0] sm:$0xff]  }
  0x70   :  { %4566 = vmatpush3.bf16.msra.mxu0 %v5723_v0  ;;  %v6866_v0 = vld [vmem:[%s9359_s4 + $0x500] sm:$0xff]  }
  0x71   :  { %4588 = vmatpush3.bf16.msra.mxu1 %v5724_v1  ;;  %4567 = vmatprep.subr.bf16.mxu0 %v5725_v2  ;;  %v6872_v1 = vld [vmem:[%s9359_s4 + $0x580] sm:$0xff]   ;;  %v6878_v2 = vld [vmem:[%s9359_s4 + $0x548] sm:$0xff]  }
  0x72   :  { %4589 = vmatprep.subr.bf16.mxu1 %v5726_v3  ;;  %v6884_v3 = vld [vmem:[%s9359_s4 + $0x5c8] sm:$0xff]  }
  0x74   :  { %4568 = vmatpush3.bf16.msra.mxu0 %v5727_v4  ;;  %v6890_v4 = vld [vmem:[%s9359_s4 + $0x508] sm:$0xff]  }
  0x75   :  { %4590 = vmatpush3.bf16.msra.mxu1 %v5728_v5  ;;  %4569 = vmatprep.subr.bf16.mxu0 %v5729_v6  ;;  %v6896_v5 = vld [vmem:[%s9359_s4 + $0x588] sm:$0xff]   ;;  %v6902_v6 = vld [vmem:[%s9359_s4 + $0x550] sm:$0xff]  }
  0x76   :  { %4591 = vmatprep.subr.bf16.mxu1 %v5730_v7  ;;  %v6908_v7 = vld [vmem:[%s9359_s4 + $0x5d0] sm:$0xff]  }
  0x78   :  { %4570 = vmatpush3.bf16.msra.mxu0 %v5731_v8  ;;  %v6914_v8 = vld [vmem:[%s9359_s4 + $0x510] sm:$0xff]  }
  0x79   :  { %4592 = vmatpush3.bf16.msra.mxu1 %v5732_v9  ;;  %4571 = vmatprep.subr.bf16.mxu0 %v5733_v10  ;;  %v6920_v9 = vld [vmem:[%s9359_s4 + $0x590] sm:$0xff]   ;;  %v6926_v10 = vld [vmem:[%s9359_s4 + $0x558] sm:$0xff]  }
  0x7a   :  { %4593 = vmatprep.subr.bf16.mxu1 %v5734_v11  ;;  %v6932_v11 = vld [vmem:[%s9359_s4 + $0x5d8] sm:$0xff]  }
  0x7c   :  { %4572 = vmatpush3.bf16.msra.mxu0 %v5735_v12  ;;  %v6938_v12 = vld [vmem:[%s9359_s4 + $0x518] sm:$0xff]  }
  0x7d   :  { %4594 = vmatpush3.bf16.msra.mxu1 %v5736_v13  ;;  %4573 = vmatprep.subr.bf16.mxu0 %v5737_v14  ;;  %v6944_v13 = vld [vmem:[%s9359_s4 + $0x598] sm:$0xff]   ;;  %v6950_v14 = vld [vmem:[%s9359_s4 + $0x560] sm:$0xff]  }
  0x7e   :  { %4595 = vmatprep.subr.bf16.mxu1 %v5738_v15  ;;  %9512 = vst [vmem:[#allocation2_spill] sm:$0xff] %v6944_v13  ;;  %v6956_v15 = vld [vmem:[%s9359_s4 + $0x5e0] sm:$0xff]  }
  0x7f   :  { %9513 = vst [vmem:[#allocation3_spill] sm:$0xff] %v6956_v15 }
  0x80   :  { %4574 = vmatpush3.bf16.msra.mxu0 %v5739_v16  ;;  %v6962_v16 = vld [vmem:[%s9359_s4 + $0x520] sm:$0xff]  }
  0x81   :  { %4596 = vmatpush3.bf16.msra.mxu1 %v5740_v17  ;;  %4603 = vmatprep.subr.bf16.mxu0 %v5745_v23  ;;  %v6968_v17 = vld [vmem:[%s9359_s4 + $0x5a0] sm:$0xff]   ;;  %v7004_v23 = vld [vmem:[%s9359_s4 + $0x5f0] sm:$0xff]  }
  0x82   :  { %4625 = vmatprep.subr.bf16.mxu1 %v5746_v25  ;;  %9514 = vst [vmem:[#allocation4_spill] sm:$0xff] %v6968_v17  ;;  %9517 = vst [vmem:[#allocation7_spill] sm:$0xff] %v7004_v23  ;;  %v7016_v25 = vld [vmem:[%s9359_s4 + $0x5b0] sm:$0xff]  }
  0x83   :  { %1998 = vmatmul.mubr.bf16.vlgmr.msra.gmra.mrb[12].mxu0 %v4138_v20  ;;  %v6986_v20 = vld [vmem:[%s9359_s4 + $0x528] sm:$0xff]   ;;  %9518 = vst [vmem:[#allocation8_spill] sm:$0xff] %v7016_v25 }
  0x84   :  { %2038 = vmatmul.mubr.bf16.vlgmr.msra.gmra.mrb[12].mxu1 %v4140_v22  ;;  %4604 = vmatpush3.bf16.msra.mxu0 %v6693_v26  ;;  %v6998_v22 = vld [vmem:[%s9359_s4 + $0x570] sm:$0xff]  }
  0x85   :  { %4626 = vmatpush3.bf16.msra.mxu1 %v5748_v27  ;;  %4605 = vmatprep.subr.bf16.mxu0 %v6701_v28  ;;  %v7022_v27 = vld [vmem:[%s9359_s4 + $0x578] sm:$0xff]  }
  0x86   :  { %4627 = vmatprep.subr.bf16.mxu1 %v5750_v29  ;;  %2077 = vmatprep.mubr.bf16.mxu0 %v4143_v58  ;;  %v7028_v29 = vld [vmem:[%s9359_s4 + $0x5f8] sm:$0xff]   ;;  %v7052_v58 = vld [vmem:[%s9359_s4 + $0x600] sm:$0xff]  }
  0x87   :  { %2117 = vmatprep.mubr.bf16.mxu1 %v4145_v61  ;;  %9519 = vst [vmem:[#allocation9_spill] sm:$0xff] %v7028_v29  ;;  %v7066_v61 = vld [vmem:[%s9359_s4 + $0x608] sm:$0xff]  }
  0x88   :  { %4606 = vmatpush3.bf16.msra.mxu0 %v6711_v30 }
  0x89   :  { %4628 = vmatpush3.bf16.msra.mxu1 %v5752_v31  ;;  %4607 = vmatprep.subr.bf16.mxu0 %v6719_v32  ;;  %v7034_v31 = vld [vmem:[%s9359_s4 + $0x538] sm:$0xff]  }
  0x8a   :  { %4629 = vmatprep.subr.bf16.mxu1 %v5754_v33  ;;  %v7040_v33 = vld [vmem:[%s9359_s4 + $0x5b8] sm:$0xff]  }
  0x8b   :  { %9520 = vst [vmem:[#allocation10_spill] sm:$0xff] %v7040_v33 }
  0x8c   :  { %4608 = vmatpush3.bf16.msra.mxu0 %v6729_v34 }
  0x8d   :  { %4630 = vmatpush3.bf16.msra.mxu1 %v5756_v35  ;;  %4609 = vmatprep.subr.bf16.mxu0 %v6737_v36  ;;  %v434_v35 = vld [vmem:[%s9360_s0 + $0x50] sm:$0xff] }
  0x8e   :  { %4631 = vmatprep.subr.bf16.mxu1 %v5758_v37  ;;  %v435_v37 = vld [vmem:[%s9360_s0 + $0x58] sm:$0xff] }
  0x8f   :  { %v4148_v56 = vcombine.low %v435_v37, %v435_v37 }
  0x90   :  { %4610 = vmatpush3.bf16.msra.mxu0 %v6747_v38 }
  0x91   :  { %4632 = vmatpush3.bf16.msra.mxu1 %v5760_v39  ;;  %4611 = vmatprep.subr.bf16.mxu0 %v6755_v40  ;;  %v4146_v39 = vcombine.low %v434_v35, %v434_v35 }
  0x92   :  { %4633 = vmatprep.subr.bf16.mxu1 %v5762_v41  ;;  %v4147_v41 = vcombine.high %v434_v35, %v434_v35  ;;  %v7071_v35 = vld [vmem:[%s9359_s4] sm:$0xff]  }
  0x93   :  { %9522 = vst [vmem:[#allocation12_spill] sm:$0xff] %v7071_v35 }
  0x94   :  { %4612 = vmatpush3.bf16.msra.mxu0 %v6765_v42 }
  0x95   :  { %4634 = vmatpush3.bf16.msra.mxu1 %v6770_v43  ;;  %4613 = vmatprep.subr.bf16.mxu0 %v6775_v44 }
  0x96   :  { %4635 = vmatprep.subr.bf16.mxu1 %v6782_v45 }
  0x98   :  { %4614 = vmatpush3.bf16.msra.mxu0 %v6788_v46 }
  0x99   :  { %4636 = vmatpush3.bf16.msra.mxu1 %v6794_v47  ;;  %4615 = vmatprep.subr.bf16.mxu0 %v6799_v48 }
  0x9a   :  { %4637 = vmatprep.subr.bf16.mxu1 %v6806_v49 }
  0x9c   :  { %4616 = vmatpush3.bf16.msra.mxu0 %v6812_v50 }
  0x9d   :  { %4638 = vmatpush3.bf16.msra.mxu1 %v6818_v51  ;;  %4617 = vmatprep.subr.bf16.mxu0 %v6823_v52 }
  0x9e   :  { %4639 = vmatprep.subr.bf16.mxu1 %v6830_v53 }
  0xa0   :  { %4618 = vmatpush3.bf16.msra.mxu0 %v6836_v54 }
  0xa1   :  { %4640 = vmatpush3.bf16.msra.mxu1 %v6842_v55  ;;  %4647 = vmatprep.subr.bf16.mxu0 %v6855_v62 }
  0xa2   :  { %4669 = vmatprep.subr.bf16.mxu1 %v6860_v63 }
  0xa3   :  { %2078 = vmatmul.mubr.bf16.vlgmr.msra.gmra.mrb[16].mxu0 %v4142_v57  ;;  %v4149_v57 = vcombine.high %v435_v37, %v435_v37  ;;  %v7078_v37 = vld [vmem:[%s9359_s4 + $0x48] sm:$0xff]  }
  0xa4   :  { %2118 = vmatmul.mubr.bf16.vlgmr.msra.gmra.mrb[16].mxu1 %v4144_v60  ;;  %4648 = vmatpush3.bf16.msra.mxu0 %v6866_v0  ;;  %v7059_v60 = vld [vmem:[%s9359_s4 + $0x40] sm:$0xff]   ;;  %9523 = vst [vmem:[#allocation13_spill] sm:$0xff] %v7078_v37 }
  0xa5   :  { %4670 = vmatpush3.bf16.msra.mxu1 %v6872_v1  ;;  %4649 = vmatprep.subr.bf16.mxu0 %v6878_v2  ;;  %9521 = vst [vmem:[#allocation11_spill] sm:$0xff] %v7059_v60 }
  0xa6   :  { %4671 = vmatprep.subr.bf16.mxu1 %v6884_v3  ;;  %2157 = vmatprep.mubr.bf16.mxu0 %v4147_v41  ;;  %v2245_v41 = vld [vmem:[%s9361_s1] sm:$0xff] }
  0xa7   :  { %2197 = vmatprep.mubr.bf16.mxu1 %v4149_v57  ;;  %v4352_v57 = vcombine.high %v2245_v41, %v2245_v41 }
  0xa8   :  { %4650 = vmatpush3.bf16.msra.mxu0 %v6890_v4 }
  0xa9   :  { %4672 = vmatpush3.bf16.msra.mxu1 %v6896_v5  ;;  %4651 = vmatprep.subr.bf16.mxu0 %v6902_v6 }
  0xaa   :  { %4673 = vmatprep.subr.bf16.mxu1 %v6908_v7 }
  0xac   :  { %4652 = vmatpush3.bf16.msra.mxu0 %v6914_v8 }
  0xad   :  { %4674 = vmatpush3.bf16.msra.mxu1 %v6920_v9  ;;  %4653 = vmatprep.subr.bf16.mxu0 %v6926_v10 }
  0xae   :  { %4675 = vmatprep.subr.bf16.mxu1 %v6932_v11 }
  0xb0   :  { %4654 = vmatpush3.bf16.msra.mxu0 %v6938_v12 }
  0xb1   :  { %4676 = vmatpush3.bf16.msra.mxu1 %v6944_v13  ;;  %4655 = vmatprep.subr.bf16.mxu0 %v6950_v14 }
  0xb2   :  { %4677 = vmatprep.subr.bf16.mxu1 %v6956_v15  ;;  %v7353_v15 = vld [vmem:[%s9359_s4 + $0x168] sm:$0xff]  }
  0xb3   :  { %9564 = vst [vmem:[#allocation53_spill] sm:$0xff] %v7353_v15 }
  0xb4   :  { %4656 = vmatpush3.bf16.msra.mxu0 %v6962_v16 }
  0xb5   :  { %4678 = vmatpush3.bf16.msra.mxu1 %v6968_v17  ;;  %4657 = vmatprep.subr.bf16.mxu0 %v6974_v18 }
  0xb6   :  { %4679 = vmatprep.subr.bf16.mxu1 %v6980_v19 }
  0xb8   :  { %4658 = vmatpush3.bf16.msra.mxu0 %v6986_v20 }
  0xb9   :  { %4680 = vmatpush3.bf16.msra.mxu1 %v6992_v21  ;;  %4659 = vmatprep.subr.bf16.mxu0 %v6998_v22  ;;  %v7239_v21 = vld [vmem:[%s9359_s4 + $0x80] sm:$0xff]  }
  0xba   :  { %4681 = vmatprep.subr.bf16.mxu1 %v7004_v23  ;;  %v7212_v23 = vld [vmem:[%s9361_s1 + $0x10] sm:$0xff]  ;;  %9545 = vst [vmem:[#allocation34_spill] sm:$0xff] %v7239_v21 }
  0xbc   :  { %4660 = vmatpush3.bf16.msra.mxu0 %v7010_v24 }
  0xbd   :  { %4682 = vmatpush3.bf16.msra.mxu1 %v7016_v25  ;;  %4661 = vmatprep.subr.bf16.mxu0 %v7022_v27  ;;  %v7206_v25 = vld [vmem:[%s9361_s1 + $0x8] sm:$0xff] }
  0xbe   :  { %4683 = vmatprep.subr.bf16.mxu1 %v7028_v29  ;;  %v7185_v29 = vld [vmem:[%s9359_s4 + $0x638] sm:$0xff]  }
  0xbf   :  { %9539 = vst [vmem:[#allocation28_spill] sm:$0xff] %v7185_v29 }
  0xc0   :  { %4662 = vmatpush3.bf16.msra.mxu0 %v7034_v31 }
  0xc1   :  { %4684 = vmatpush3.bf16.msra.mxu1 %v7040_v33  ;;  %5519 = vmatprep.subr.bf16.mxu0 %v9368_v59  ;;  %v7166_v33 = vld [vmem:[%s9359_s4 + $0x630] sm:$0xff]  }
  0xc2   :  { %4700 = vmatprep.subr.bf16.mxu1 %v7059_v60  ;;  %v7147_v60 = vld [vmem:[%s9359_s4 + $0x628] sm:$0xff]   ;;  %9536 = vst [vmem:[#allocation25_spill] sm:$0xff] %v7166_v33 }
  0xc3   :  { %2158 = vmatmul.mubr.bf16.vlgmr.msra.gmra.mrb[20].mxu0 %v4146_v39  ;;  %v7087_v39 = vld [vmem:[%s9359_s4 + $0x610] sm:$0xff]   ;;  %9533 = vst [vmem:[#allocation22_spill] sm:$0xff] %v7147_v60 }
  0xc4   :  { %2198 = vmatmul.mubr.bf16.vlgmr.msra.gmra.mrb[20].mxu1 %v4148_v56  ;;  %5520 = vmatpush3.bf16.msra.mxu0 %v7052_v58  ;;  %v7095_v56 = vld [vmem:[%s9359_s4 + $0x8] sm:$0xff]  }
  0xc5   :  { %4701 = vmatpush3.bf16.msra.mxu1 %v7071_v35  ;;  %5521 = vmatprep.subr.bf16.mxu0 %v9368_v59  ;;  %9524 = vst [vmem:[#allocation14_spill] sm:$0xff] %v7095_v56  ;;  %v7109_v35 = vld [vmem:[%s9359_s4 + $0x618] sm:$0xff]  }
  0xc6   :  { %4702 = vmatprep.subr.bf16.mxu1 %v7078_v37  ;;  %5535 = vmatprep.mubr.msk.bf16.mxu0 %vm6240_vm0, %v9368_v59  ;;  %v7102_v37 = vld [vmem:[%s9359_s4 + $0x50] sm:$0xff]   ;;  %9526 = vst [vmem:[#allocation16_spill] sm:$0xff] %v7109_v35 }
  0xc7   :  { %9525 = vst [vmem:[#allocation15_spill] sm:$0xff] %v7102_v37  ;;  %2378 = vmatprep.mubr.bf16.mxu1 %v4352_v57  ;;  %v7121_v57 = vld [vmem:[%s9359_s4 + $0x58] sm:$0xff]  }
  0xc8   :  { %5522 = vmatpush3.bf16.msra.mxu0 %v7066_v61  ;;  %9529 = vst [vmem:[#allocation18_spill] sm:$0xff] %v7121_v57 }
  0xc9   :  { %4703 = vmatpush3.bf16.msra.mxu1 %v7095_v56  ;;  %5523 = vmatprep.subr.bf16.mxu0 %v9368_v59  ;;  %v7114_v59 = vld [vmem:[%s9359_s4 + $0x10] sm:$0xff]   ;;  %v9528_v56 = vmov 0.0  }
  0xca   :  { %4704 = vmatprep.subr.bf16.mxu1 %v7102_v37  ;;  %9527 = vst [vmem:[#allocation17_spill] sm:$0xff] %v7114_v59  ;;  %v7128_v37 = vld [vmem:[%s9359_s4 + $0x620] sm:$0xff]  }
  0xcb   :  { %9530 = vst [vmem:[#allocation19_spill] sm:$0xff] %v7128_v37 }
  0xcc   :  { %5524 = vmatpush3.bf16.msra.mxu0 %v7087_v39 }
  0xcd   :  { %4705 = vmatpush3.bf16.msra.mxu1 %v7114_v59  ;;  %5525 = vmatprep.subr.bf16.mxu0 %v9528_v56  ;;  %v7133_v59 = vld [vmem:[%s9359_s4 + $0x18] sm:$0xff]  }
  0xce   :  { %4706 = vmatprep.subr.bf16.mxu1 %v7121_v57  ;;  %9531 = vst [vmem:[#allocation20_spill] sm:$0xff] %v7133_v59  ;;  %v7140_v57 = vld [vmem:[%s9359_s4 + $0x60] sm:$0xff]  }
  0xcf   :  { %9532 = vst [vmem:[#allocation21_spill] sm:$0xff] %v7140_v57 }
  0xd0   :  { %5526 = vmatpush3.bf16.msra.mxu0 %v7109_v35 }
  0xd1   :  { %4707 = vmatpush3.bf16.msra.mxu1 %v7133_v59  ;;  %5527 = vmatprep.subr.bf16.mxu0 %v9528_v56  ;;  %v7152_v59 = vld [vmem:[%s9359_s4 + $0x20] sm:$0xff]  }
  0xd2   :  { %4708 = vmatprep.subr.bf16.mxu1 %v7140_v57  ;;  %9534 = vst [vmem:[#allocation23_spill] sm:$0xff] %v7152_v59  ;;  %v7159_v57 = vld [vmem:[%s9359_s4 + $0x68] sm:$0xff]  }
  0xd3   :  { %9535 = vst [vmem:[#allocation24_spill] sm:$0xff] %v7159_v57 }
  0xd4   :  { %5528 = vmatpush3.bf16.msra.mxu0 %v7128_v37  ;;  %v7347_v37 = vld [vmem:[%s9359_s4 + $0xe8] sm:$0xff]  }
  0xd5   :  { %4709 = vmatpush3.bf16.msra.mxu1 %v7152_v59  ;;  %5529 = vmatprep.subr.bf16.mxu0 %v9528_v56  ;;  %v7171_v59 = vld [vmem:[%s9359_s4 + $0x28] sm:$0xff]   ;;  %9563 = vst [vmem:[#allocation52_spill] sm:$0xff] %v7347_v37 }
  0xd6   :  { %4710 = vmatprep.subr.bf16.mxu1 %v7159_v57  ;;  %9537 = vst [vmem:[#allocation26_spill] sm:$0xff] %v7171_v59  ;;  %v7178_v57 = vld [vmem:[%s9359_s4 + $0x70] sm:$0xff]  }
  0xd7   :  { %9538 = vst [vmem:[#allocation27_spill] sm:$0xff] %v7178_v57 }
  0xd8   :  { %5530 = vmatpush3.bf16.msra.mxu0 %v7147_v60  ;;  %v7223_v60 = vld [vmem:[%s9359_s4 + $0xc0] sm:$0xff]  }
  0xd9   :  { %4711 = vmatpush3.bf16.msra.mxu1 %v7171_v59  ;;  %5531 = vmatprep.subr.bf16.mxu0 %v9528_v56  ;;  %v7190_v59 = vld [vmem:[%s9359_s4 + $0x30] sm:$0xff]   ;;  %9543 = vst [vmem:[#allocation32_spill] sm:$0xff] %v7223_v60 }
  0xda   :  { %4712 = vmatprep.subr.bf16.mxu1 %v7178_v57  ;;  %9540 = vst [vmem:[#allocation29_spill] sm:$0xff] %v7190_v59  ;;  %v7197_v57 = vld [vmem:[%s9359_s4 + $0x78] sm:$0xff]  }
  0xdb   :  { %9541 = vst [vmem:[#allocation30_spill] sm:$0xff] %v7197_v57 }
  0xdc   :  { %5532 = vmatpush3.bf16.msra.mxu0 %v7166_v33  ;;  %v5825_v33 = vld [vmem:[%s9360_s0 + $0x60] ss:$0 sps:$4 sm:$0xff]  }
  0xdd   :  { %4713 = vmatpush3.bf16.msra.mxu1 %v7190_v59  ;;  %5533 = vmatprep.subr.bf16.mxu0 %v9528_v56  ;;  %v4351_v59 = vcombine.low %v2245_v41, %v2245_v41  ;;  %v7229_v41 = vld [vmem:[%s9359_s4 + $0x140] sm:$0xff]  }
  0xde   :  { %4714 = vmatprep.subr.bf16.mxu1 %v7197_v57  ;;  %v7217_v57 = vld [vmem:[%s9359_s4 + $0x38] sm:$0xff]   ;;  %9544 = vst [vmem:[#allocation33_spill] sm:$0xff] %v7229_v41 }
  0xdf   :  { %9542 = vst [vmem:[#allocation31_spill] sm:$0xff] %v7217_v57 }
  0xe0   :  { %5534 = vmatpush3.bf16.msra.mxu0 %v7185_v29  ;;  %v4354_v29 = vcombine.high %v7206_v25, %v7206_v25 }
  0xe1   :  { %4715 = vmatpush3.bf16.msra.mxu1 %v7217_v57  ;;  %4722 = vmatprep.subr.bf16.mxu0 %v7223_v60  ;;  %v4356_v57 = vcombine.high %v7212_v23, %v7212_v23  ;;  %v7245_v60 = vld [vmem:[%s9359_s4 + $0x100] sm:$0xff]  }
  0xe2   :  { %4744 = vmatprep.subr.bf16.mxu1 %v7229_v41  ;;  %9546 = vst [vmem:[#allocation35_spill] sm:$0xff] %v7245_v60  ;;  %v7269_v41 = vld [vmem:[%s9359_s4 + $0x108] sm:$0xff]  }
  0xe3   :  { %5536 = vmatmul.mubr.bf16.vlgmr.msra.gmra.mrb[24].mxu0 %v5825_v33  ;;  %v7251_v33 = vld [vmem:[%s9359_s4 + $0xc8] sm:$0xff]   ;;  %9550 = vst [vmem:[#allocation39_spill] sm:$0xff] %v7269_v41 }
  0xe4   :  { %2379 = vmatmul.mubr.bf16.vlgmr.msra.gmra.mrb[24].mxu1 %v4351_v59  ;;  %4723 = vmatpush3.bf16.msra.mxu0 %v7239_v21  ;;  %9547 = vst [vmem:[#allocation36_spill] sm:$0xff] %v7251_v33  ;;  %v7257_v59 = vld [vmem:[%s9359_s4 + $0x148] sm:$0xff]  }
  0xe5   :  { %4745 = vmatpush3.bf16.msra.mxu1 %v7245_v60  ;;  %4724 = vmatprep.subr.bf16.mxu0 %v7251_v33  ;;  %9548 = vst [vmem:[#allocation37_spill] sm:$0xff] %v7257_v59  ;;  %v7263_v60 = vld [vmem:[%s9359_s4 + $0x88] sm:$0xff]  }
  0xe6   :  { %4746 = vmatprep.subr.bf16.mxu1 %v7257_v59  ;;  %2418 = vmatprep.mubr.bf16.mxu0 %v4354_v29  ;;  %9549 = vst [vmem:[#allocation38_spill] sm:$0xff] %v7263_v60  ;;  %v7275_v59 = vld [vmem:[%s9359_s4 + $0xd0] sm:$0xff]  }
  0xe7   :  { %2458 = vmatprep.mubr.bf16.mxu1 %v4356_v57  ;;  %9551 = vst [vmem:[#allocation40_spill] sm:$0xff] %v7275_v59  ;;  %v7281_v29 = vld [vmem:[%s9359_s4 + $0x150] sm:$0xff]  }
  0xe8   :  { %4725 = vmatpush3.bf16.msra.mxu0 %v7263_v60  ;;  %9552 = vst [vmem:[#allocation41_spill] sm:$0xff] %v7281_v29  ;;  %v7287_v57 = vld [vmem:[%s9359_s4 + $0x90] sm:$0xff]  }
  0xe9   :  { %4747 = vmatpush3.bf16.msra.mxu1 %v7269_v41  ;;  %4726 = vmatprep.subr.bf16.mxu0 %v7275_v59  ;;  %9553 = vst [vmem:[#allocation42_spill] sm:$0xff] %v7287_v57  ;;  %v7293_v41 = vld [vmem:[%s9359_s4 + $0x110] sm:$0xff]   ;;  %v7299_v59 = vld [vmem:[%s9359_s4 + $0xd8] sm:$0xff]  }
  0xea   :  { %4748 = vmatprep.subr.bf16.mxu1 %v7281_v29  ;;  %9554 = vst [vmem:[#allocation43_spill] sm:$0xff] %v7293_v41  ;;  %9555 = vst [vmem:[#allocation44_spill] sm:$0xff] %v7299_v59  ;;  %v7305_v29 = vld [vmem:[%s9359_s4 + $0x158] sm:$0xff]  }
  0xeb   :  { %9556 = vst [vmem:[#allocation45_spill] sm:$0xff] %v7305_v29 }
  0xec   :  { %4727 = vmatpush3.bf16.msra.mxu0 %v7287_v57  ;;  %v7311_v57 = vld [vmem:[%s9359_s4 + $0x98] sm:$0xff]  }
  0xed   :  { %4749 = vmatpush3.bf16.msra.mxu1 %v7293_v41  ;;  %4728 = vmatprep.subr.bf16.mxu0 %v7299_v59  ;;  %9557 = vst [vmem:[#allocation46_spill] sm:$0xff] %v7311_v57  ;;  %v7317_v41 = vld [vmem:[%s9359_s4 + $0x118] sm:$0xff]   ;;  %v7323_v59 = vld [vmem:[%s9359_s4 + $0xe0] sm:$0xff]  }
  0xee   :  { %4750 = vmatprep.subr.bf16.mxu1 %v7305_v29  ;;  %9558 = vst [vmem:[#allocation47_spill] sm:$0xff] %v7317_v41  ;;  %9559 = vst [vmem:[#allocation48_spill] sm:$0xff] %v7323_v59  ;;  %v7329_v29 = vld [vmem:[%s9359_s4 + $0x160] sm:$0xff]  }
  0xef   :  { %9560 = vst [vmem:[#allocation49_spill] sm:$0xff] %v7329_v29 }
  0xf0   :  { %4729 = vmatpush3.bf16.msra.mxu0 %v7311_v57 }
  0xf1   :  { %4751 = vmatpush3.bf16.msra.mxu1 %v7317_v41  ;;  %4730 = vmatprep.subr.bf16.mxu0 %v7323_v59  ;;  %v7335_v41 = vld [vmem:[%s9359_s4 + $0xa0] sm:$0xff]  }
  0xf2   :  { %4752 = vmatprep.subr.bf16.mxu1 %v7329_v29  ;;  %9561 = vst [vmem:[#allocation50_spill] sm:$0xff] %v7335_v41  ;;  %v7341_v59 = vld [vmem:[%s9359_s4 + $0x120] sm:$0xff]  }
  0xf3   :  { %9562 = vst [vmem:[#allocation51_spill] sm:$0xff] %v7341_v59 }
  0xf4   :  { %4731 = vmatpush3.bf16.msra.mxu0 %v7335_v41 }
  0xf5   :  { %4753 = vmatpush3.bf16.msra.mxu1 %v7341_v59  ;;  %4732 = vmatprep.subr.bf16.mxu0 %v7347_v37 }
  0xf6   :  { %v4443_v57 = vpop.f32.mrb[0].mxu0  ;;  %4754 = vmatprep.subr.bf16.mxu1 %v7353_v15  ;;  %v7435_v15 = vld [vmem:[%s9359_s4 + $0x1c0] sm:$0xff]  }
  0xf7   :  { %v4465_v60 = vpop.f32.mrb[0].mxu1  ;;  %v4444_v33 = vpop.f32.mrb[1].mxu0  ;;  %9575 = vst [vmem:[#allocation64_spill] sm:$0xff] %v7435_v15 }
  0xf8   :  { %v4466_v21 = vpop.f32.mrb[1].mxu1  ;;  %v4445_v19 = vadd.f32 %v4444_v33, %v4443_v57  ;;  %v4446_v17 = vpop.f32.mrb[2].mxu0  ;;  %v4353_v57 = vcombine.low %v7206_v25, %v7206_v25  ;;  %v7429_v25 = vld [vmem:[%s9359_s4 + $0x138] sm:$0xff]  }
  0xf9   :  { %v4467_v29 = vadd.f32 %v4466_v21, %v4465_v60  ;;  %v4468_v41 = vpop.f32.mrb[2].mxu1  ;;  %v4447_v35 = vpop.f32.mrb[3].mxu0  ;;  %v7361_v21 = vld [vmem:[%s9359_s4 + $0xa8] sm:$0xff]   ;;  %v7373_v60 = vld [vmem:[%s9359_s4 + $0xf0] sm:$0xff]   ;;  %9574 = vst [vmem:[#allocation63_spill] sm:$0xff] %v7429_v25 }
  0xfa   :  { %v4469_v59 = vpop.f32.mrb[3].mxu1  ;;  %9565 = vst [vmem:[#allocation54_spill] sm:$0xff] %v7361_v21  ;;  %4733 = vmatpush3.bf16.msra.mxu0 %v7361_v21  ;;  %v7367_v17 = vld [vmem:[%s9359_s4 + $0x128] sm:$0xff]   ;;  %9567 = vst [vmem:[#allocation56_spill] sm:$0xff] %v7373_v60  ;;  %v7385_v35 = vld [vmem:[%s9359_s4 + $0xb0] sm:$0xff]  }
  0xfb   :  { %v7356_v33 = vadd.f32 %v4467_v29, %v4445_v19  ;;  %9566 = vst [vmem:[#allocation55_spill] sm:$0xff] %v7367_v17  ;;  %4755 = vmatpush3.bf16.msra.mxu1 %v7367_v17  ;;  %4734 = vmatprep.subr.bf16.mxu0 %v7373_v60  ;;  %v7379_v19 = vld [vmem:[%s9359_s4 + $0x170] sm:$0xff]   ;;  %9569 = vst [vmem:[#allocation58_spill] sm:$0xff] %v7385_v35  ;;  %v7397_v59 = vld [vmem:[%s9359_s4 + $0xf8] sm:$0xff]   ;;  %v4355_v17 = vcombine.low %v7212_v23, %v7212_v23 }
  0xfc   :  { %9568 = vst [vmem:[#allocation57_spill] sm:$0xff] %v7379_v19  ;;  %4756 = vmatprep.subr.bf16.mxu1 %v7379_v19  ;;  %v7391_v41 = vld [vmem:[%s9359_s4 + $0x130] sm:$0xff]   ;;  %9571 = vst [vmem:[#allocation60_spill] sm:$0xff] %v7397_v59  ;;  %v7403_v29 = vld [vmem:[%s9359_s4 + $0x178] sm:$0xff]  }
  0xfd   :  { %9570 = vst [vmem:[#allocation59_spill] sm:$0xff] %v7391_v41  ;;  %9572 = vst [vmem:[#allocation61_spill] sm:$0xff] %v7403_v29  ;;  %v7416_v19 = vld [vmem:[%s9359_s4 + $0xb8] sm:$0xff]   ;;  %v7441_v23 = vld [vmem:[%s9359_s4 + $0x240] sm:$0xff]  }
  0xfe   :  { %4735 = vmatpush3.bf16.msra.mxu0 %v7385_v35  ;;  %9573 = vst [vmem:[#allocation62_spill] sm:$0xff] %v7416_v19  ;;  %9576 = vst [vmem:[#allocation65_spill] sm:$0xff] %v7441_v23 }
  0xff   :  { %4757 = vmatpush3.bf16.msra.mxu1 %v7391_v41  ;;  %4736 = vmatprep.subr.bf16.mxu0 %v7397_v59  ;;  %v7411_v41 = vld [vmem:[%s9361_s1 + $0x18] sm:$0xff]  ;;  %v7451_v59 = vld [vmem:[%s9359_s4 + $0x180] sm:$0xff]  }
 0x100   :  { %4758 = vmatprep.subr.bf16.mxu1 %v7403_v29  ;;  %v7424_v29 = vld [vmem:[%s9361_s1 + $0x20] sm:$0xff]  ;;  %9577 = vst [vmem:[#allocation66_spill] sm:$0xff] %v7451_v59 }
 0x102   :  { %4737 = vmatpush3.bf16.msra.mxu0 %v7416_v19  ;;  %v4358_v19 = vcombine.high %v7411_v41, %v7411_v41 }
 0x103   :  { %4759 = vmatpush3.bf16.msra.mxu1 %v7429_v25  ;;  %4766 = vmatprep.subr.bf16.mxu0 %v7435_v15  ;;  %v4360_v25 = vcombine.high %v7424_v29, %v7424_v29  ;;  %v7457_v15 = vld [vmem:[%s9359_s4 + $0x200] sm:$0xff]  }
 0x104   :  { %4788 = vmatprep.subr.bf16.mxu1 %v7441_v23  ;;  %9578 = vst [vmem:[#allocation67_spill] sm:$0xff] %v7457_v15  ;;  %v7481_v23 = vld [vmem:[%s9359_s4 + $0x208] sm:$0xff]  }
 0x105   :  { %2419 = vmatmul.mubr.bf16.vlgmr.msra.gmra.mrb[28].mxu0 %v4353_v57  ;;  %v7463_v57 = vld [vmem:[%s9359_s4 + $0x1c8] sm:$0xff]   ;;  %9582 = vst [vmem:[#allocation71_spill] sm:$0xff] %v7481_v23 }
 0x106   :  { %2459 = vmatmul.mubr.bf16.vlgmr.msra.gmra.mrb[28].mxu1 %v4355_v17  ;;  %4767 = vmatpush3.bf16.msra.mxu0 %v7451_v59  ;;  %9579 = vst [vmem:[#allocation68_spill] sm:$0xff] %v7463_v57  ;;  %v7469_v17 = vld [vmem:[%s9359_s4 + $0x248] sm:$0xff]  }
 0x107   :  { %4789 = vmatpush3.bf16.msra.mxu1 %v7457_v15  ;;  %4768 = vmatprep.subr.bf16.mxu0 %v7463_v57  ;;  %9580 = vst [vmem:[#allocation69_spill] sm:$0xff] %v7469_v17  ;;  %v7475_v15 = vld [vmem:[%s9359_s4 + $0x188] sm:$0xff]  }
 0x108   :  { %4790 = vmatprep.subr.bf16.mxu1 %v7469_v17  ;;  %2498 = vmatprep.mubr.bf16.mxu0 %v4358_v19  ;;  %9581 = vst [vmem:[#allocation70_spill] sm:$0xff] %v7475_v15  ;;  %v7487_v17 = vld [vmem:[%s9359_s4 + $0x1d0] sm:$0xff]  }
 0x109   :  { %2538 = vmatprep.mubr.bf16.mxu1 %v4360_v25  ;;  %9583 = vst [vmem:[#allocation72_spill] sm:$0xff] %v7487_v17  ;;  %v7493_v19 = vld [vmem:[%s9359_s4 + $0x250] sm:$0xff]  }
 0x10a   :  { %4769 = vmatpush3.bf16.msra.mxu0 %v7475_v15  ;;  %9584 = vst [vmem:[#allocation73_spill] sm:$0xff] %v7493_v19  ;;  %v7499_v25 = vld [vmem:[%s9359_s4 + $0x190] sm:$0xff]   ;;  %v7553_v15 = vld [vmem:[%s9359_s4 + $0x220] sm:$0xff]  }
 0x10b   :  { %4791 = vmatpush3.bf16.msra.mxu1 %v7481_v23  ;;  %4770 = vmatprep.subr.bf16.mxu0 %v7487_v17  ;;  %9585 = vst [vmem:[#allocation74_spill] sm:$0xff] %v7499_v25  ;;  %v7505_v23 = vld [vmem:[%s9359_s4 + $0x210] sm:$0xff]   ;;  %v7511_v17 = vld [vmem:[%s9359_s4 + $0x1d8] sm:$0xff]   ;;  %9594 = vst [vmem:[#allocation83_spill] sm:$0xff] %v7553_v15 }
 0x10c   :  { %4792 = vmatprep.subr.bf16.mxu1 %v7493_v19  ;;  %9586 = vst [vmem:[#allocation75_spill] sm:$0xff] %v7505_v23  ;;  %9587 = vst [vmem:[#allocation76_spill] sm:$0xff] %v7511_v17  ;;  %v7517_v19 = vld [vmem:[%s9359_s4 + $0x258] sm:$0xff]  }
 0x10d   :  { %9588 = vst [vmem:[#allocation77_spill] sm:$0xff] %v7517_v19 }
 0x10e   :  { %4771 = vmatpush3.bf16.msra.mxu0 %v7499_v25  ;;  %v7523_v25 = vld [vmem:[%s9359_s4 + $0x198] sm:$0xff]  }
 0x10f   :  { %4793 = vmatpush3.bf16.msra.mxu1 %v7505_v23  ;;  %4772 = vmatprep.subr.bf16.mxu0 %v7511_v17  ;;  %9589 = vst [vmem:[#allocation78_spill] sm:$0xff] %v7523_v25  ;;  %v7529_v23 = vld [vmem:[%s9359_s4 + $0x218] sm:$0xff]   ;;  %v7535_v17 = vld [vmem:[%s9359_s4 + $0x1e0] sm:$0xff]  }
 0x110   :  { %4794 = vmatprep.subr.bf16.mxu1 %v7517_v19  ;;  %9590 = vst [vmem:[#allocation79_spill] sm:$0xff] %v7529_v23  ;;  %9591 = vst [vmem:[#allocation80_spill] sm:$0xff] %v7535_v17  ;;  %v7541_v19 = vld [vmem:[%s9359_s4 + $0x260] sm:$0xff]  }
 0x111   :  { %9592 = vst [vmem:[#allocation81_spill] sm:$0xff] %v7541_v19 }
 0x112   :  { %4773 = vmatpush3.bf16.msra.mxu0 %v7523_v25  ;;  %v7547_v25 = vld [vmem:[%s9359_s4 + $0x1a0] sm:$0xff]  }
 0x113   :  { %4795 = vmatpush3.bf16.msra.mxu1 %v7529_v23  ;;  %4774 = vmatprep.subr.bf16.mxu0 %v7535_v17  ;;  %9593 = vst [vmem:[#allocation82_spill] sm:$0xff] %v7547_v25 }
 0x114   :  { %4796 = vmatprep.subr.bf16.mxu1 %v7541_v19  ;;  %v7559_v19 = vld [vmem:[%s9359_s4 + $0x1e8] sm:$0xff]  }
 0x115   :  { %9595 = vst [vmem:[#allocation84_spill] sm:$0xff] %v7559_v19 }
 0x116   :  { %4775 = vmatpush3.bf16.msra.mxu0 %v7547_v25  ;;  %v4487_v23 = vpop.f32.mrb[4].mxu0  ;;  %v7565_v25 = vld [vmem:[%s9359_s4 + $0x268] sm:$0xff]  }
 0x117   :  { %4797 = vmatpush3.bf16.msra.mxu1 %v7553_v15  ;;  %v4488_v17 = vpop.f32.mrb[5].mxu0  ;;  %4776 = vmatprep.subr.bf16.mxu0 %v7559_v19  ;;  %v4509_v57 = vpop.f32.mrb[4].mxu1  ;;  %9596 = vst [vmem:[#allocation85_spill] sm:$0xff] %v7565_v25  ;;  %v7572_v19 = vld [vmem:[%s9359_s4 + $0x1a8] sm:$0xff]  }
 0x118   :  { %v4489_v59 = vadd.f32 %v4488_v17, %v4487_v23  ;;  %4798 = vmatprep.subr.bf16.mxu1 %v7565_v25  ;;  %v4490_v35 = vpop.f32.mrb[6].mxu0  ;;  %v4510_v60 = vpop.f32.mrb[5].mxu1  ;;  %9597 = vst [vmem:[#allocation86_spill] sm:$0xff] %v7572_v19  ;;  %v7578_v17 = vld [vmem:[%s9359_s4 + $0x228] sm:$0xff]   ;;  %v7664_v25 = vld [vmem:[%s9359_s4 + $0x280] sm:$0xff]  }
 0x119   :  { %v4491_v15 = vpop.f32.mrb[7].mxu0  ;;  %v4511_v21 = vadd.f32 %v4510_v60, %v4509_v57  ;;  %v4512_v37 = vpop.f32.mrb[6].mxu1  ;;  %9598 = vst [vmem:[#allocation87_spill] sm:$0xff] %v7578_v17  ;;  %v7598_v60 = vld [vmem:[%s9359_s4 + $0x1b0] sm:$0xff]   ;;  %v7624_v57 = vld [vmem:[%s9361_s1 + $0x28] sm:$0xff]  ;;  %9609 = vst [vmem:[#allocation98_spill] sm:$0xff] %v7664_v25 }
 0x11a   :  { %v1840_v13 = vadd.f32 %v4489_v59, %v7356_v33  ;;  %4777 = vmatpush3.bf16.msra.mxu0 %v7572_v19  ;;  %v4513_v23 = vpop.f32.mrb[7].mxu1  ;;  %v7584_v15 = vld [vmem:[%s9359_s4 + $0x1f0] sm:$0xff]   ;;  %9601 = vst [vmem:[#allocation90_spill] sm:$0xff] %v7598_v60  ;;  %v4357_v59 = vcombine.low %v7411_v41, %v7411_v41  ;;  %v7642_v41 = vld [vmem:[%s9359_s4 + $0x238] sm:$0xff]  }
 0x11b   :  { %4799 = vmatpush3.bf16.msra.mxu1 %v7578_v17  ;;  %9599 = vst [vmem:[#allocation88_spill] sm:$0xff] %v7584_v15  ;;  %4778 = vmatprep.subr.bf16.mxu0 %v7584_v15  ;;  %v7592_v33 = vld [vmem:[%s9359_s4 + $0x270] sm:$0xff]   ;;  %v7629_v23 = vld [vmem:[%s9359_s4 + $0x1b8] sm:$0xff]   ;;  %9606 = vst [vmem:[#allocation95_spill] sm:$0xff] %v7642_v41  ;;  %v4362_v17 = vcombine.high %v7624_v57, %v7624_v57 }
 0x11c   :  { %v7587_v37 = vadd.f32 %v4511_v21, %v1840_v13  ;;  %9600 = vst [vmem:[#allocation89_spill] sm:$0xff] %v7592_v33  ;;  %4800 = vmatprep.subr.bf16.mxu1 %v7592_v33  ;;  %v7604_v35 = vld [vmem:[%s9359_s4 + $0x230] sm:$0xff]   ;;  %v7610_v13 = vld [vmem:[%s9359_s4 + $0x1f8] sm:$0xff]   ;;  %9605 = vst [vmem:[#allocation94_spill] sm:$0xff] %v7629_v23 }
 0x11d   :  { %9602 = vst [vmem:[#allocation91_spill] sm:$0xff] %v7604_v35  ;;  %9603 = vst [vmem:[#allocation92_spill] sm:$0xff] %v7610_v13  ;;  %v7616_v21 = vld [vmem:[%s9359_s4 + $0x278] sm:$0xff]   ;;  %v7648_v33 = vld [vmem:[%s9359_s4 + $0x2c0] sm:$0xff]  }
 0x11e   :  { %4779 = vmatpush3.bf16.msra.mxu0 %v7598_v60  ;;  %9604 = vst [vmem:[#allocation93_spill] sm:$0xff] %v7616_v21  ;;  %9607 = vst [vmem:[#allocation96_spill] sm:$0xff] %v7648_v33 }
 0x11f   :  { %4801 = vmatpush3.bf16.msra.mxu1 %v7604_v35  ;;  %4780 = vmatprep.subr.bf16.mxu0 %v7610_v13  ;;  %v4359_v35 = vcombine.low %v7424_v29, %v7424_v29  ;;  %v7654_v29 = vld [vmem:[%s9359_s4 + $0x340] sm:$0xff]  }
 0x120   :  { %4802 = vmatprep.subr.bf16.mxu1 %v7616_v21  ;;  %v7637_v21 = vld [vmem:[%s9361_s1 + $0x30] sm:$0xff]  ;;  %9608 = vst [vmem:[#allocation97_spill] sm:$0xff] %v7654_v29 }
 0x122   :  { %4781 = vmatpush3.bf16.msra.mxu0 %v7629_v23 }
 0x123   :  { %4803 = vmatpush3.bf16.msra.mxu1 %v7642_v41  ;;  %4810 = vmatprep.subr.bf16.mxu0 %v7648_v33  ;;  %v4364_v41 = vcombine.high %v7637_v21, %v7637_v21  ;;  %v7670_v33 = vld [vmem:[%s9359_s4 + $0x300] sm:$0xff]  }
 0x124   :  { %4832 = vmatprep.subr.bf16.mxu1 %v7654_v29  ;;  %9610 = vst [vmem:[#allocation99_spill] sm:$0xff] %v7670_v33  ;;  %v7694_v29 = vld [vmem:[%s9359_s4 + $0x308] sm:$0xff]  }
 0x125   :  { %2499 = vmatmul.mubr.bf16.vlgmr.msra.gmra.mrb[32].mxu0 %v4357_v59  ;;  %v7676_v59 = vld [vmem:[%s9359_s4 + $0x2c8] sm:$0xff]   ;;  %9614 = vst [vmem:[#allocation103_spill] sm:$0xff] %v7694_v29 }
 0x126   :  { %2539 = vmatmul.mubr.bf16.vlgmr.msra.gmra.mrb[32].mxu1 %v4359_v35  ;;  %4811 = vmatpush3.bf16.msra.mxu0 %v7664_v25  ;;  %9611 = vst [vmem:[#allocation100_spill] sm:$0xff] %v7676_v59  ;;  %v7682_v35 = vld [vmem:[%s9359_s4 + $0x348] sm:$0xff]  }
 0x127   :  { %4833 = vmatpush3.bf16.msra.mxu1 %v7670_v33  ;;  %4812 = vmatprep.subr.bf16.mxu0 %v7676_v59  ;;  %9612 = vst [vmem:[#allocation101_spill] sm:$0xff] %v7682_v35  ;;  %v7688_v33 = vld [vmem:[%s9359_s4 + $0x288] sm:$0xff]  }
 0x128   :  { %4834 = vmatprep.subr.bf16.mxu1 %v7682_v35  ;;  %2578 = vmatprep.mubr.bf16.mxu0 %v4362_v17  ;;  %9613 = vst [vmem:[#allocation102_spill] sm:$0xff] %v7688_v33  ;;  %v7700_v35 = vld [vmem:[%s9359_s4 + $0x2d0] sm:$0xff]  }
 0x129   :  { %2618 = vmatprep.mubr.bf16.mxu1 %v4364_v41  ;;  %9615 = vst [vmem:[#allocation104_spill] sm:$0xff] %v7700_v35  ;;  %v7706_v17 = vld [vmem:[%s9359_s4 + $0x350] sm:$0xff]  }
 0x12a   :  { %4813 = vmatpush3.bf16.msra.mxu0 %v7688_v33  ;;  %9616 = vst [vmem:[#allocation105_spill] sm:$0xff] %v7706_v17  ;;  %v7712_v41 = vld [vmem:[%s9359_s4 + $0x290] sm:$0xff]   ;;  %v7766_v33 = vld [vmem:[%s9359_s4 + $0x320] sm:$0xff]  }
 0x12b   :  { %4835 = vmatpush3.bf16.msra.mxu1 %v7694_v29  ;;  %4814 = vmatprep.subr.bf16.mxu0 %v7700_v35  ;;  %9617 = vst [vmem:[#allocation106_spill] sm:$0xff] %v7712_v41  ;;  %v7718_v29 = vld [vmem:[%s9359_s4 + $0x310] sm:$0xff]   ;;  %v7724_v35 = vld [vmem:[%s9359_s4 + $0x2d8] sm:$0xff]   ;;  %9626 = vst [vmem:[#allocation115_spill] sm:$0xff] %v7766_v33 }
 0x12c   :  { %4836 = vmatprep.subr.bf16.mxu1 %v7706_v17  ;;  %9618 = vst [vmem:[#allocation107_spill] sm:$0xff] %v7718_v29  ;;  %9619 = vst [vmem:[#allocation108_spill] sm:$0xff] %v7724_v35  ;;  %v7730_v17 = vld [vmem:[%s9359_s4 + $0x358] sm:$0xff]  }
 0x12d   :  { %9620 = vst [vmem:[#allocation109_spill] sm:$0xff] %v7730_v17 }
 0x12e   :  { %4815 = vmatpush3.bf16.msra.mxu0 %v7712_v41  ;;  %v7736_v41 = vld [vmem:[%s9359_s4 + $0x298] sm:$0xff]  }
 0x12f   :  { %4837 = vmatpush3.bf16.msra.mxu1 %v7718_v29  ;;  %4816 = vmatprep.subr.bf16.mxu0 %v7724_v35  ;;  %9621 = vst [vmem:[#allocation110_spill] sm:$0xff] %v7736_v41  ;;  %v7742_v29 = vld [vmem:[%s9359_s4 + $0x318] sm:$0xff]   ;;  %v7748_v35 = vld [vmem:[%s9359_s4 + $0x2e0] sm:$0xff]  }
 0x130   :  { %4838 = vmatprep.subr.bf16.mxu1 %v7730_v17  ;;  %9622 = vst [vmem:[#allocation111_spill] sm:$0xff] %v7742_v29  ;;  %9623 = vst [vmem:[#allocation112_spill] sm:$0xff] %v7748_v35  ;;  %v7754_v17 = vld [vmem:[%s9359_s4 + $0x360] sm:$0xff]  }
 0x131   :  { %9624 = vst [vmem:[#allocation113_spill] sm:$0xff] %v7754_v17 }
 0x132   :  { %4817 = vmatpush3.bf16.msra.mxu0 %v7736_v41  ;;  %v7760_v41 = vld [vmem:[%s9359_s4 + $0x2a0] sm:$0xff]  }
 0x133   :  { %4839 = vmatpush3.bf16.msra.mxu1 %v7742_v29  ;;  %4818 = vmatprep.subr.bf16.mxu0 %v7748_v35  ;;  %9625 = vst [vmem:[#allocation114_spill] sm:$0xff] %v7760_v41 }
 0x134   :  { %4840 = vmatprep.subr.bf16.mxu1 %v7754_v17  ;;  %v7772_v17 = vld [vmem:[%s9359_s4 + $0x2e8] sm:$0xff]  }
 0x135   :  { %9627 = vst [vmem:[#allocation116_spill] sm:$0xff] %v7772_v17 }
 0x136   :  { %4819 = vmatpush3.bf16.msra.mxu0 %v7760_v41  ;;  %v4531_v29 = vpop.f32.mrb[8].mxu0  ;;  %v7778_v41 = vld [vmem:[%s9359_s4 + $0x368] sm:$0xff]  }
 0x137   :  { %4841 = vmatpush3.bf16.msra.mxu1 %v7766_v33  ;;  %v4532_v35 = vpop.f32.mrb[9].mxu0  ;;  %4820 = vmatprep.subr.bf16.mxu0 %v7772_v17  ;;  %v4553_v59 = vpop.f32.mrb[8].mxu1  ;;  %9628 = vst [vmem:[#allocation117_spill] sm:$0xff] %v7778_v41  ;;  %v7785_v17 = vld [vmem:[%s9359_s4 + $0x2a8] sm:$0xff]  }
 0x138   :  { %v4533_v25 = vadd.f32 %v4532_v35, %v4531_v29  ;;  %4842 = vmatprep.subr.bf16.mxu1 %v7778_v41  ;;  %v4534_v23 = vpop.f32.mrb[10].mxu0  ;;  %v4554_v13 = vpop.f32.mrb[9].mxu1  ;;  %v7791_v35 = vld [vmem:[%s9359_s4 + $0x328] sm:$0xff]   ;;  %v7877_v41 = vld [vmem:[%s9359_s4 + $0x380] sm:$0xff]  }
 0x139   :  { %v4535_v33 = vpop.f32.mrb[11].mxu0  ;;  %v4555_v60 = vadd.f32 %v4554_v13, %v4553_v59  ;;  %v4556_v15 = vpop.f32.mrb[10].mxu1  ;;  %9629 = vst [vmem:[#allocation118_spill] sm:$0xff] %v7791_v35  ;;  %v7817_v13 = vld [vmem:[%s9359_s4 + $0x330] sm:$0xff]   ;;  %v4361_v23 = vcombine.low %v7624_v57, %v7624_v57  ;;  %v7837_v59 = vld [vmem:[%s9361_s1 + $0x38] sm:$0xff] }
 0x13a   :  { %v1920_v19 = vadd.f32 %v4533_v25, %v7587_v37  ;;  %4821 = vmatpush3.bf16.msra.mxu0 %v7785_v17  ;;  %v4557_v29 = vpop.f32.mrb[11].mxu1  ;;  %v7797_v15 = vld [vmem:[%s9359_s4 + $0x2f0] sm:$0xff]   ;;  %9631 = vst [vmem:[#allocation120_spill] sm:$0xff] %v7817_v13  ;;  %v7855_v57 = vld [vmem:[%s9359_s4 + $0x338] sm:$0xff]  }
 0x13b   :  { %4843 = vmatpush3.bf16.msra.mxu1 %v7791_v35  ;;  %4822 = vmatprep.subr.bf16.mxu0 %v7797_v15  ;;  %v7805_v37 = vld [vmem:[%s9359_s4 + $0x370] sm:$0xff]   ;;  %v7842_v29 = vld [vmem:[%s9359_s4 + $0x2b8] sm:$0xff]   ;;  %9633 = vst [vmem:[#allocation122_spill] sm:$0xff] %v7855_v57  ;;  %v4366_v35 = vcombine.high %v7837_v59, %v7837_v59 }
 0x13c   :  { %v7800_v25 = vadd.f32 %v4555_v60, %v1920_v19  ;;  %9630 = vst [vmem:[#allocation119_spill] sm:$0xff] %v7805_v37  ;;  %4844 = vmatprep.subr.bf16.mxu1 %v7805_v37  ;;  %v7811_v33 = vld [vmem:[%s9359_s4 + $0x2b0] sm:$0xff]   ;;  %v7823_v19 = vld [vmem:[%s9359_s4 + $0x2f8] sm:$0xff]   ;;  %v7861_v37 = vld [vmem:[%s9359_s4 + $0x3c0] sm:$0xff]  }
 0x13d   :  { %v7829_v60 = vld [vmem:[%s9359_s4 + $0x378] sm:$0xff]  }
 0x13e   :  { %4823 = vmatpush3.bf16.msra.mxu0 %v7811_v33  ;;  %9632 = vst [vmem:[#allocation121_spill] sm:$0xff] %v7829_v60 }
 0x13f   :  { %4845 = vmatpush3.bf16.msra.mxu1 %v7817_v13  ;;  %4824 = vmatprep.subr.bf16.mxu0 %v7823_v19  ;;  %v4363_v13 = vcombine.low %v7637_v21, %v7637_v21  ;;  %v7867_v21 = vld [vmem:[%s9359_s4 + $0x440] sm:$0xff]  }
 0x140   :  { %4846 = vmatprep.subr.bf16.mxu1 %v7829_v60  ;;  %v7850_v60 = vld [vmem:[%s9361_s1 + $0x40] sm:$0xff]  ;;  %9634 = vst [vmem:[#allocation123_spill] sm:$0xff] %v7867_v21 }
 0x142   :  { %4825 = vmatpush3.bf16.msra.mxu0 %v7842_v29 }
 0x143   :  { %4847 = vmatpush3.bf16.msra.mxu1 %v7855_v57  ;;  %4854 = vmatprep.subr.bf16.mxu0 %v7861_v37  ;;  %v4368_v57 = vcombine.high %v7850_v60, %v7850_v60 }
 0x144   :  { %4876 = vmatprep.subr.bf16.mxu1 %v7867_v21  ;;  %v7884_v21 = vld [vmem:[%s9359_s4 + $0x3c8] sm:$0xff]  }
 0x145   :  { %2579 = vmatmul.mubr.bf16.vlgmr.msra.gmra.mrb[36].mxu0 %v4361_v23 }
 0x146   :  { %2619 = vmatmul.mubr.bf16.vlgmr.msra.gmra.mrb[36].mxu1 %v4363_v13  ;;  %4855 = vmatpush3.bf16.msra.mxu0 %v7877_v41  ;;  %v7891_v13 = vld [vmem:[%s9359_s4 + $0x388] sm:$0xff]  }
 0x147   :  { %4877 = vmatpush3.bf16.msra.mxu1 %v6693_v26  ;;  %4856 = vmatprep.subr.bf16.mxu0 %v7884_v21  ;;  %v7898_v26 = vld [vmem:[%s9359_s4 + $0x3d0] sm:$0xff]  }
 0x148   :  { %4878 = vmatprep.subr.bf16.mxu1 %v6701_v28  ;;  %2658 = vmatprep.mubr.bf16.mxu0 %v4366_v35  ;;  %9635 = vst [vmem:[#allocation124_spill] sm:$0xff] %v7898_v26  ;;  %v7905_v28 = vld [vmem:[%s9359_s4 + $0x390] sm:$0xff]  }
 0x149   :  { %2698 = vmatprep.mubr.bf16.mxu1 %v4368_v57  ;;  %9636 = vst [vmem:[#allocation125_spill] sm:$0xff] %v7905_v28 }
 0x14a   :  { %4857 = vmatpush3.bf16.msra.mxu0 %v7891_v13 }
 0x14b   :  { %4879 = vmatpush3.bf16.msra.mxu1 %v6711_v30  ;;  %4858 = vmatprep.subr.bf16.mxu0 %v7898_v26  ;;  %v7912_v30 = vld [vmem:[%s9359_s4 + $0x3d8] sm:$0xff]  }
 0x14c   :  { %4880 = vmatprep.subr.bf16.mxu1 %v6719_v32  ;;  %9637 = vst [vmem:[#allocation126_spill] sm:$0xff] %v7912_v30  ;;  %v7919_v32 = vld [vmem:[%s9359_s4 + $0x398] sm:$0xff]  }
 0x14d   :  { %9638 = vst [vmem:[#allocation127_spill] sm:$0xff] %v7919_v32 }
 0x14e   :  { %4859 = vmatpush3.bf16.msra.mxu0 %v7905_v28 }
 0x14f   :  { %4881 = vmatpush3.bf16.msra.mxu1 %v6729_v34  ;;  %4860 = vmatprep.subr.bf16.mxu0 %v7912_v30  ;;  %v7926_v34 = vld [vmem:[%s9359_s4 + $0x3e0] sm:$0xff]  }
 0x150   :  { %4882 = vmatprep.subr.bf16.mxu1 %v6737_v36  ;;  %9639 = vst [vmem:[#allocation128_spill] sm:$0xff] %v7926_v34  ;;  %v7933_v36 = vld [vmem:[%s9359_s4 + $0x3a0] sm:$0xff]  }
 0x151   :  { %9640 = vst [vmem:[#allocation129_spill] sm:$0xff] %v7933_v36 }
 0x152   :  { %4861 = vmatpush3.bf16.msra.mxu0 %v7919_v32 }
 0x153   :  { %4883 = vmatpush3.bf16.msra.mxu1 %v6747_v38  ;;  %4862 = vmatprep.subr.bf16.mxu0 %v7926_v34  ;;  %v7940_v38 = vld [vmem:[%s9359_s4 + $0x3e8] sm:$0xff]  }
 0x154   :  { %4884 = vmatprep.subr.bf16.mxu1 %v6755_v40 }
 0x156   :  { %4863 = vmatpush3.bf16.msra.mxu0 %v7933_v36  ;;  %v4575_v35 = vpop.f32.mrb[12].mxu0  ;;  %v7947_v36 = vld [vmem:[%s9359_s4 + $0x3a8] sm:$0xff]  }
 0x157   :  { %4885 = vmatpush3.bf16.msra.mxu1 %v6765_v42  ;;  %4864 = vmatprep.subr.bf16.mxu0 %v7940_v38  ;;  %v4576_v23 = vpop.f32.mrb[13].mxu0  ;;  %v4597_v40 = vpop.f32.mrb[12].mxu1 }
 0x158   :  { %4886 = vmatprep.subr.bf16.mxu1 %v6775_v44  ;;  %v4577_v57 = vadd.f32 %v4576_v23, %v4575_v35  ;;  %v4578_v34 = vpop.f32.mrb[14].mxu0  ;;  %v4598_v32 = vpop.f32.mrb[13].mxu1  ;;  %v7955_v44 = vld [vmem:[%s9359_s4 + $0x3f0] sm:$0xff]  }
 0x159   :  { %v4579_v42 = vpop.f32.mrb[15].mxu0  ;;  %v4599_v30 = vadd.f32 %v4598_v32, %v4597_v40  ;;  %v4600_v28 = vpop.f32.mrb[14].mxu1  ;;  %v8024_v32 = vld [vmem:[%s9359_s4 + $0x488] sm:$0xff]  }
 0x15a   :  { %4865 = vmatpush3.bf16.msra.mxu0 %v7947_v36  ;;  %v2000_v26 = vadd.f32 %v4577_v57, %v7800_v25  ;;  %v4601_v34 = vpop.f32.mrb[15].mxu1  ;;  %v7964_v28 = vld [vmem:[%s9359_s4 + $0x3b0] sm:$0xff]   ;;  %v7980_v25 = vld [vmem:[%s9361_s1 + $0x48] sm:$0xff] }
 0x15b   :  { %4887 = vmatpush3.bf16.msra.mxu1 %v6788_v46  ;;  %4866 = vmatprep.subr.bf16.mxu0 %v7955_v44  ;;  %v7971_v46 = vld [vmem:[%s9359_s4 + $0x3f8] sm:$0xff]  }
 0x15c   :  { %4888 = vmatprep.subr.bf16.mxu1 %v6799_v48  ;;  %v7959_v35 = vadd.f32 %v4599_v30, %v2000_v26  ;;  %v4365_v48 = vcombine.low %v7837_v59, %v7837_v59  ;;  %v4367_v26 = vcombine.low %v7850_v60, %v7850_v60  ;;  %v7999_v59 = vld [vmem:[%s9359_s4 + $0x4c0] sm:$0xff]   ;;  %v4370_v30 = vcombine.high %v7980_v25, %v7980_v25 }
 0x15e   :  { %4867 = vmatpush3.bf16.msra.mxu0 %v7964_v28 }
 0x15f   :  { %4889 = vmatpush3.bf16.msra.mxu1 %v6812_v50  ;;  %4868 = vmatprep.subr.bf16.mxu0 %v7971_v46  ;;  %v7985_v50 = vld [vmem:[%s9359_s4 + $0x3b8] sm:$0xff]  }
 0x160   :  { %4890 = vmatprep.subr.bf16.mxu1 %v6823_v52  ;;  %v7993_v52 = vld [vmem:[%s9361_s1 + $0x50] sm:$0xff] }
 0x161   :  { %v4372_v60 = vcombine.high %v7993_v52, %v7993_v52 }
 0x162   :  { %4869 = vmatpush3.bf16.msra.mxu0 %v7985_v50 }
 0x163   :  { %4891 = vmatpush3.bf16.msra.mxu1 %v6836_v54  ;;  %4898 = vmatprep.subr.bf16.mxu0 %v7999_v59  ;;  %v8010_v54 = vld [vmem:[%s9359_s4 + $0x480] sm:$0xff]  }
 0x164   :  { %4920 = vmatprep.subr.bf16.mxu1 %v6855_v62  ;;  %v8017_v62 = vld [vmem:[%s9359_s4 + $0x4c8] sm:$0xff]  }
 0x165   :  { %2659 = vmatmul.mubr.bf16.vlgmr.msra.gmra.mrb[40].mxu0 %v4365_v48 }
 0x166   :  { %2699 = vmatmul.mubr.bf16.vlgmr.msra.gmra.mrb[40].mxu1 %v4367_v26  ;;  %4899 = vmatpush3.bf16.msra.mxu0 %v8010_v54 }
 0x167   :  { %4921 = vmatpush3.bf16.msra.mxu1 %v6866_v0  ;;  %4900 = vmatprep.subr.bf16.mxu0 %v8017_v62  ;;  %v8031_v0 = vld [vmem:[%s9359_s4 + $0x4d0] sm:$0xff]  }
 0x168   :  { %4922 = vmatprep.subr.bf16.mxu1 %v6878_v2  ;;  %2738 = vmatprep.mubr.bf16.mxu0 %v4370_v30  ;;  %v8038_v2 = vld [vmem:[%s9359_s4 + $0x490] sm:$0xff]  }
 0x169   :  { %2778 = vmatprep.mubr.bf16.mxu1 %v4372_v60  ;;  %v9651_v60 = vld [vmem:[#allocation25_spill] sm:$0xff] }
 0x16a   :  { %4901 = vmatpush3.bf16.msra.mxu0 %v8024_v32 }
 0x16b   :  { %4923 = vmatpush3.bf16.msra.mxu1 %v6890_v4  ;;  %4902 = vmatprep.subr.bf16.mxu0 %v8031_v0  ;;  %v8045_v4 = vld [vmem:[%s9359_s4 + $0x4d8] sm:$0xff]  }
 0x16c   :  { %4924 = vmatprep.subr.bf16.mxu1 %v6902_v6  ;;  %v8052_v6 = vld [vmem:[%s9359_s4 + $0x498] sm:$0xff]  }
 0x16e   :  { %4903 = vmatpush3.bf16.msra.mxu0 %v8038_v2 }
 0x16f   :  { %4925 = vmatpush3.bf16.msra.mxu1 %v6914_v8  ;;  %4904 = vmatprep.subr.bf16.mxu0 %v8045_v4  ;;  %v8059_v8 = vld [vmem:[%s9359_s4 + $0x4e0] sm:$0xff]  }
 0x170   :  { %4926 = vmatprep.subr.bf16.mxu1 %v6926_v10 }
 0x172   :  { %4905 = vmatpush3.bf16.msra.mxu0 %v8052_v6 }
 0x173   :  { %4927 = vmatpush3.bf16.msra.mxu1 %v6938_v12  ;;  %4906 = vmatprep.subr.bf16.mxu0 %v8059_v8 }
 0x174   :  { %4928 = vmatprep.subr.bf16.mxu1 %v6950_v14 }
 0x176   :  { %4907 = vmatpush3.bf16.msra.mxu0 %v6770_v43  ;;  %v4619_v10 = vpop.f32.mrb[16].mxu0 }
 0x177   :  { %4929 = vmatpush3.bf16.msra.mxu1 %v6962_v16  ;;  %4908 = vmatprep.subr.bf16.mxu0 %v6782_v45  ;;  %v4620_v23 = vpop.f32.mrb[17].mxu0  ;;  %v4641_v12 = vpop.f32.mrb[16].mxu1 }
 0x178   :  { %4930 = vmatprep.subr.bf16.mxu1 %v6974_v18  ;;  %v4621_v40 = vadd.f32 %v4620_v23, %v4619_v10  ;;  %v4622_v57 = vpop.f32.mrb[18].mxu0  ;;  %v4642_v42 = vpop.f32.mrb[17].mxu1  ;;  %v4371_v18 = vcombine.low %v7993_v52, %v7993_v52  ;;  %v9650_v52 = vld [vmem:[#allocation8_spill] sm:$0xff]  ;;  %v9652_v10 = vld [vmem:[#allocation9_spill] sm:$0xff] }
 0x179   :  { %v4623_v34 = vpop.f32.mrb[19].mxu0  ;;  %v4643_v14 = vadd.f32 %v4642_v42, %v4641_v12  ;;  %v4644_v48 = vpop.f32.mrb[18].mxu1  ;;  %v2866_v12 = vld [vmem:[%s9362_s2] sm:$0xff]  ;;  %v2867_v42 = vld [vmem:[%s9362_s2 + $0x8] sm:$0xff] }
 0x17a   :  { %4909 = vmatpush3.bf16.msra.mxu0 %v6794_v47  ;;  %v2080_v43 = vadd.f32 %v4621_v40, %v7959_v35  ;;  %v4645_v45 = vpop.f32.mrb[19].mxu1  ;;  %v4369_v47 = vcombine.low %v7980_v25, %v7980_v25  ;;  %v9649_v35 = vld [vmem:[#allocation7_spill] sm:$0xff]  ;;  %v9653_v40 = vld [vmem:[#allocation10_spill] sm:$0xff]  ;;  %v9654_v34 = vld [vmem:[#allocation28_spill] sm:$0xff] }
 0x17b   :  { %4931 = vmatpush3.bf16.msra.mxu1 %v6986_v20  ;;  %4910 = vmatprep.subr.bf16.mxu0 %v6806_v49  ;;  %v2256_v49 = vld [vmem:[%s9361_s1 + $0x58] sm:$0xff]  ;;  %v5850_v57 = vld [vmem:[%s9361_s1 + $0x60] ss:$0 sps:$4 sm:$0xff]   ;;  %v9656_v48 = vld [vmem:[#allocation32_spill] sm:$0xff]  ;;  %v4379_v45 = vcombine.high %v2867_v42, %v2867_v42 }
 0x17c   :  { %4932 = vmatprep.subr.bf16.mxu1 %v6998_v22  ;;  %v2120_v16 = vadd.f32 %v4643_v14, %v2080_v43  ;;  %v4373_v23 = vcombine.low %v2256_v49, %v2256_v49  ;;  %v9655_v14 = vld [vmem:[#allocation11_spill] sm:$0xff]  ;;  %v4377_v43 = vcombine.high %v2866_v12, %v2866_v12 }
 0x17e   :  { %4911 = vmatpush3.bf16.msra.mxu0 %v6818_v51  ;;  %v4374_v51 = vcombine.high %v2256_v49, %v2256_v49  ;;  %v9659_v49 = vld [vmem:[#allocation13_spill] sm:$0xff] }
 0x17f   :  { %4933 = vmatpush3.bf16.msra.mxu1 %v7010_v24  ;;  %4912 = vmatprep.subr.bf16.mxu0 %v6830_v53  ;;  %v9641_v53 = vld [vmem:[#allocation2_spill] sm:$0xff] }
 0x180   :  { %4934 = vmatprep.subr.bf16.mxu1 %v7022_v27  ;;  %v9647_v24 = vld [vmem:[#allocation6_spill] sm:$0xff] }
 0x182   :  { %4913 = vmatpush3.bf16.msra.mxu0 %v6842_v55  ;;  %v9642_v55 = vld [vmem:[#allocation16_spill] sm:$0xff] }
 0x183   :  { %4935 = vmatpush3.bf16.msra.mxu1 %v7034_v31  ;;  %4942 = vmatprep.subr.bf16.mxu0 %v6860_v63  ;;  %v9643_v63 = vld [vmem:[#allocation3_spill] sm:$0xff]  ;;  %v9648_v31 = vld [vmem:[#allocation22_spill] sm:$0xff] }
 0x184   :  { %5539 = vmatprep.subr.bf16.mxu1 %v9528_v56 }
 0x185   :  { %2739 = vmatmul.mubr.bf16.vlgmr.msra.gmra.mrb[44].mxu0 %v4369_v47  ;;  %v9658_v47 = vld [vmem:[#allocation34_spill] sm:$0xff] }
 0x186   :  { %2779 = vmatmul.mubr.bf16.vlgmr.msra.gmra.mrb[44].mxu1 %v4371_v18  ;;  %4943 = vmatpush3.bf16.msra.mxu0 %v6872_v1  ;;  %v9644_v1 = vld [vmem:[#allocation4_spill] sm:$0xff] }
 0x187   :  { %5540 = vmatpush3.bf16.msra.mxu1 %v7052_v58  ;;  %4944 = vmatprep.subr.bf16.mxu0 %v6884_v3  ;;  %v9645_v3 = vld [vmem:[#allocation19_spill] sm:$0xff]  ;;  %v9660_v18 = vld [vmem:[#allocation36_spill] sm:$0xff] }
 0x188   :  { %5541 = vmatprep.subr.bf16.mxu1 %v9528_v56  ;;  %2818 = vmatprep.mubr.bf16.mxu0 %v4374_v51  ;;  %v9661_v51 = vld [vmem:[#allocation14_spill] sm:$0xff] }
 0x189   :  { %5555 = vmatprep.mubr.msk.bf16.mxu1 %vm6240_vm0, %v9528_v56 }
 0x18a   :  { %4945 = vmatpush3.bf16.msra.mxu0 %v6896_v5  ;;  %v9646_v5 = vld [vmem:[#allocation5_spill] sm:$0xff] }
 0x18b   :  { %5542 = vmatpush3.bf16.msra.mxu1 %v7066_v61  ;;  %4946 = vmatprep.subr.bf16.mxu0 %v6908_v7 }
 0x18c   :  { %5543 = vmatprep.subr.bf16.mxu1 %v9528_v56 }
 0x18e   :  { %4947 = vmatpush3.bf16.msra.mxu0 %v6920_v9 }
 0x18f   :  { %5544 = vmatpush3.bf16.msra.mxu1 %v7087_v39  ;;  %4948 = vmatprep.subr.bf16.mxu0 %v6932_v11 }
 0x190   :  { %5545 = vmatprep.subr.bf16.mxu1 %v9528_v56 }
 0x192   :  { %4949 = vmatpush3.bf16.msra.mxu0 %v9641_v53  ;;  %v9662_v53 = vld [vmem:[#allocation38_spill] sm:$0xff] }
 0x193   :  { %5546 = vmatpush3.bf16.msra.mxu1 %v9642_v55  ;;  %4950 = vmatprep.subr.bf16.mxu0 %v9643_v63  ;;  %v9663_v55 = vld [vmem:[#allocation15_spill] sm:$0xff]  ;;  %v9664_v63 = vld [vmem:[#allocation40_spill] sm:$0xff] }
 0x194   :  { %5547 = vmatprep.subr.bf16.mxu1 %v9528_v56 }
 0x196   :  { %4951 = vmatpush3.bf16.msra.mxu0 %v9644_v1  ;;  %v4663_v7 = vpop.f32.mrb[20].mxu0  ;;  %v9665_v1 = vld [vmem:[#allocation17_spill] sm:$0xff] }
 0x197   :  { %5548 = vmatpush3.bf16.msra.mxu1 %v9645_v3  ;;  %4952 = vmatprep.subr.bf16.mxu0 %v9646_v5  ;;  %v4664_v9 = vpop.f32.mrb[21].mxu0  ;;  %v4685_v11 = vpop.f32.mrb[20].mxu1  ;;  %v9666_v3 = vld [vmem:[#allocation42_spill] sm:$0xff] }
 0x198   :  { %5549 = vmatprep.subr.bf16.mxu1 %v9528_v56  ;;  %v4665_v20 = vadd.f32 %v4664_v9, %v4663_v7  ;;  %v4666_v22 = vpop.f32.mrb[22].mxu0  ;;  %v4686_v27 = vpop.f32.mrb[21].mxu1  ;;  %v9667_v5 = vld [vmem:[#allocation18_spill] sm:$0xff]  ;;  %v9668_v7 = vld [vmem:[#allocation44_spill] sm:$0xff] }
 0x199   :  { %v4667_v58 = vpop.f32.mrb[23].mxu0  ;;  %v4687_v61 = vadd.f32 %v4686_v27, %v4685_v11  ;;  %v4688_v39 = vpop.f32.mrb[22].mxu1  ;;  %v9669_v9 = vld [vmem:[#allocation20_spill] sm:$0xff]  ;;  %v9670_v11 = vld [vmem:[#allocation46_spill] sm:$0xff] }
 0x19a   :  { %4953 = vmatpush3.bf16.msra.mxu0 %v9647_v24  ;;  %v2160_v25 = vadd.f32 %v4665_v20, %v2120_v16  ;;  %v4689_v26 = vpop.f32.mrb[23].mxu1  ;;  %v9657_v16 = vld [vmem:[#allocation12_spill] sm:$0xff]  ;;  %v9671_v20 = vld [vmem:[#allocation21_spill] sm:$0xff]  ;;  %v9673_v24 = vld [vmem:[#allocation23_spill] sm:$0xff] }
 0x19b   :  { %5550 = vmatpush3.bf16.msra.mxu1 %v9648_v31  ;;  %4954 = vmatprep.subr.bf16.mxu0 %v9649_v35  ;;  %v9672_v22 = vld [vmem:[#allocation48_spill] sm:$0xff]  ;;  %v9674_v27 = vld [vmem:[#allocation50_spill] sm:$0xff] }
 0x19c   :  { %5551 = vmatprep.subr.bf16.mxu1 %v9528_v56  ;;  %v2200_v30 = vadd.f32 %v4687_v61, %v2160_v25  ;;  %v9675_v31 = vld [vmem:[#allocation24_spill] sm:$0xff] }
 0x19d   :  { %v9676_v61 = vld [vmem:[#allocation52_spill] sm:$0xff] }
 0x19e   :  { %4955 = vmatpush3.bf16.msra.mxu0 %v9650_v52  ;;  %v9678_v52 = vld [vmem:[#allocation26_spill] sm:$0xff] }
 0x19f   :  { %5552 = vmatpush3.bf16.msra.mxu1 %v9651_v60  ;;  %4956 = vmatprep.subr.bf16.mxu0 %v9652_v10  ;;  %v9679_v10 = vld [vmem:[#allocation54_spill] sm:$0xff] }
 0x1a0   :  { %5553 = vmatprep.subr.bf16.mxu1 %v9528_v56 }
 0x1a2   :  { %4957 = vmatpush3.bf16.msra.mxu0 %v9653_v40 }
 0x1a3   :  { %5554 = vmatpush3.bf16.msra.mxu1 %v9654_v34  ;;  %4973 = vmatprep.subr.bf16.mxu0 %v9655_v14  ;;  %v9680_v34 = vld [vmem:[#allocation27_spill] sm:$0xff]  ;;  %v9681_v14 = vld [vmem:[#allocation56_spill] sm:$0xff] }
 0x1a4   :  { %4995 = vmatprep.subr.bf16.mxu1 %v9656_v48 }
 0x1a5   :  { %2819 = vmatmul.mubr.bf16.vlgmr.msra.gmra.mrb[48].mxu0 %v4373_v23 }
 0x1a6   :  { %5556 = vmatmul.mubr.bf16.vlgmr.msra.gmra.mrb[48].mxu1 %v5850_v57  ;;  %4974 = vmatpush3.bf16.msra.mxu0 %v9657_v16  ;;  %v9685_v16 = vld [vmem:[#allocation60_spill] sm:$0xff] }
 0x1a7   :  { %4996 = vmatpush3.bf16.msra.mxu1 %v9658_v47  ;;  %4975 = vmatprep.subr.bf16.mxu0 %v9659_v49  ;;  %v4376_v47 = vcombine.low %v2866_v12, %v2866_v12  ;;  %v2868_v49 = vld [vmem:[%s9362_s2 + $0x10] sm:$0xff] }
 0x1a8   :  { %4997 = vmatprep.subr.bf16.mxu1 %v9660_v18  ;;  %2999 = vmatprep.mubr.bf16.mxu0 %v4377_v43  ;;  %v9682_v43 = vld [vmem:[#allocation29_spill] sm:$0xff]  ;;  %v9686_v18 = vld [vmem:[#allocation31_spill] sm:$0xff] }
 0x1a9   :  { %3039 = vmatprep.mubr.bf16.mxu1 %v4379_v45  ;;  %v9684_v45 = vld [vmem:[#allocation30_spill] sm:$0xff] }
 0x1aa   :  { %4976 = vmatpush3.bf16.msra.mxu0 %v9661_v51  ;;  %v4378_v51 = vcombine.low %v2867_v42, %v2867_v42  ;;  %v9693_v42 = vld [vmem:[#allocation68_spill] sm:$0xff] }
 0x1ab   :  { %4998 = vmatpush3.bf16.msra.mxu1 %v9662_v53  ;;  %4977 = vmatprep.subr.bf16.mxu0 %v9663_v55  ;;  %v2869_v53 = vld [vmem:[%s9362_s2 + $0x18] sm:$0xff]  ;;  %v9687_v55 = vld [vmem:[#allocation62_spill] sm:$0xff] }
 0x1ac   :  { %4999 = vmatprep.subr.bf16.mxu1 %v9664_v63  ;;  %v9688_v63 = vld [vmem:[#allocation33_spill] sm:$0xff]  ;;  %v4383_v12 = vcombine.high %v2869_v53, %v2869_v53 }
 0x1ae   :  { %4978 = vmatpush3.bf16.msra.mxu0 %v9665_v1  ;;  %v9689_v1 = vld [vmem:[#allocation64_spill] sm:$0xff] }
 0x1af   :  { %5000 = vmatpush3.bf16.msra.mxu1 %v9666_v3  ;;  %4979 = vmatprep.subr.bf16.mxu0 %v9667_v5  ;;  %v4381_v3 = vcombine.high %v2868_v49, %v2868_v49  ;;  %v9690_v5 = vld [vmem:[#allocation35_spill] sm:$0xff] }
 0x1b0   :  { %5001 = vmatprep.subr.bf16.mxu1 %v9668_v7  ;;  %v9691_v7 = vld [vmem:[#allocation66_spill] sm:$0xff] }
 0x1b2   :  { %4980 = vmatpush3.bf16.msra.mxu0 %v9669_v9  ;;  %v9692_v9 = vld [vmem:[#allocation37_spill] sm:$0xff] }
 0x1b3   :  { %5002 = vmatpush3.bf16.msra.mxu1 %v9670_v11  ;;  %4981 = vmatprep.subr.bf16.mxu0 %v9671_v20  ;;  %v9694_v11 = vld [vmem:[#allocation39_spill] sm:$0xff]  ;;  %v9695_v20 = vld [vmem:[#allocation70_spill] sm:$0xff] }
 0x1b4   :  { %5003 = vmatprep.subr.bf16.mxu1 %v9672_v22  ;;  %v9696_v22 = vld [vmem:[#allocation41_spill] sm:$0xff] }
 0x1b6   :  { %4982 = vmatpush3.bf16.msra.mxu0 %v9673_v24  ;;  %v2239_v58 = vpop.f32.mrb[24].mxu0  ;;  %v9697_v24 = vld [vmem:[#allocation72_spill] sm:$0xff] }
 0x1b7   :  { %5004 = vmatpush3.bf16.msra.mxu1 %v9674_v27  ;;  %4983 = vmatprep.subr.bf16.mxu0 %v9675_v31  ;;  %v8150_v39 = vadd.f32 %v2239_v58, %v2200_v30  ;;  %v5537_v35 = vpop.f32.mrb[25].mxu0  ;;  %v4716_v25 = vpop.f32.mrb[24].mxu1  ;;  %v9683_v30 = vld [vmem:[#allocation58_spill] sm:$0xff]  ;;  %v9698_v27 = vld [vmem:[#allocation43_spill] sm:$0xff]  ;;  %v9700_v58 = vld [vmem:[#allocation45_spill] sm:$0xff] }
 0x1b8   :  { %5005 = vmatprep.subr.bf16.mxu1 %v9676_v61  ;;  %v2242_v26 = vpop.f32.mrb[26].mxu0  ;;  %v4717_v60 = vpop.f32.mrb[25].mxu1  ;;  %v9699_v31 = vld [vmem:[#allocation74_spill] sm:$0xff]  ;;  %v9701_v61 = vld [vmem:[#allocation76_spill] sm:$0xff]  ;;  %v9702_v35 = vld [vmem:[#allocation47_spill] sm:$0xff] }
 0x1b9   :  { %9677 = vst [vmem:[#allocation2_spill] sm:$0xff] %v8150_v39  ;;  %v5538_v23 = vpop.f32.mrb[27].mxu0  ;;  %v4718_v40 = vadd.f32 %v4717_v60, %v4716_v25  ;;  %v4719_v57 = vpop.f32.mrb[26].mxu1  ;;  %v9703_v25 = vld [vmem:[#allocation78_spill] sm:$0xff]  ;;  %v9704_v26 = vld [vmem:[#allocation49_spill] sm:$0xff]  ;;  %v9706_v60 = vld [vmem:[#allocation51_spill] sm:$0xff] }
 0x1ba   :  { %4984 = vmatpush3.bf16.msra.mxu0 %v9678_v52  ;;  %v4720_v48 = vpop.f32.mrb[27].mxu1  ;;  %v9705_v52 = vld [vmem:[#allocation80_spill] sm:$0xff]  ;;  %v9708_v23 = vld [vmem:[#allocation53_spill] sm:$0xff] }
 0x1bb   :  { %5006 = vmatpush3.bf16.msra.mxu1 %v9679_v10  ;;  %4985 = vmatprep.subr.bf16.mxu0 %v9680_v34  ;;  %v9707_v10 = vld [vmem:[#allocation82_spill] sm:$0xff]  ;;  %v9709_v34 = vld [vmem:[#allocation84_spill] sm:$0xff] }
 0x1bc   :  { %5007 = vmatprep.subr.bf16.mxu1 %v9681_v14 }
 0x1be   :  { %4986 = vmatpush3.bf16.msra.mxu0 %v9682_v43 }
 0x1bf   :  { %5008 = vmatpush3.bf16.msra.mxu1 %v9683_v30  ;;  %4987 = vmatprep.subr.bf16.mxu0 %v9684_v45  ;;  %v9710_v45 = vld [vmem:[#allocation55_spill] sm:$0xff] }
 0x1c0   :  { %5009 = vmatprep.subr.bf16.mxu1 %v9685_v16 }
 0x1c2   :  { %4988 = vmatpush3.bf16.msra.mxu0 %v9686_v18 }
 0x1c3   :  { %5010 = vmatpush3.bf16.msra.mxu1 %v9687_v55  ;;  %5017 = vmatprep.subr.bf16.mxu0 %v9688_v63  ;;  %v9712_v63 = vld [vmem:[#allocation57_spill] sm:$0xff] }
 0x1c4   :  { %5039 = vmatprep.subr.bf16.mxu1 %v9689_v1 }
 0x1c5   :  { %3000 = vmatmul.mubr.bf16.vlgmr.msra.gmra.mrb[52].mxu0 %v4376_v47 }
 0x1c6   :  { %3040 = vmatmul.mubr.bf16.vlgmr.msra.gmra.mrb[52].mxu1 %v4378_v51  ;;  %5018 = vmatpush3.bf16.msra.mxu0 %v9690_v5  ;;  %v9711_v51 = vld [vmem:[#allocation86_spill] sm:$0xff] }
 0x1c7   :  { %5040 = vmatpush3.bf16.msra.mxu1 %v9691_v7  ;;  %5019 = vmatprep.subr.bf16.mxu0 %v9692_v9  ;;  %v9714_v7 = vld [vmem:[#allocation59_spill] sm:$0xff]  ;;  %v9715_v9 = vld [vmem:[#allocation90_spill] sm:$0xff] }
 0x1c8   :  { %5041 = vmatprep.subr.bf16.mxu1 %v9693_v42  ;;  %3079 = vmatprep.mubr.bf16.mxu0 %v4381_v3  ;;  %v9716_v42 = vld [vmem:[#allocation61_spill] sm:$0xff] }
 0x1c9   :  { %3119 = vmatprep.mubr.bf16.mxu1 %v4383_v12  ;;  %v9713_v12 = vld [vmem:[#allocation88_spill] sm:$0xff] }
 0x1ca   :  { %5020 = vmatpush3.bf16.msra.mxu0 %v9694_v11  ;;  %v9717_v11 = vld [vmem:[#allocation92_spill] sm:$0xff] }
 0x1cb   :  { %5042 = vmatpush3.bf16.msra.mxu1 %v9695_v20  ;;  %5021 = vmatprep.subr.bf16.mxu0 %v9696_v22  ;;  %v4380_v20 = vcombine.low %v2868_v49, %v2868_v49  ;;  %v8201_v22 = vld [vmem:[%s9362_s2 + $0x20] sm:$0xff] }
 0x1cc   :  { %5043 = vmatprep.subr.bf16.mxu1 %v9697_v24  ;;  %v9718_v24 = vld [vmem:[#allocation63_spill] sm:$0xff]  ;;  %v4385_v49 = vcombine.high %v8201_v22, %v8201_v22 }
 0x1ce   :  { %5022 = vmatpush3.bf16.msra.mxu0 %v9698_v27  ;;  %v8207_v27 = vld [vmem:[%s9362_s2 + $0x28] sm:$0xff] }
 0x1cf   :  { %5044 = vmatpush3.bf16.msra.mxu1 %v9699_v31  ;;  %5023 = vmatprep.subr.bf16.mxu0 %v9700_v58  ;;  %v9719_v31 = vld [vmem:[#allocation94_spill] sm:$0xff]  ;;  %v9720_v58 = vld [vmem:[#allocation65_spill] sm:$0xff] }
 0x1d0   :  { %5045 = vmatprep.subr.bf16.mxu1 %v9701_v61  ;;  %v9721_v61 = vld [vmem:[#allocation96_spill] sm:$0xff] }
 0x1d2   :  { %5024 = vmatpush3.bf16.msra.mxu0 %v9702_v35  ;;  %v4387_v35 = vcombine.high %v8207_v27, %v8207_v27 }
 0x1d3   :  { %5046 = vmatpush3.bf16.msra.mxu1 %v9703_v25  ;;  %5025 = vmatprep.subr.bf16.mxu0 %v9704_v26  ;;  %v9722_v25 = vld [vmem:[#allocation67_spill] sm:$0xff]  ;;  %v9724_v26 = vld [vmem:[#allocation69_spill] sm:$0xff] }
 0x1d4   :  { %5047 = vmatprep.subr.bf16.mxu1 %v9705_v52  ;;  %v9725_v52 = vld [vmem:[#allocation100_spill] sm:$0xff] }
 0x1d6   :  { %5026 = vmatpush3.bf16.msra.mxu0 %v9706_v60  ;;  %v9726_v60 = vld [vmem:[#allocation71_spill] sm:$0xff] }
 0x1d7   :  { %5048 = vmatpush3.bf16.msra.mxu1 %v9707_v10  ;;  %5027 = vmatprep.subr.bf16.mxu0 %v9708_v23  ;;  %v9727_v10 = vld [vmem:[#allocation102_spill] sm:$0xff]  ;;  %v9728_v23 = vld [vmem:[#allocation73_spill] sm:$0xff] }
 0x1d8   :  { %v4738_v57 = vpop.f32.mrb[28].mxu0  ;;  %5049 = vmatprep.subr.bf16.mxu1 %v9709_v34  ;;  %v9730_v34 = vld [vmem:[#allocation75_spill] sm:$0xff] }
 0x1d9   :  { %v4739_v14 = vpop.f32.mrb[29].mxu0  ;;  %v4760_v48 = vpop.f32.mrb[28].mxu1 }
 0x1da   :  { %v4740_v43 = vadd.f32 %v4739_v14, %v4738_v57  ;;  %v4741_v30 = vpop.f32.mrb[30].mxu0  ;;  %5028 = vmatpush3.bf16.msra.mxu0 %v9710_v45  ;;  %v4761_v16 = vpop.f32.mrb[29].mxu1  ;;  %v9729_v57 = vld [vmem:[#allocation104_spill] sm:$0xff]  ;;  %v9731_v14 = vld [vmem:[#allocation106_spill] sm:$0xff] }
 0x1db   :  { %v4742_v47 = vpop.f32.mrb[31].mxu0  ;;  %v4762_v18 = vadd.f32 %v4761_v16, %v4760_v48  ;;  %5050 = vmatpush3.bf16.msra.mxu1 %v9711_v51  ;;  %v4763_v55 = vpop.f32.mrb[30].mxu1  ;;  %5029 = vmatprep.subr.bf16.mxu0 %v9712_v63  ;;  %v9732_v48 = vld [vmem:[#allocation77_spill] sm:$0xff]  ;;  %v9734_v30 = vld [vmem:[#allocation79_spill] sm:$0xff]  ;;  %v9735_v45 = vld [vmem:[#allocation110_spill] sm:$0xff] }
 0x1dc   :  { %v2421_v1 = vadd.f32 %v4740_v43, %v4718_v40  ;;  %v4764_v3 = vpop.f32.mrb[31].mxu1  ;;  %5051 = vmatprep.subr.bf16.mxu1 %v9713_v12  ;;  %v4382_v40 = vcombine.low %v2869_v53, %v2869_v53  ;;  %v9723_v53 = vld [vmem:[#allocation98_spill] sm:$0xff]  ;;  %v9733_v43 = vld [vmem:[#allocation108_spill] sm:$0xff]  ;;  %v9736_v16 = vld [vmem:[#allocation81_spill] sm:$0xff] }
 0x1dd   :  { %v9737_v47 = vld [vmem:[#allocation112_spill] sm:$0xff]  ;;  %v9739_v51 = vld [vmem:[#allocation114_spill] sm:$0xff]  ;;  %v9740_v55 = vld [vmem:[#allocation85_spill] sm:$0xff] }
 0x1de   :  { %v2461_v5 = vadd.f32 %v4762_v18, %v2421_v1  ;;  %5030 = vmatpush3.bf16.msra.mxu0 %v9714_v7  ;;  %v9738_v18 = vld [vmem:[#allocation83_spill] sm:$0xff]  ;;  %v9741_v1 = vld [vmem:[#allocation116_spill] sm:$0xff] }
 0x1df   :  { %5052 = vmatpush3.bf16.msra.mxu1 %v9715_v9  ;;  %5031 = vmatprep.subr.bf16.mxu0 %v9716_v42  ;;  %v9742_v42 = vld [vmem:[#allocation87_spill] sm:$0xff] }
 0x1e0   :  { %5053 = vmatprep.subr.bf16.mxu1 %v9717_v11 }
 0x1e2   :  { %5032 = vmatpush3.bf16.msra.mxu0 %v9718_v24 }
 0x1e3   :  { %5054 = vmatpush3.bf16.msra.mxu1 %v9719_v31  ;;  %5061 = vmatprep.subr.bf16.mxu0 %v9720_v58  ;;  %v9743_v31 = vld [vmem:[#allocation89_spill] sm:$0xff] }
 0x1e4   :  { %5083 = vmatprep.subr.bf16.mxu1 %v9721_v61 }
 0x1e5   :  { %3080 = vmatmul.mubr.bf16.vlgmr.msra.gmra.mrb[56].mxu0 %v4380_v20 }
 0x1e6   :  { %5062 = vmatpush3.bf16.msra.mxu0 %v9722_v25  ;;  %3120 = vmatmul.mubr.bf16.vlgmr.msra.gmra.mrb[56].mxu1 %v4382_v40  ;;  %v9745_v25 = vld [vmem:[#allocation93_spill] sm:$0xff] }
 0x1e7   :  { %5084 = vmatpush3.bf16.msra.mxu1 %v9723_v53  ;;  %5063 = vmatprep.subr.bf16.mxu0 %v9724_v26  ;;  %v4384_v53 = vcombine.low %v8201_v22, %v8201_v22 }
 0x1e8   :  { %5085 = vmatprep.subr.bf16.mxu1 %v9725_v52  ;;  %3159 = vmatprep.mubr.bf16.mxu0 %v4385_v49  ;;  %v9748_v52 = vld [vmem:[#allocation99_spill] sm:$0xff] }
 0x1e9   :  { %3199 = vmatprep.mubr.bf16.mxu1 %v4387_v35  ;;  %v9744_v35 = vld [vmem:[#allocation91_spill] sm:$0xff] }
 0x1ea   :  { %5064 = vmatpush3.bf16.msra.mxu0 %v9726_v60  ;;  %v9752_v60 = vld [vmem:[#allocation124_spill] sm:$0xff] }
 0x1eb   :  { %5086 = vmatpush3.bf16.msra.mxu1 %v9727_v10  ;;  %5065 = vmatprep.subr.bf16.mxu0 %v9728_v23  ;;  %v9753_v10 = vld [vmem:[#allocation107_spill] sm:$0xff]  ;;  %v9754_v23 = vld [vmem:[#allocation125_spill] sm:$0xff] }
 0x1ec   :  { %5087 = vmatprep.subr.bf16.mxu1 %v9729_v57  ;;  %v9755_v57 = vld [vmem:[#allocation109_spill] sm:$0xff] }
 0x1ee   :  { %5066 = vmatpush3.bf16.msra.mxu0 %v9730_v34  ;;  %v9757_v34 = vld [vmem:[#allocation111_spill] sm:$0xff] }
 0x1ef   :  { %5088 = vmatpush3.bf16.msra.mxu1 %v9731_v14  ;;  %5067 = vmatprep.subr.bf16.mxu0 %v9732_v48  ;;  %v9759_v14 = vld [vmem:[#allocation113_spill] sm:$0xff]  ;;  %v9760_v48 = vld [vmem:[#allocation128_spill] sm:$0xff] }
 0x1f0   :  { %5089 = vmatprep.subr.bf16.mxu1 %v9733_v43  ;;  %v9762_v43 = vld [vmem:[#allocation129_spill] sm:$0xff] }
 0x1f2   :  { %5068 = vmatpush3.bf16.msra.mxu0 %v9734_v30  ;;  %v9763_v30 = vld [vmem:[#allocation117_spill] sm:$0xff] }
 0x1f3   :  { %5090 = vmatpush3.bf16.msra.mxu1 %v9735_v45  ;;  %5069 = vmatprep.subr.bf16.mxu0 %v9736_v16 }
 0x1f4   :  { %5091 = vmatprep.subr.bf16.mxu1 %v9737_v47 }
 0x1f6   :  { %5070 = vmatpush3.bf16.msra.mxu0 %v9738_v18 }
 0x1f7   :  { %5092 = vmatpush3.bf16.msra.mxu1 %v9739_v51  ;;  %5071 = vmatprep.subr.bf16.mxu0 %v9740_v55  ;;  %v9764_v55 = vld [vmem:[#allocation118_spill] sm:$0xff] }
 0x1f8   :  { %v4782_v63 = vpop.f32.mrb[32].mxu0  ;;  %5093 = vmatprep.subr.bf16.mxu1 %v9741_v1 }
 0x1f9   :  { %v4783_v3 = vpop.f32.mrb[33].mxu0  ;;  %v4804_v12 = vpop.f32.mrb[32].mxu1 }
 0x1fa   :  { %v4784_v7 = vadd.f32 %v4783_v3, %v4782_v63  ;;  %v4785_v9 = vpop.f32.mrb[34].mxu0  ;;  %5072 = vmatpush3.bf16.msra.mxu0 %v9742_v42  ;;  %v4805_v11 = vpop.f32.mrb[33].mxu1 }
 0x1fb   :  { %v4786_v20 = vpop.f32.mrb[35].mxu0  ;;  %v4806_v24 = vadd.f32 %v4805_v11, %v4804_v12  ;;  %5094 = vmatpush3.bf16.msra.mxu1 %v7785_v17  ;;  %v4807_v40 = vpop.f32.mrb[34].mxu1  ;;  %5073 = vmatprep.subr.bf16.mxu0 %v9743_v31  ;;  %v8249_v17 = vld [vmem:[%s9362_s2 + $0x30] sm:$0xff] }
 0x1fc   :  { %v2501_v58 = vadd.f32 %v4784_v7, %v2461_v5  ;;  %v4808_v61 = vpop.f32.mrb[35].mxu1  ;;  %5095 = vmatprep.subr.bf16.mxu1 %v7797_v15  ;;  %v9746_v5 = vld [vmem:[#allocation95_spill] sm:$0xff]  ;;  %v4386_v15 = vcombine.low %v8207_v27, %v8207_v27  ;;  %v4389_v22 = vcombine.high %v8249_v17, %v8249_v17  ;;  %v9749_v27 = vld [vmem:[#allocation101_spill] sm:$0xff]  ;;  %v9768_v40 = vld [vmem:[#allocation122_spill] sm:$0xff] }
 0x1fd   :  { %v9765_v7 = vld [vmem:[#allocation119_spill] sm:$0xff]  ;;  %v9767_v20 = vld [vmem:[#allocation121_spill] sm:$0xff]  ;;  %v8321_v61 = vld [vmem:[%s9359_s4 + $0x400] sm:$0xff]  }
 0x1fe   :  { %v2541_v49 = vadd.f32 %v4806_v24, %v2501_v58  ;;  %5074 = vmatpush3.bf16.msra.mxu0 %v9744_v35  ;;  %v8301_v24 = vld [vmem:[%s9362_s2 + $0x40] sm:$0xff]  ;;  %v8395_v35 = vld [vmem:[%s9359_s4 + $0x4e8] sm:$0xff]  }
 0x1ff   :  { %5096 = vmatpush3.bf16.msra.mxu1 %v7811_v33  ;;  %5075 = vmatprep.subr.bf16.mxu0 %v9745_v25  ;;  %v8257_v33 = vld [vmem:[%s9362_s2 + $0x38] sm:$0xff]  ;;  %v4393_v31 = vcombine.high %v8301_v24, %v8301_v24 }
 0x200   :  { %5097 = vmatprep.subr.bf16.mxu1 %v7823_v19  ;;  %v9747_v19 = vld [vmem:[#allocation97_spill] sm:$0xff]  ;;  %v4391_v26 = vcombine.high %v8257_v33, %v8257_v33 }
 0x202   :  { %5076 = vmatpush3.bf16.msra.mxu0 %v9746_v5 }
 0x203   :  { %5098 = vmatpush3.bf16.msra.mxu1 %v7842_v29  ;;  %5105 = vmatprep.subr.bf16.mxu0 %v9747_v19  ;;  %v9750_v29 = vld [vmem:[#allocation103_spill] sm:$0xff] }
 0x204   :  { %5127 = vmatprep.subr.bf16.mxu1 %v7861_v37  ;;  %v9751_v37 = vld [vmem:[#allocation105_spill] sm:$0xff] }
 0x205   :  { %3160 = vmatmul.mubr.bf16.vlgmr.msra.gmra.mrb[60].mxu0 %v4384_v53 }
 0x206   :  { %5106 = vmatpush3.bf16.msra.mxu0 %v9748_v52  ;;  %3200 = vmatmul.mubr.bf16.vlgmr.msra.gmra.mrb[60].mxu1 %v4386_v15  ;;  %v8401_v15 = vld [vmem:[%s9359_s4 + $0x428] sm:$0xff]  }
 0x207   :  { %5128 = vmatpush3.bf16.msra.mxu1 %v7877_v41  ;;  %5107 = vmatprep.subr.bf16.mxu0 %v9749_v27  ;;  %v9756_v41 = vld [vmem:[#allocation126_spill] sm:$0xff]  ;;  %v8413_v27 = vld [vmem:[%s9359_s4 + $0x470] sm:$0xff]  }
 0x208   :  { %5129 = vmatprep.subr.bf16.mxu1 %v7884_v21  ;;  %3239 = vmatprep.mubr.bf16.mxu0 %v4389_v22  ;;  %v9758_v21 = vld [vmem:[#allocation127_spill] sm:$0xff] }
 0x209   :  { %3279 = vmatprep.mubr.bf16.mxu1 %v4391_v26  ;;  %v8407_v26 = vld [vmem:[%s9359_s4 + $0x4a8] sm:$0xff]  }
 0x20a   :  { %5108 = vmatpush3.bf16.msra.mxu0 %v9750_v29 }
 0x20b   :  { %5130 = vmatpush3.bf16.msra.mxu1 %v7891_v13  ;;  %5109 = vmatprep.subr.bf16.mxu0 %v9751_v37  ;;  %v9761_v13 = vld [vmem:[#allocation115_spill] sm:$0xff] }
 0x20c   :  { %5131 = vmatprep.subr.bf16.mxu1 %v9752_v60  ;;  %v8420_v60 = vld [vmem:[%s9359_s4 + $0x4f0] sm:$0xff]  }
 0x20e   :  { %5110 = vmatpush3.bf16.msra.mxu0 %v9753_v10 }
 0x20f   :  { %5132 = vmatpush3.bf16.msra.mxu1 %v9754_v23  ;;  %5111 = vmatprep.subr.bf16.mxu0 %v9755_v57  ;;  %v8428_v23 = vld [vmem:[%s9359_s4 + $0x430] sm:$0xff]  }
 0x210   :  { %5133 = vmatprep.subr.bf16.mxu1 %v9756_v41  ;;  %v8434_v57 = vld [vmem:[%s9359_s4 + $0x4b0] sm:$0xff]   ;;  %v8440_v41 = vld [vmem:[%s9359_s4 + $0x478] sm:$0xff]  }
 0x212   :  { %5112 = vmatpush3.bf16.msra.mxu0 %v9757_v34  ;;  %v8446_v34 = vld [vmem:[%s9359_s4 + $0x4f8] sm:$0xff]  }
 0x213   :  { %5134 = vmatpush3.bf16.msra.mxu1 %v9758_v21  ;;  %5113 = vmatprep.subr.bf16.mxu0 %v9759_v14  ;;  %v4392_v21 = vcombine.low %v8301_v24, %v8301_v24  ;;  %v8454_v14 = vld [vmem:[%s9362_s2 + $0x50] sm:$0xff]  ;;  %v8572_v24 = vld [vmem:[%s9359_s4 + $0x598] sm:$0xff]  }
 0x214   :  { %5135 = vmatprep.subr.bf16.mxu1 %v9760_v48  ;;  %v8459_v48 = vld [vmem:[%s9359_s4 + $0x438] sm:$0xff]   ;;  %9770 = vst [vmem:[#allocation16_spill] sm:$0xff] %v8572_v24 }
 0x216   :  { %5114 = vmatpush3.bf16.msra.mxu0 %v9761_v13 }
 0x217   :  { %5136 = vmatpush3.bf16.msra.mxu1 %v9762_v43  ;;  %5115 = vmatprep.subr.bf16.mxu0 %v9763_v30  ;;  %v8467_v43 = vld [vmem:[%s9362_s2 + $0x58] sm:$0xff] }
 0x218   :  { %v4826_v45 = vpop.f32.mrb[36].mxu0  ;;  %5137 = vmatprep.subr.bf16.mxu1 %v7940_v38  ;;  %v9766_v38 = vld [vmem:[#allocation120_spill] sm:$0xff]  ;;  %v8472_v30 = vld [vmem:[%s9359_s4 + $0x4b8] sm:$0xff]  }
 0x219   :  { %v4827_v16 = vpop.f32.mrb[37].mxu0  ;;  %v4848_v47 = vpop.f32.mrb[36].mxu1 }
 0x21a   :  { %v4828_v18 = vadd.f32 %v4827_v16, %v4826_v45  ;;  %v4829_v51 = vpop.f32.mrb[38].mxu0  ;;  %5116 = vmatpush3.bf16.msra.mxu0 %v9764_v55  ;;  %v4849_v63 = vpop.f32.mrb[37].mxu1  ;;  %v8478_v45 = vld [vmem:[%s9359_s4 + $0x540] sm:$0xff]  }
 0x21b   :  { %v4830_v1 = vpop.f32.mrb[39].mxu0  ;;  %v4850_v3 = vadd.f32 %v4849_v63, %v4848_v47  ;;  %5138 = vmatpush3.bf16.msra.mxu1 %v7947_v36  ;;  %v4851_v12 = vpop.f32.mrb[38].mxu1  ;;  %5117 = vmatprep.subr.bf16.mxu0 %v9765_v7  ;;  %v4388_v36 = vcombine.low %v8249_v17, %v8249_v17  ;;  %v8484_v16 = vld [vmem:[%s9359_s4 + $0x5c0] sm:$0xff]   ;;  %v4397_v47 = vcombine.high %v8454_v14, %v8454_v14  ;;  %v8506_v63 = vld [vmem:[%s9359_s4 + $0x548] sm:$0xff]   ;;  %v8530_v7 = vld [vmem:[%s9359_s4 + $0x550] sm:$0xff]  }
 0x21c   :  { %v2581_v9 = vadd.f32 %v4828_v18, %v2541_v49  ;;  %v4852_v42 = vpop.f32.mrb[39].mxu1  ;;  %5139 = vmatprep.subr.bf16.mxu1 %v7955_v44  ;;  %v4390_v44 = vcombine.low %v8257_v33, %v8257_v33  ;;  %v8389_v49 = vld [vmem:[%s9359_s4 + $0x468] sm:$0xff]   ;;  %v4399_v18 = vcombine.high %v8467_v43, %v8467_v43  ;;  %v8494_v51 = vld [vmem:[%s9359_s4 + $0x500] sm:$0xff]  }
 0x21d   :  { %v8500_v55 = vld [vmem:[%s9359_s4 + $0x580] sm:$0xff]   ;;  %v8512_v1 = vld [vmem:[%s9359_s4 + $0x5c8] sm:$0xff]   ;;  %v8542_v42 = vld [vmem:[%s9359_s4 + $0x510] sm:$0xff]  }
 0x21e   :  { %v8290_v11 = vadd.f32 %v4850_v3, %v2581_v9  ;;  %5118 = vmatpush3.bf16.msra.mxu0 %v9766_v38  ;;  %v8518_v3 = vld [vmem:[%s9359_s4 + $0x508] sm:$0xff]   ;;  %v8536_v9 = vld [vmem:[%s9359_s4 + $0x5d0] sm:$0xff]   ;;  %v8554_v38 = vld [vmem:[%s9359_s4 + $0x558] sm:$0xff]  }
 0x21f   :  { %5140 = vmatpush3.bf16.msra.mxu1 %v7964_v28  ;;  %5119 = vmatprep.subr.bf16.mxu0 %v9767_v20  ;;  %v8309_v28 = vld [vmem:[%s9362_s2 + $0x48] sm:$0xff]  ;;  %v8560_v20 = vld [vmem:[%s9359_s4 + $0x5d8] sm:$0xff]  }
 0x220   :  { %5141 = vmatprep.subr.bf16.mxu1 %v7971_v46  ;;  %v9769_v46 = vld [vmem:[#allocation123_spill] sm:$0xff]  ;;  %v4395_v58 = vcombine.high %v8309_v28, %v8309_v28  ;;  %v4394_v13 = vcombine.low %v8309_v28, %v8309_v28  ;;  %v8590_v28 = vld [vmem:[%s9359_s4 + $0x520] sm:$0xff]  }
 0x221   :  { %v8524_v12 = vld [vmem:[%s9359_s4 + $0x588] sm:$0xff]  }
 0x222   :  { %5120 = vmatpush3.bf16.msra.mxu0 %v9768_v40  ;;  %v8578_v40 = vld [vmem:[%s9359_s4 + $0x560] sm:$0xff]  }
 0x223   :  { %5142 = vmatpush3.bf16.msra.mxu1 %v7985_v50  ;;  %5149 = vmatprep.subr.bf16.mxu0 %v9769_v46  ;;  %v8328_v50 = vld [vmem:[%s9359_s4 + $0x448] sm:$0xff]   ;;  %v8596_v46 = vld [vmem:[%s9359_s4 + $0x5a0] sm:$0xff]  }
 0x224   :  { %5171 = vmatprep.subr.bf16.mxu1 %v7999_v59  ;;  %v8335_v59 = vld [vmem:[%s9359_s4 + $0x408] sm:$0xff]   ;;  %9772 = vst [vmem:[#allocation4_spill] sm:$0xff] %v8596_v46 }
 0x225   :  { %3240 = vmatmul.mubr.bf16.vlgmr.msra.gmra.mrb[64].mxu0 %v4388_v36  ;;  %v8566_v36 = vld [vmem:[%s9359_s4 + $0x518] sm:$0xff]  }
 0x226   :  { %5150 = vmatpush3.bf16.msra.mxu0 %v8321_v61  ;;  %3280 = vmatmul.mubr.bf16.vlgmr.msra.gmra.mrb[64].mxu1 %v4390_v44  ;;  %v8584_v44 = vld [vmem:[%s9359_s4 + $0x5e0] sm:$0xff]  }
 0x227   :  { %5172 = vmatpush3.bf16.msra.mxu1 %v8010_v54  ;;  %5151 = vmatprep.subr.bf16.mxu0 %v8328_v50  ;;  %v8342_v54 = vld [vmem:[%s9359_s4 + $0x450] sm:$0xff]   ;;  %9771 = vst [vmem:[#allocation3_spill] sm:$0xff] %v8584_v44 }
 0x228   :  { %5173 = vmatprep.subr.bf16.mxu1 %v8017_v62  ;;  %3319 = vmatprep.mubr.bf16.mxu0 %v4393_v31  ;;  %v8349_v62 = vld [vmem:[%s9359_s4 + $0x410] sm:$0xff]   ;;  %v8602_v31 = vld [vmem:[%s9359_s4 + $0x568] sm:$0xff]  }
 0x229   :  { %3359 = vmatprep.mubr.bf16.mxu1 %v4395_v58 }
 0x22a   :  { %5152 = vmatpush3.bf16.msra.mxu0 %v8335_v59 }
 0x22b   :  { %5174 = vmatpush3.bf16.msra.mxu1 %v8024_v32  ;;  %5153 = vmatprep.subr.bf16.mxu0 %v8342_v54  ;;  %v8356_v32 = vld [vmem:[%s9359_s4 + $0x458] sm:$0xff]  }
 0x22c   :  { %5175 = vmatprep.subr.bf16.mxu1 %v8031_v0  ;;  %v8363_v0 = vld [vmem:[%s9359_s4 + $0x418] sm:$0xff]  }
 0x22e   :  { %5154 = vmatpush3.bf16.msra.mxu0 %v8349_v62 }
 0x22f   :  { %5176 = vmatpush3.bf16.msra.mxu1 %v8038_v2  ;;  %5155 = vmatprep.subr.bf16.mxu0 %v8356_v32  ;;  %v8370_v2 = vld [vmem:[%s9359_s4 + $0x460] sm:$0xff]  }
 0x230   :  { %5177 = vmatprep.subr.bf16.mxu1 %v8045_v4  ;;  %v8377_v4 = vld [vmem:[%s9359_s4 + $0x420] sm:$0xff]  }
 0x232   :  { %5156 = vmatpush3.bf16.msra.mxu0 %v8363_v0 }
 0x233   :  { %5178 = vmatpush3.bf16.msra.mxu1 %v8052_v6  ;;  %5157 = vmatprep.subr.bf16.mxu0 %v8370_v2  ;;  %v8383_v6 = vld [vmem:[%s9359_s4 + $0x4a0] sm:$0xff]  }
 0x234   :  { %5179 = vmatprep.subr.bf16.mxu1 %v8059_v8 }
 0x236   :  { %5158 = vmatpush3.bf16.msra.mxu0 %v8377_v4 }
 0x237   :  { %5180 = vmatpush3.bf16.msra.mxu1 %v8383_v6  ;;  %5159 = vmatprep.subr.bf16.mxu0 %v8389_v49 }
 0x238   :  { %v4870_v8 = vpop.f32.mrb[40].mxu0  ;;  %5181 = vmatprep.subr.bf16.mxu1 %v8395_v35 }
 0x239   :  { %v4871_v25 = vpop.f32.mrb[41].mxu0  ;;  %v4892_v53 = vpop.f32.mrb[40].mxu1 }
 0x23a   :  { %v4872_v17 = vadd.f32 %v4871_v25, %v4870_v8  ;;  %v4873_v5 = vpop.f32.mrb[42].mxu0  ;;  %5160 = vmatpush3.bf16.msra.mxu0 %v8401_v15  ;;  %v4893_v33 = vpop.f32.mrb[41].mxu1  ;;  %v8608_v8 = vld [vmem:[%s9359_s4 + $0x5e8] sm:$0xff]  }
 0x23b   :  { %v4874_v19 = vpop.f32.mrb[43].mxu0  ;;  %v4894_v22 = vadd.f32 %v4893_v33, %v4892_v53  ;;  %5182 = vmatpush3.bf16.msra.mxu1 %v8407_v26  ;;  %v4895_v52 = vpop.f32.mrb[42].mxu1  ;;  %5161 = vmatprep.subr.bf16.mxu0 %v8413_v27  ;;  %9773 = vst [vmem:[#allocation19_spill] sm:$0xff] %v8608_v8  ;;  %v8614_v33 = vld [vmem:[%s9359_s4 + $0x528] sm:$0xff]  }
 0x23c   :  { %v2661_v29 = vadd.f32 %v4872_v17, %v8290_v11  ;;  %v4896_v37 = vpop.f32.mrb[43].mxu1  ;;  %5183 = vmatprep.subr.bf16.mxu1 %v8420_v60  ;;  %v8548_v11 = vld [vmem:[%s9359_s4 + $0x590] sm:$0xff]  }
 0x23e   :  { %v8423_v10 = vadd.f32 %v4894_v22, %v2661_v29  ;;  %5162 = vmatpush3.bf16.msra.mxu0 %v8428_v23  ;;  %v8620_v29 = vld [vmem:[%s9359_s4 + $0x5a8] sm:$0xff]  }
 0x23f   :  { %5184 = vmatpush3.bf16.msra.mxu1 %v8434_v57  ;;  %5163 = vmatprep.subr.bf16.mxu0 %v8440_v41  ;;  %9774 = vst [vmem:[#allocation5_spill] sm:$0xff] %v8620_v29 }
 0x240   :  { %5185 = vmatprep.subr.bf16.mxu1 %v8446_v34 }
 0x242   :  { %5164 = vmatpush3.bf16.msra.mxu0 %v8459_v48 }
 0x243   :  { %5186 = vmatpush3.bf16.msra.mxu1 %v8472_v30  ;;  %5193 = vmatprep.subr.bf16.mxu0 %v8478_v45 }
 0x244   :  { %5215 = vmatprep.subr.bf16.mxu1 %v8484_v16 }
 0x245   :  { %3320 = vmatmul.mubr.bf16.vlgmr.msra.gmra.mrb[68].mxu0 %v4392_v21  ;;  %v8626_v21 = vld [vmem:[%s9359_s4 + $0x570] sm:$0xff]  }
 0x246   :  { %5194 = vmatpush3.bf16.msra.mxu0 %v8494_v51  ;;  %3360 = vmatmul.mubr.bf16.vlgmr.msra.gmra.mrb[68].mxu1 %v4394_v13 }
 0x247   :  { %5216 = vmatpush3.bf16.msra.mxu1 %v8500_v55  ;;  %5195 = vmatprep.subr.bf16.mxu0 %v8506_v63 }
 0x248   :  { %5217 = vmatprep.subr.bf16.mxu1 %v8512_v1  ;;  %3399 = vmatprep.mubr.bf16.mxu0 %v4397_v47 }
 0x249   :  { %3439 = vmatprep.mubr.bf16.mxu1 %v4399_v18  ;;  %v8633_v18 = vld [vmem:[%s9359_s4 + $0x5f0] sm:$0xff]  }
 0x24a   :  { %5196 = vmatpush3.bf16.msra.mxu0 %v8518_v3  ;;  %9775 = vst [vmem:[#allocation6_spill] sm:$0xff] %v8633_v18 }
 0x24b   :  { %5218 = vmatpush3.bf16.msra.mxu1 %v8524_v12  ;;  %5197 = vmatprep.subr.bf16.mxu0 %v8530_v7 }
 0x24c   :  { %5219 = vmatprep.subr.bf16.mxu1 %v8536_v9 }
 0x24e   :  { %5198 = vmatpush3.bf16.msra.mxu0 %v8542_v42 }
 0x24f   :  { %5220 = vmatpush3.bf16.msra.mxu1 %v8548_v11  ;;  %5199 = vmatprep.subr.bf16.mxu0 %v8554_v38 }
 0x250   :  { %5221 = vmatprep.subr.bf16.mxu1 %v8560_v20 }
 0x252   :  { %5200 = vmatpush3.bf16.msra.mxu0 %v8566_v36 }
 0x253   :  { %5222 = vmatpush3.bf16.msra.mxu1 %v8572_v24  ;;  %5201 = vmatprep.subr.bf16.mxu0 %v8578_v40 }
 0x254   :  { %5223 = vmatprep.subr.bf16.mxu1 %v8584_v44  ;;  %v6110_v44 = vld [vmem:[%s9359_s4 + $0x28] sm:$0xff]  }
 0x256   :  { %5202 = vmatpush3.bf16.msra.mxu0 %v8590_v28 }
 0x257   :  { %5224 = vmatpush3.bf16.msra.mxu1 %v8596_v46  ;;  %5203 = vmatprep.subr.bf16.mxu0 %v8602_v31 }
 0x258   :  { %v4914_v58 = vpop.f32.mrb[44].mxu0  ;;  %5225 = vmatprep.subr.bf16.mxu1 %v8608_v8 }
 0x259   :  { %v4915_v25 = vpop.f32.mrb[45].mxu0  ;;  %v4936_v53 = vpop.f32.mrb[44].mxu1 }
 0x25a   :  { %v4916_v17 = vadd.f32 %v4915_v25, %v4914_v58  ;;  %v4917_v5 = vpop.f32.mrb[46].mxu0  ;;  %5204 = vmatpush3.bf16.msra.mxu0 %v8614_v33  ;;  %v4937_v19 = vpop.f32.mrb[45].mxu1  ;;  %v8641_v25 = vld [vmem:[%s9359_s4 + $0x530] sm:$0xff]  }
 0x25b   :  { %v4918_v22 = vpop.f32.mrb[47].mxu0  ;;  %v4938_v52 = vadd.f32 %v4937_v19, %v4936_v53  ;;  %5226 = vmatpush3.bf16.msra.mxu1 %v8620_v29  ;;  %v4939_v37 = vpop.f32.mrb[46].mxu1  ;;  %5205 = vmatprep.subr.bf16.mxu0 %v8626_v21  ;;  %v8653_v53 = vld [vmem:[%s9359_s4 + $0x578] sm:$0xff]   ;;  %v4396_v5 = vcombine.low %v8454_v14, %v8454_v14  ;;  %v6093_v14 = vld [vmem:[%s9359_s4 + $0x40] sm:$0xff]  }
 0x25c   :  { %v2741_v13 = vadd.f32 %v4916_v17, %v8423_v10  ;;  %v4940_v47 = vpop.f32.mrb[47].mxu1  ;;  %5227 = vmatprep.subr.bf16.mxu1 %v8633_v18  ;;  %v8647_v10 = vld [vmem:[%s9359_s4 + $0x5b0] sm:$0xff]   ;;  %v8659_v17 = vld [vmem:[%s9359_s4 + $0x5f8] sm:$0xff]   ;;  %v4398_v22 = vcombine.low %v8467_v43, %v8467_v43 }
 0x25d   :  { %9776 = vst [vmem:[#allocation22_spill] sm:$0xff] %v8647_v10  ;;  %9777 = vst [vmem:[#allocation7_spill] sm:$0xff] %v8659_v17  ;;  %v8667_v19 = vld [vmem:[%s9359_s4 + $0x538] sm:$0xff]   ;;  %v6095_v47 = vld [vmem:[%s9359_s4] sm:$0xff]  }
 0x25e   :  { %v8636_v58 = vadd.f32 %v4938_v52, %v2741_v13  ;;  %5206 = vmatpush3.bf16.msra.mxu0 %v8641_v25  ;;  %v8675_v52 = vld [vmem:[%s9363_s3] sm:$0xff]  ;;  %v8680_v37 = vld [vmem:[%s9359_s4 + $0x5b8] sm:$0xff]  }
 0x25f   :  { %5228 = vmatpush3.bf16.msra.mxu1 %v8647_v10  ;;  %5207 = vmatprep.subr.bf16.mxu0 %v8653_v53  ;;  %9778 = vst [vmem:[#allocation8_spill] sm:$0xff] %v8680_v37  ;;  %v4402_v43 = vcombine.high %v8675_v52, %v8675_v52  ;;  %v8692_v13 = vld [vmem:[%s9359_s4 + $0x600] sm:$0xff]   ;;  %v6108_v10 = vld [vmem:[%s9359_s4 + $0x68] sm:$0xff]  }
 0x260   :  { %5229 = vmatprep.subr.bf16.mxu1 %v8659_v17  ;;  %v6107_v17 = vld [vmem:[%s9359_s4 + $0x20] sm:$0xff]  }
 0x262   :  { %5208 = vmatpush3.bf16.msra.mxu0 %v8667_v19 }
 0x263   :  { %5230 = vmatpush3.bf16.msra.mxu1 %v8680_v37  ;;  %5559 = vmatprep.subr.bf16.mxu0 %v9528_v56  ;;  %v6104_v37 = vld [vmem:[%s9359_s4 + $0x18] sm:$0xff]  }
 0x264   :  { %5246 = vmatprep.subr.bf16.mxu1 %v6093_v14  ;;  %v6098_v14 = vld [vmem:[%s9359_s4 + $0x8] sm:$0xff]  }
 0x265   :  { %3400 = vmatmul.mubr.bf16.vlgmr.msra.gmra.mrb[72].mxu0 %v4396_v5  ;;  %v6096_v5 = vld [vmem:[%s9359_s4 + $0x48] sm:$0xff]  }
 0x266   :  { %5560 = vmatpush3.bf16.msra.mxu0 %v8692_v13  ;;  %3440 = vmatmul.mubr.bf16.vlgmr.msra.gmra.mrb[72].mxu1 %v4398_v22  ;;  %v8707_v22 = vld [vmem:[%s9359_s4 + $0x608] sm:$0xff]  }
 0x267   :  { %5247 = vmatpush3.bf16.msra.mxu1 %v6095_v47  ;;  %5561 = vmatprep.subr.bf16.mxu0 %v9528_v56  ;;  %v6099_v47 = vld [vmem:[%s9359_s4 + $0x50] sm:$0xff]  }
 0x268   :  { %5248 = vmatprep.subr.bf16.mxu1 %v6096_v5  ;;  %5575 = vmatprep.mubr.msk.bf16.mxu0 %vm6240_vm0, %v9528_v56  ;;  %v6101_v5 = vld [vmem:[%s9359_s4 + $0x10] sm:$0xff]  }
 0x269   :  { %3620 = vmatprep.mubr.bf16.mxu1 %v4402_v43  ;;  %v8720_v43 = vld [vmem:[%s9359_s4 + $0x610] sm:$0xff]  }
 0x26a   :  { %5562 = vmatpush3.bf16.msra.mxu0 %v8707_v22 }
 0x26b   :  { %5249 = vmatpush3.bf16.msra.mxu1 %v6098_v14  ;;  %5563 = vmatprep.subr.bf16.mxu0 %v9528_v56  ;;  %v6102_v14 = vld [vmem:[%s9359_s4 + $0x58] sm:$0xff]  }
 0x26c   :  { %5250 = vmatprep.subr.bf16.mxu1 %v6099_v47  ;;  %v8733_v47 = vld [vmem:[%s9359_s4 + $0x618] sm:$0xff]  }
 0x26d   :  { %9779 = vst [vmem:[#allocation25_spill] sm:$0xff] %v8733_v47 }
 0x26e   :  { %5564 = vmatpush3.bf16.msra.mxu0 %v8720_v43 }
 0x26f   :  { %5251 = vmatpush3.bf16.msra.mxu1 %v6101_v5  ;;  %5565 = vmatprep.subr.bf16.mxu0 %v9528_v56  ;;  %v6105_v5 = vld [vmem:[%s9359_s4 + $0x60] sm:$0xff]  }
 0x270   :  { %5252 = vmatprep.subr.bf16.mxu1 %v6102_v14  ;;  %v8746_v14 = vld [vmem:[%s9359_s4 + $0x620] sm:$0xff]  }
 0x271   :  { %9780 = vst [vmem:[#allocation9_spill] sm:$0xff] %v8746_v14 }
 0x272   :  { %5566 = vmatpush3.bf16.msra.mxu0 %v8733_v47 }
 0x273   :  { %5253 = vmatpush3.bf16.msra.mxu1 %v6104_v37  ;;  %5567 = vmatprep.subr.bf16.mxu0 %v9528_v56 }
 0x274   :  { %5254 = vmatprep.subr.bf16.mxu1 %v6105_v5 }
 0x276   :  { %5568 = vmatpush3.bf16.msra.mxu0 %v8746_v14  ;;  %v8759_v14 = vld [vmem:[%s9359_s4 + $0x628] sm:$0xff]  }
 0x277   :  { %5255 = vmatpush3.bf16.msra.mxu1 %v6107_v17  ;;  %5569 = vmatprep.subr.bf16.mxu0 %v9528_v56  ;;  %9781 = vst [vmem:[#allocation10_spill] sm:$0xff] %v8759_v14 }
 0x278   :  { %v4958_v37 = vpop.f32.mrb[48].mxu0  ;;  %5256 = vmatprep.subr.bf16.mxu1 %v6108_v10 }
 0x279   :  { %v4959_v5 = vpop.f32.mrb[49].mxu0  ;;  %v2860_v18 = vpop.f32.mrb[48].mxu1 }
 0x27a   :  { %v4960_v29 = vadd.f32 %v4959_v5, %v4958_v37  ;;  %v4961_v8 = vpop.f32.mrb[50].mxu0  ;;  %5570 = vmatpush3.bf16.msra.mxu0 %v8759_v14  ;;  %v5557_v17 = vpop.f32.mrb[49].mxu1  ;;  %v6111_v37 = vld [vmem:[%s9359_s4 + $0x70] sm:$0xff]  }
 0x27b   :  { %v4962_v46 = vpop.f32.mrb[51].mxu0  ;;  %5257 = vmatpush3.bf16.msra.mxu1 %v6110_v44  ;;  %v2863_v47 = vpop.f32.mrb[50].mxu1  ;;  %5571 = vmatprep.subr.bf16.mxu0 %v9528_v56  ;;  %v6113_v44 = vld [vmem:[%s9359_s4 + $0x30] sm:$0xff]   ;;  %v8798_v17 = vld [vmem:[%s9359_s4 + $0x638] sm:$0xff]  }
 0x27c   :  { %v2821_v10 = vadd.f32 %v4960_v29, %v8636_v58  ;;  %v5558_v8 = vpop.f32.mrb[51].mxu1  ;;  %5258 = vmatprep.subr.bf16.mxu1 %v6111_v37  ;;  %v8775_v46 = vld [vmem:[%s9359_s4 + $0x630] sm:$0xff]   ;;  %v5875_v58 = vld [vmem:[%s9362_s2 + $0x60] ss:$0 sps:$4 sm:$0xff]   ;;  %v8793_v47 = vld [vmem:[%s9363_s3 + $0x8] sm:$0xff]  ;;  %9784 = vst [vmem:[#allocation32_spill] sm:$0xff] %v8798_v17 }
 0x27d   :  { %9783 = vst [vmem:[#allocation11_spill] sm:$0xff] %v8775_v46  ;;  %v8806_v8 = vld [vmem:[%s9363_s3 + $0x10] sm:$0xff]  ;;  %v6116_v37 = vld [vmem:[%s9359_s4 + $0x38] sm:$0xff]  }
 0x27e   :  { %v8770_v5 = vadd.f32 %v2860_v18, %v2821_v10  ;;  %5572 = vmatpush3.bf16.msra.mxu0 %v8775_v46  ;;  %v6114_v18 = vld [vmem:[%s9359_s4 + $0x78] sm:$0xff]   ;;  %v4401_v10 = vcombine.low %v8675_v52, %v8675_v52  ;;  %v4404_v52 = vcombine.high %v8793_v47, %v8793_v47  ;;  %v4406_v29 = vcombine.high %v8806_v8, %v8806_v8 }
 0x27f   :  { %5259 = vmatpush3.bf16.msra.mxu1 %v6113_v44  ;;  %5573 = vmatprep.subr.bf16.mxu0 %v9528_v56  ;;  %v6117_v44 = vld [vmem:[%s9359_s4 + $0xc0] sm:$0xff]  }
 0x280   :  { %9782 = vst [vmem:[#allocation28_spill] sm:$0xff] %v8770_v5  ;;  %5260 = vmatprep.subr.bf16.mxu1 %v6114_v18  ;;  %v6118_v18 = vld [vmem:[%s9359_s4 + $0x140] sm:$0xff]  }
 0x282   :  { %5574 = vmatpush3.bf16.msra.mxu0 %v8798_v17 }
 0x283   :  { %5261 = vmatpush3.bf16.msra.mxu1 %v6116_v37  ;;  %5268 = vmatprep.subr.bf16.mxu0 %v6117_v44  ;;  %v6119_v37 = vld [vmem:[%s9359_s4 + $0x80] sm:$0xff]  }
 0x284   :  { %5290 = vmatprep.subr.bf16.mxu1 %v6118_v18  ;;  %v6120_v44 = vld [vmem:[%s9359_s4 + $0x100] sm:$0xff]   ;;  %v6121_v18 = vld [vmem:[%s9359_s4 + $0xc8] sm:$0xff]  }
 0x285   :  { %5576 = vmatmul.mubr.bf16.vlgmr.msra.gmra.mrb[76].mxu0 %v5875_v58  ;;  %v6122_v58 = vld [vmem:[%s9359_s4 + $0x148] sm:$0xff]  }
 0x286   :  { %5269 = vmatpush3.bf16.msra.mxu0 %v6119_v37  ;;  %3621 = vmatmul.mubr.bf16.vlgmr.msra.gmra.mrb[76].mxu1 %v4401_v10  ;;  %v6123_v10 = vld [vmem:[%s9359_s4 + $0x88] sm:$0xff]  }
 0x287   :  { %5291 = vmatpush3.bf16.msra.mxu1 %v6120_v44  ;;  %5270 = vmatprep.subr.bf16.mxu0 %v6121_v18  ;;  %v6124_v37 = vld [vmem:[%s9359_s4 + $0x108] sm:$0xff]   ;;  %v6125_v44 = vld [vmem:[%s9359_s4 + $0xd0] sm:$0xff]  }
 0x288   :  { %5292 = vmatprep.subr.bf16.mxu1 %v6122_v58  ;;  %3660 = vmatprep.mubr.bf16.mxu0 %v4404_v52  ;;  %v6126_v52 = vld [vmem:[%s9359_s4 + $0x150] sm:$0xff]   ;;  %v6129_v58 = vld [vmem:[%s9359_s4 + $0xd8] sm:$0xff]  }
 0x289   :  { %3700 = vmatprep.mubr.bf16.mxu1 %v4406_v29  ;;  %v6127_v29 = vld [vmem:[%s9359_s4 + $0x90] sm:$0xff]  }
 0x28a   :  { %5271 = vmatpush3.bf16.msra.mxu0 %v6123_v10  ;;  %v6128_v18 = vld [vmem:[%s9359_s4 + $0x110] sm:$0xff]   ;;  %v6130_v10 = vld [vmem:[%s9359_s4 + $0x158] sm:$0xff]  }
 0x28b   :  { %5293 = vmatpush3.bf16.msra.mxu1 %v6124_v37  ;;  %5272 = vmatprep.subr.bf16.mxu0 %v6125_v44  ;;  %v6131_v37 = vld [vmem:[%s9359_s4 + $0x98] sm:$0xff]  }
 0x28c   :  { %5294 = vmatprep.subr.bf16.mxu1 %v6126_v52  ;;  %v6132_v44 = vld [vmem:[%s9359_s4 + $0x118] sm:$0xff]   ;;  %v6133_v52 = vld [vmem:[%s9359_s4 + $0xe0] sm:$0xff]  }
 0x28e   :  { %5273 = vmatpush3.bf16.msra.mxu0 %v6127_v29  ;;  %v6134_v29 = vld [vmem:[%s9359_s4 + $0x160] sm:$0xff]  }
 0x28f   :  { %5295 = vmatpush3.bf16.msra.mxu1 %v6128_v18  ;;  %5274 = vmatprep.subr.bf16.mxu0 %v6129_v58  ;;  %v6135_v18 = vld [vmem:[%s9359_s4 + $0xa0] sm:$0xff]  }
 0x290   :  { %5296 = vmatprep.subr.bf16.mxu1 %v6130_v10  ;;  %v6136_v58 = vld [vmem:[%s9359_s4 + $0x120] sm:$0xff]   ;;  %v6137_v10 = vld [vmem:[%s9359_s4 + $0xe8] sm:$0xff]  }
 0x292   :  { %5275 = vmatpush3.bf16.msra.mxu0 %v6131_v37 }
 0x293   :  { %5297 = vmatpush3.bf16.msra.mxu1 %v6132_v44  ;;  %5276 = vmatprep.subr.bf16.mxu0 %v6133_v52  ;;  %v6138_v44 = vld [vmem:[%s9359_s4 + $0x168] sm:$0xff]  }
 0x294   :  { %5298 = vmatprep.subr.bf16.mxu1 %v6134_v29 }
 0x296   :  { %5277 = vmatpush3.bf16.msra.mxu0 %v6135_v18 }
 0x297   :  { %5299 = vmatpush3.bf16.msra.mxu1 %v6136_v58  ;;  %5278 = vmatprep.subr.bf16.mxu0 %v6137_v10  ;;  %v6139_v58 = vld [vmem:[%s9359_s4 + $0xa8] sm:$0xff]  }
 0x298   :  { %v4989_v37 = vpop.f32.mrb[52].mxu0  ;;  %5300 = vmatprep.subr.bf16.mxu1 %v6138_v44  ;;  %v6140_v10 = vld [vmem:[%s9359_s4 + $0x128] sm:$0xff]   ;;  %v6141_v44 = vld [vmem:[%s9359_s4 + $0xf0] sm:$0xff]  }
 0x299   :  { %v5011_v52 = vpop.f32.mrb[52].mxu1  ;;  %v4990_v29 = vpop.f32.mrb[53].mxu0 }
 0x29a   :  { %v4991_v5 = vadd.f32 %v4990_v29, %v4989_v37  ;;  %v5012_v18 = vpop.f32.mrb[53].mxu1  ;;  %v4992_v39 = vpop.f32.mrb[54].mxu0  ;;  %5279 = vmatpush3.bf16.msra.mxu0 %v6139_v58  ;;  %v6147_v58 = vld [vmem:[%s9359_s4 + $0xb8] sm:$0xff]  }
 0x29b   :  { %v5013_v17 = vadd.f32 %v5012_v18, %v5011_v52  ;;  %v4993_v46 = vpop.f32.mrb[55].mxu0  ;;  %5301 = vmatpush3.bf16.msra.mxu1 %v6140_v10  ;;  %v5014_v14 = vpop.f32.mrb[54].mxu1  ;;  %5280 = vmatprep.subr.bf16.mxu0 %v6141_v44  ;;  %v6142_v39 = vld [vmem:[%s9359_s4 + $0x170] sm:$0xff]   ;;  %v6145_v52 = vld [vmem:[%s9359_s4 + $0xf8] sm:$0xff]   ;;  %v4405_v10 = vcombine.low %v8806_v8, %v8806_v8  ;;  %v8922_v44 = vld [vmem:[%s9363_s3 + $0x20] sm:$0xff] }
 0x29c   :  { %v5015_v37 = vpop.f32.mrb[55].mxu1  ;;  %5302 = vmatprep.subr.bf16.mxu1 %v6142_v39  ;;  %v6143_v46 = vld [vmem:[%s9359_s4 + $0xb0] sm:$0xff]   ;;  %v8912_v18 = vld [vmem:[%s9363_s3 + $0x18] sm:$0xff]  ;;  %v6150_v39 = vld [vmem:[%s9359_s4 + $0x240] sm:$0xff]  }
 0x29d   :  { %v8893_v29 = vadd.f32 %v5013_v17, %v4991_v5  ;;  %v6144_v14 = vld [vmem:[%s9359_s4 + $0x130] sm:$0xff]   ;;  %v6146_v5 = vld [vmem:[%s9359_s4 + $0x178] sm:$0xff]   ;;  %v4403_v17 = vcombine.low %v8793_v47, %v8793_v47  ;;  %v6149_v37 = vld [vmem:[%s9359_s4 + $0x1c0] sm:$0xff]   ;;  %v4408_v8 = vcombine.high %v8912_v18, %v8912_v18 }
 0x29e   :  { %5281 = vmatpush3.bf16.msra.mxu0 %v6143_v46  ;;  %v6148_v47 = vld [vmem:[%s9359_s4 + $0x138] sm:$0xff]   ;;  %v4410_v46 = vcombine.high %v8922_v44, %v8922_v44 }
 0x29f   :  { %5303 = vmatpush3.bf16.msra.mxu1 %v6144_v14  ;;  %5282 = vmatprep.subr.bf16.mxu0 %v6145_v52  ;;  %v6151_v14 = vld [vmem:[%s9359_s4 + $0x180] sm:$0xff]  }
 0x2a0   :  { %5304 = vmatprep.subr.bf16.mxu1 %v6146_v5  ;;  %v6152_v52 = vld [vmem:[%s9359_s4 + $0x200] sm:$0xff]   ;;  %v6153_v5 = vld [vmem:[%s9359_s4 + $0x1c8] sm:$0xff]  }
 0x2a2   :  { %5283 = vmatpush3.bf16.msra.mxu0 %v6147_v58  ;;  %v6155_v58 = vld [vmem:[%s9359_s4 + $0x188] sm:$0xff]  }
 0x2a3   :  { %5305 = vmatpush3.bf16.msra.mxu1 %v6148_v47  ;;  %5312 = vmatprep.subr.bf16.mxu0 %v6149_v37  ;;  %v6157_v47 = vld [vmem:[%s9359_s4 + $0x1d0] sm:$0xff]  }
 0x2a4   :  { %5334 = vmatprep.subr.bf16.mxu1 %v6150_v39  ;;  %v6158_v37 = vld [vmem:[%s9359_s4 + $0x250] sm:$0xff]  }
 0x2a5   :  { %3661 = vmatmul.mubr.bf16.vlgmr.msra.gmra.mrb[80].mxu0 %v4403_v17  ;;  %v6154_v17 = vld [vmem:[%s9359_s4 + $0x248] sm:$0xff]   ;;  %v6159_v39 = vld [vmem:[%s9359_s4 + $0x190] sm:$0xff]  }
 0x2a6   :  { %5313 = vmatpush3.bf16.msra.mxu0 %v6151_v14  ;;  %3701 = vmatmul.mubr.bf16.vlgmr.msra.gmra.mrb[80].mxu1 %v4405_v10  ;;  %v6156_v10 = vld [vmem:[%s9359_s4 + $0x208] sm:$0xff]   ;;  %v6162_v14 = vld [vmem:[%s9359_s4 + $0x258] sm:$0xff]  }
 0x2a7   :  { %5335 = vmatpush3.bf16.msra.mxu1 %v6152_v52  ;;  %5314 = vmatprep.subr.bf16.mxu0 %v6153_v5  ;;  %v6163_v52 = vld [vmem:[%s9359_s4 + $0x198] sm:$0xff]  }
 0x2a8   :  { %5336 = vmatprep.subr.bf16.mxu1 %v6154_v17  ;;  %3740 = vmatprep.mubr.bf16.mxu0 %v4408_v8  ;;  %v6160_v8 = vld [vmem:[%s9359_s4 + $0x210] sm:$0xff]   ;;  %v6164_v5 = vld [vmem:[%s9359_s4 + $0x218] sm:$0xff]   ;;  %v6165_v17 = vld [vmem:[%s9359_s4 + $0x1e0] sm:$0xff]  }
 0x2a9   :  { %3780 = vmatprep.mubr.bf16.mxu1 %v4410_v46  ;;  %v6161_v46 = vld [vmem:[%s9359_s4 + $0x1d8] sm:$0xff]  }
 0x2aa   :  { %5315 = vmatpush3.bf16.msra.mxu0 %v6155_v58  ;;  %v6166_v58 = vld [vmem:[%s9359_s4 + $0x260] sm:$0xff]  }
 0x2ab   :  { %5337 = vmatpush3.bf16.msra.mxu1 %v6156_v10  ;;  %5316 = vmatprep.subr.bf16.mxu0 %v6157_v47  ;;  %v6167_v10 = vld [vmem:[%s9359_s4 + $0x1a0] sm:$0xff]  }
 0x2ac   :  { %5338 = vmatprep.subr.bf16.mxu1 %v6158_v37  ;;  %v6168_v47 = vld [vmem:[%s9359_s4 + $0x220] sm:$0xff]   ;;  %v6169_v37 = vld [vmem:[%s9359_s4 + $0x1e8] sm:$0xff]  }
 0x2ae   :  { %5317 = vmatpush3.bf16.msra.mxu0 %v6159_v39 }
 0x2af   :  { %5339 = vmatpush3.bf16.msra.mxu1 %v6160_v8  ;;  %5318 = vmatprep.subr.bf16.mxu0 %v6161_v46  ;;  %v6170_v8 = vld [vmem:[%s9359_s4 + $0x268] sm:$0xff]  }
 0x2b0   :  { %5340 = vmatprep.subr.bf16.mxu1 %v6162_v14 }
 0x2b2   :  { %5319 = vmatpush3.bf16.msra.mxu0 %v6163_v52 }
 0x2b3   :  { %5341 = vmatpush3.bf16.msra.mxu1 %v6164_v5  ;;  %5320 = vmatprep.subr.bf16.mxu0 %v6165_v17  ;;  %v6171_v17 = vld [vmem:[%s9359_s4 + $0x1a8] sm:$0xff]  }
 0x2b4   :  { %5342 = vmatprep.subr.bf16.mxu1 %v6166_v58 }
 0x2b6   :  { %5321 = vmatpush3.bf16.msra.mxu0 %v6167_v10 }
 0x2b7   :  { %5343 = vmatpush3.bf16.msra.mxu1 %v6168_v47  ;;  %5322 = vmatprep.subr.bf16.mxu0 %v6169_v37  ;;  %v6172_v37 = vld [vmem:[%s9359_s4 + $0x228] sm:$0xff]  }
 0x2b8   :  { %v5033_v39 = vpop.f32.mrb[56].mxu0  ;;  %5344 = vmatprep.subr.bf16.mxu1 %v6170_v8  ;;  %v6173_v8 = vld [vmem:[%s9359_s4 + $0x1f0] sm:$0xff]  }
 0x2b9   :  { %v5034_v46 = vpop.f32.mrb[57].mxu0  ;;  %v5055_v14 = vpop.f32.mrb[56].mxu1 }
 0x2ba   :  { %v5035_v52 = vadd.f32 %v5034_v46, %v5033_v39  ;;  %v5036_v5 = vpop.f32.mrb[58].mxu0  ;;  %5323 = vmatpush3.bf16.msra.mxu0 %v6171_v17  ;;  %v5056_v58 = vpop.f32.mrb[57].mxu1  ;;  %v6175_v17 = vld [vmem:[%s9359_s4 + $0x1b0] sm:$0xff]  }
 0x2bb   :  { %v5037_v10 = vpop.f32.mrb[59].mxu0  ;;  %v5057_v47 = vadd.f32 %v5056_v58, %v5055_v14  ;;  %5345 = vmatpush3.bf16.msra.mxu1 %v6172_v37  ;;  %v5058_v24 = vpop.f32.mrb[58].mxu1  ;;  %5324 = vmatprep.subr.bf16.mxu0 %v6173_v8  ;;  %v6174_v5 = vld [vmem:[%s9359_s4 + $0x270] sm:$0xff]   ;;  %v4407_v58 = vcombine.low %v8912_v18, %v8912_v18  ;;  %v4409_v37 = vcombine.low %v8922_v44, %v8922_v44  ;;  %v6180_v18 = vld [vmem:[%s9359_s4 + $0x238] sm:$0xff]  }
 0x2bc   :  { %v3082_v39 = vadd.f32 %v5035_v52, %v8893_v29  ;;  %v5059_v46 = vpop.f32.mrb[59].mxu1  ;;  %5346 = vmatprep.subr.bf16.mxu1 %v6174_v5  ;;  %v6176_v24 = vld [vmem:[%s9359_s4 + $0x230] sm:$0xff]   ;;  %v6177_v29 = vld [vmem:[%s9359_s4 + $0x1f8] sm:$0xff]   ;;  %v9029_v10 = vld [vmem:[%s9363_s3 + $0x28] sm:$0xff] }
 0x2bd   :  { %v6178_v52 = vld [vmem:[%s9359_s4 + $0x278] sm:$0xff]   ;;  %v9039_v8 = vld [vmem:[%s9363_s3 + $0x30] sm:$0xff]  ;;  %v6182_v46 = vld [vmem:[%s9359_s4 + $0x340] sm:$0xff]   ;;  %v4412_v44 = vcombine.high %v9029_v10, %v9029_v10 }
 0x2be   :  { %v9010_v14 = vadd.f32 %v5057_v47, %v3082_v39  ;;  %5325 = vmatpush3.bf16.msra.mxu0 %v6175_v17  ;;  %v6179_v47 = vld [vmem:[%s9359_s4 + $0x1b8] sm:$0xff]   ;;  %v6181_v39 = vld [vmem:[%s9359_s4 + $0x2c0] sm:$0xff]   ;;  %v4414_v5 = vcombine.high %v9039_v8, %v9039_v8 }
 0x2bf   :  { %5347 = vmatpush3.bf16.msra.mxu1 %v6176_v24  ;;  %5326 = vmatprep.subr.bf16.mxu0 %v6177_v29  ;;  %v6183_v17 = vld [vmem:[%s9359_s4 + $0x280] sm:$0xff]   ;;  %v6185_v29 = vld [vmem:[%s9359_s4 + $0x2c8] sm:$0xff]  }
 0x2c0   :  { %5348 = vmatprep.subr.bf16.mxu1 %v6178_v52  ;;  %v6184_v24 = vld [vmem:[%s9359_s4 + $0x300] sm:$0xff]   ;;  %v6186_v52 = vld [vmem:[%s9359_s4 + $0x348] sm:$0xff]  }
 0x2c2   :  { %5327 = vmatpush3.bf16.msra.mxu0 %v6179_v47  ;;  %v6188_v47 = vld [vmem:[%s9359_s4 + $0x308] sm:$0xff]  }
 0x2c3   :  { %5349 = vmatpush3.bf16.msra.mxu1 %v6180_v18  ;;  %5356 = vmatprep.subr.bf16.mxu0 %v6181_v39  ;;  %v6190_v18 = vld [vmem:[%s9359_s4 + $0x350] sm:$0xff]  }
 0x2c4   :  { %5378 = vmatprep.subr.bf16.mxu1 %v6182_v46  ;;  %v6191_v39 = vld [vmem:[%s9359_s4 + $0x290] sm:$0xff]  }
 0x2c5   :  { %3741 = vmatmul.mubr.bf16.vlgmr.msra.gmra.mrb[84].mxu0 %v4407_v58  ;;  %v6187_v58 = vld [vmem:[%s9359_s4 + $0x288] sm:$0xff]   ;;  %v6192_v46 = vld [vmem:[%s9359_s4 + $0x310] sm:$0xff]  }
 0x2c6   :  { %5357 = vmatpush3.bf16.msra.mxu0 %v6183_v17  ;;  %3781 = vmatmul.mubr.bf16.vlgmr.msra.gmra.mrb[84].mxu1 %v4409_v37  ;;  %v6189_v37 = vld [vmem:[%s9359_s4 + $0x2d0] sm:$0xff]   ;;  %v6195_v17 = vld [vmem:[%s9359_s4 + $0x298] sm:$0xff]  }
 0x2c7   :  { %5379 = vmatpush3.bf16.msra.mxu1 %v6184_v24  ;;  %5358 = vmatprep.subr.bf16.mxu0 %v6185_v29  ;;  %v6196_v24 = vld [vmem:[%s9359_s4 + $0x318] sm:$0xff]   ;;  %v6197_v29 = vld [vmem:[%s9359_s4 + $0x2e0] sm:$0xff]  }
 0x2c8   :  { %5380 = vmatprep.subr.bf16.mxu1 %v6186_v52  ;;  %3820 = vmatprep.mubr.bf16.mxu0 %v4412_v44  ;;  %v6193_v44 = vld [vmem:[%s9359_s4 + $0x2d8] sm:$0xff]   ;;  %v6198_v52 = vld [vmem:[%s9359_s4 + $0x360] sm:$0xff]  }
 0x2c9   :  { %3860 = vmatprep.mubr.bf16.mxu1 %v4414_v5  ;;  %v6194_v5 = vld [vmem:[%s9359_s4 + $0x358] sm:$0xff]  }
 0x2ca   :  { %5359 = vmatpush3.bf16.msra.mxu0 %v6187_v58  ;;  %v6199_v58 = vld [vmem:[%s9359_s4 + $0x2a0] sm:$0xff]  }
 0x2cb   :  { %5381 = vmatpush3.bf16.msra.mxu1 %v6188_v47  ;;  %5360 = vmatprep.subr.bf16.mxu0 %v6189_v37  ;;  %v6200_v47 = vld [vmem:[%s9359_s4 + $0x320] sm:$0xff]   ;;  %v6201_v37 = vld [vmem:[%s9359_s4 + $0x2e8] sm:$0xff]  }
 0x2cc   :  { %5382 = vmatprep.subr.bf16.mxu1 %v6190_v18 }
 0x2ce   :  { %5361 = vmatpush3.bf16.msra.mxu0 %v6191_v39  ;;  %v6202_v39 = vld [vmem:[%s9359_s4 + $0x368] sm:$0xff]  }
 0x2cf   :  { %5383 = vmatpush3.bf16.msra.mxu1 %v6192_v46  ;;  %5362 = vmatprep.subr.bf16.mxu0 %v6193_v44 }
 0x2d0   :  { %5384 = vmatprep.subr.bf16.mxu1 %v6194_v5 }
 0x2d2   :  { %5363 = vmatpush3.bf16.msra.mxu0 %v6195_v17 }
 0x2d3   :  { %5385 = vmatpush3.bf16.msra.mxu1 %v6196_v24  ;;  %5364 = vmatprep.subr.bf16.mxu0 %v6197_v29  ;;  %v6203_v24 = vld [vmem:[%s9359_s4 + $0x2a8] sm:$0xff]  }
 0x2d4   :  { %5386 = vmatprep.subr.bf16.mxu1 %v6198_v52 }
 0x2d6   :  { %5365 = vmatpush3.bf16.msra.mxu0 %v6199_v58 }
 0x2d7   :  { %5387 = vmatpush3.bf16.msra.mxu1 %v6200_v47  ;;  %5366 = vmatprep.subr.bf16.mxu0 %v6201_v37  ;;  %v6204_v47 = vld [vmem:[%s9359_s4 + $0x328] sm:$0xff]  }
 0x2d8   :  { %v5077_v18 = vpop.f32.mrb[60].mxu0  ;;  %5388 = vmatprep.subr.bf16.mxu1 %v6202_v39  ;;  %v6205_v39 = vld [vmem:[%s9359_s4 + $0x2f0] sm:$0xff]  }
 0x2d9   :  { %v5078_v46 = vpop.f32.mrb[61].mxu0  ;;  %v5099_v44 = vpop.f32.mrb[60].mxu1 }
 0x2da   :  { %v5079_v5 = vadd.f32 %v5078_v46, %v5077_v18  ;;  %v5080_v17 = vpop.f32.mrb[62].mxu0  ;;  %5367 = vmatpush3.bf16.msra.mxu0 %v6203_v24  ;;  %v5100_v29 = vpop.f32.mrb[61].mxu1  ;;  %v6207_v24 = vld [vmem:[%s9359_s4 + $0x2b0] sm:$0xff]  }
 0x2db   :  { %v5081_v52 = vpop.f32.mrb[63].mxu0  ;;  %v5101_v58 = vadd.f32 %v5100_v29, %v5099_v44  ;;  %5389 = vmatpush3.bf16.msra.mxu1 %v6204_v47  ;;  %v5102_v37 = vpop.f32.mrb[62].mxu1  ;;  %5368 = vmatprep.subr.bf16.mxu0 %v6205_v39  ;;  %v6206_v17 = vld [vmem:[%s9359_s4 + $0x370] sm:$0xff]   ;;  %v6211_v47 = vld [vmem:[%s9359_s4 + $0x2b8] sm:$0xff]   ;;  %v9156_v39 = vld [vmem:[%s9363_s3 + $0x40] sm:$0xff] }
 0x2dc   :  { %v3162_v18 = vadd.f32 %v5079_v5, %v9010_v14  ;;  %v5103_v46 = vpop.f32.mrb[63].mxu1  ;;  %5390 = vmatprep.subr.bf16.mxu1 %v6206_v17  ;;  %v6208_v29 = vld [vmem:[%s9359_s4 + $0x330] sm:$0xff]   ;;  %v6209_v14 = vld [vmem:[%s9359_s4 + $0x2f8] sm:$0xff]   ;;  %v4411_v52 = vcombine.low %v9029_v10, %v9029_v10  ;;  %v4413_v37 = vcombine.low %v9039_v8, %v9039_v8  ;;  %v4418_v17 = vcombine.high %v9156_v39, %v9156_v39 }
 0x2dd   :  { %v6210_v5 = vld [vmem:[%s9359_s4 + $0x378] sm:$0xff]   ;;  %v6214_v46 = vld [vmem:[%s9359_s4 + $0x440] sm:$0xff]  }
 0x2de   :  { %v9127_v44 = vadd.f32 %v5101_v58, %v3162_v18  ;;  %5369 = vmatpush3.bf16.msra.mxu0 %v6207_v24  ;;  %v9146_v58 = vld [vmem:[%s9363_s3 + $0x38] sm:$0xff]  ;;  %v6213_v18 = vld [vmem:[%s9359_s4 + $0x3c0] sm:$0xff]  }
 0x2df   :  { %5391 = vmatpush3.bf16.msra.mxu1 %v6208_v29  ;;  %5370 = vmatprep.subr.bf16.mxu0 %v6209_v14  ;;  %v6212_v10 = vld [vmem:[%s9359_s4 + $0x338] sm:$0xff]   ;;  %v4416_v8 = vcombine.high %v9146_v58, %v9146_v58  ;;  %v6215_v24 = vld [vmem:[%s9359_s4 + $0x380] sm:$0xff]   ;;  %v6216_v29 = vld [vmem:[%s9359_s4 + $0x3c8] sm:$0xff]  }
 0x2e0   :  { %5392 = vmatprep.subr.bf16.mxu1 %v6210_v5  ;;  %v6217_v14 = vld [vmem:[%s9359_s4 + $0x388] sm:$0xff]   ;;  %v6220_v5 = vld [vmem:[%s9359_s4 + $0x3d8] sm:$0xff]  }
 0x2e2   :  { %5371 = vmatpush3.bf16.msra.mxu0 %v6211_v47 }
 0x2e3   :  { %5393 = vmatpush3.bf16.msra.mxu1 %v6212_v10  ;;  %5400 = vmatprep.subr.bf16.mxu0 %v6213_v18 }
 0x2e4   :  { %5422 = vmatprep.subr.bf16.mxu1 %v6214_v46 }
 0x2e5   :  { %3821 = vmatmul.mubr.bf16.vlgmr.msra.gmra.mrb[88].mxu0 %v4411_v52 }
 0x2e6   :  { %5401 = vmatpush3.bf16.msra.mxu0 %v6215_v24  ;;  %3861 = vmatmul.mubr.bf16.vlgmr.msra.gmra.mrb[88].mxu1 %v4413_v37 }
 0x2e7   :  { %5423 = vmatpush3.bf16.msra.mxu1 %v8321_v61  ;;  %5402 = vmatprep.subr.bf16.mxu0 %v6216_v29  ;;  %v6218_v61 = vld [vmem:[%s9359_s4 + $0x3d0] sm:$0xff]  }
 0x2e8   :  { %5424 = vmatprep.subr.bf16.mxu1 %v8328_v50  ;;  %3900 = vmatprep.mubr.bf16.mxu0 %v4416_v8  ;;  %v6219_v50 = vld [vmem:[%s9359_s4 + $0x390] sm:$0xff]  }
 0x2e9   :  { %3940 = vmatprep.mubr.bf16.mxu1 %v4418_v17  ;;  %v6226_v17 = vld [vmem:[%s9359_s4 + $0x3f0] sm:$0xff]  }
 0x2ea   :  { %5403 = vmatpush3.bf16.msra.mxu0 %v6217_v14  ;;  %v6227_v14 = vld [vmem:[%s9359_s4 + $0x3b0] sm:$0xff]  }
 0x2eb   :  { %5425 = vmatpush3.bf16.msra.mxu1 %v8335_v59  ;;  %5404 = vmatprep.subr.bf16.mxu0 %v6218_v61  ;;  %v6221_v59 = vld [vmem:[%s9359_s4 + $0x398] sm:$0xff]  }
 0x2ec   :  { %5426 = vmatprep.subr.bf16.mxu1 %v8342_v54  ;;  %v6222_v54 = vld [vmem:[%s9359_s4 + $0x3e0] sm:$0xff]   ;;  %v6229_v61 = vld [vmem:[%s9359_s4 + $0x3b8] sm:$0xff]  }
 0x2ee   :  { %5405 = vmatpush3.bf16.msra.mxu0 %v6219_v50 }
 0x2ef   :  { %5427 = vmatpush3.bf16.msra.mxu1 %v8349_v62  ;;  %5406 = vmatprep.subr.bf16.mxu0 %v6220_v5  ;;  %v6223_v62 = vld [vmem:[%s9359_s4 + $0x3a0] sm:$0xff]  }
 0x2f0   :  { %5428 = vmatprep.subr.bf16.mxu1 %v8356_v32  ;;  %v6224_v32 = vld [vmem:[%s9359_s4 + $0x3e8] sm:$0xff]   ;;  %v6231_v5 = vld [vmem:[%s9359_s4 + $0x480] sm:$0xff]  }
 0x2f2   :  { %5407 = vmatpush3.bf16.msra.mxu0 %v6221_v59  ;;  %v6236_v59 = vld [vmem:[%s9359_s4 + $0x4d8] sm:$0xff]  }
 0x2f3   :  { %5429 = vmatpush3.bf16.msra.mxu1 %v8363_v0  ;;  %5408 = vmatprep.subr.bf16.mxu0 %v6222_v54 }
 0x2f4   :  { %5430 = vmatprep.subr.bf16.mxu1 %v8370_v2  ;;  %v6225_v2 = vld [vmem:[%s9359_s4 + $0x3a8] sm:$0xff]  }
 0x2f6   :  { %5409 = vmatpush3.bf16.msra.mxu0 %v6223_v62 }
 0x2f7   :  { %5431 = vmatpush3.bf16.msra.mxu1 %v8377_v4  ;;  %5410 = vmatprep.subr.bf16.mxu0 %v6224_v32 }
 0x2f8   :  { %v5121_v0 = vpop.f32.mrb[64].mxu0  ;;  %5432 = vmatprep.subr.bf16.mxu1 %v8389_v49 }
 0x2f9   :  { %v5122_v52 = vpop.f32.mrb[65].mxu0  ;;  %v5143_v47 = vpop.f32.mrb[64].mxu1 }
 0x2fa   :  { %v5123_v37 = vadd.f32 %v5122_v52, %v5121_v0  ;;  %v5124_v10 = vpop.f32.mrb[66].mxu0  ;;  %5411 = vmatpush3.bf16.msra.mxu0 %v6225_v2  ;;  %v5144_v18 = vpop.f32.mrb[65].mxu1  ;;  %v9794_v2 = vld [vmem:[#allocation22_spill] sm:$0xff] }
 0x2fb   :  { %v5125_v46 = vpop.f32.mrb[67].mxu0  ;;  %v5145_v4 = vadd.f32 %v5144_v18, %v5143_v47  ;;  %5433 = vmatpush3.bf16.msra.mxu1 %v8401_v15  ;;  %v5146_v8 = vpop.f32.mrb[66].mxu1  ;;  %5412 = vmatprep.subr.bf16.mxu0 %v6226_v17  ;;  %v6228_v15 = vld [vmem:[%s9359_s4 + $0x3f8] sm:$0xff]   ;;  %v9793_v47 = vld [vmem:[#allocation6_spill] sm:$0xff]  ;;  %v9797_v17 = vld [vmem:[#allocation8_spill] sm:$0xff] }
 0x2fc   :  { %v3242_v49 = vadd.f32 %v5123_v37, %v9127_v44  ;;  %v5147_v24 = vpop.f32.mrb[67].mxu1  ;;  %5434 = vmatprep.subr.bf16.mxu1 %v8413_v27  ;;  %v4415_v44 = vcombine.low %v9146_v58, %v9146_v58  ;;  %v9235_v27 = vld [vmem:[%s9363_s3 + $0x48] sm:$0xff]  ;;  %v6230_v58 = vld [vmem:[%s9359_s4 + $0x4c0] sm:$0xff]  }
 0x2fd   :  { %v4420_v50 = vcombine.high %v9235_v27, %v9235_v27  ;;  %v9795_v46 = vld [vmem:[#allocation11_spill] sm:$0xff]  ;;  %v9798_v24 = vld [vmem:[#allocation32_spill] sm:$0xff] }
 0x2fe   :  { %v9220_v29 = vadd.f32 %v5145_v4, %v3242_v49  ;;  %5413 = vmatpush3.bf16.msra.mxu0 %v6227_v14  ;;  %v9796_v4 = vld [vmem:[#allocation7_spill] sm:$0xff]  ;;  %v5900_v49 = vld [vmem:[%s9363_s3 + $0x60] ss:$0 sps:$4 sm:$0xff]  }
 0x2ff   :  { %5435 = vmatpush3.bf16.msra.mxu1 %v8428_v23  ;;  %5414 = vmatprep.subr.bf16.mxu0 %v6228_v15  ;;  %v4417_v23 = vcombine.low %v9156_v39, %v9156_v39 }
 0x300   :  { %5436 = vmatprep.subr.bf16.mxu1 %v8440_v41  ;;  %v9245_v41 = vld [vmem:[%s9363_s3 + $0x50] sm:$0xff] }
 0x301   :  { %v4422_v39 = vcombine.high %v9245_v41, %v9245_v41 }
 0x302   :  { %5415 = vmatpush3.bf16.msra.mxu0 %v6229_v61 }
 0x303   :  { %5437 = vmatpush3.bf16.msra.mxu1 %v8459_v48  ;;  %5444 = vmatprep.subr.bf16.mxu0 %v6230_v58  ;;  %v6232_v48 = vld [vmem:[%s9359_s4 + $0x4c8] sm:$0xff]  }
 0x304   :  { %5466 = vmatprep.subr.bf16.mxu1 %v8478_v45  ;;  %v6233_v45 = vld [vmem:[%s9359_s4 + $0x488] sm:$0xff]  }
 0x305   :  { %3901 = vmatmul.mubr.bf16.vlgmr.msra.gmra.mrb[92].mxu0 %v4415_v44 }
 0x306   :  { %5445 = vmatpush3.bf16.msra.mxu0 %v6231_v5  ;;  %3941 = vmatmul.mubr.bf16.vlgmr.msra.gmra.mrb[92].mxu1 %v4417_v23 }
 0x307   :  { %5467 = vmatpush3.bf16.msra.mxu1 %v8494_v51  ;;  %5446 = vmatprep.subr.bf16.mxu0 %v6232_v48  ;;  %v6234_v51 = vld [vmem:[%s9359_s4 + $0x4d0] sm:$0xff]  }
 0x308   :  { %5468 = vmatprep.subr.bf16.mxu1 %v8506_v63  ;;  %3980 = vmatprep.mubr.bf16.mxu0 %v4420_v50  ;;  %v6235_v63 = vld [vmem:[%s9359_s4 + $0x490] sm:$0xff]  }
 0x309   :  { %4020 = vmatprep.mubr.bf16.mxu1 %v4422_v39 }
 0x30a   :  { %5447 = vmatpush3.bf16.msra.mxu0 %v6233_v45 }
 0x30b   :  { %5469 = vmatpush3.bf16.msra.mxu1 %v8518_v3  ;;  %5448 = vmatprep.subr.bf16.mxu0 %v6234_v51  ;;  %v6237_v3 = vld [vmem:[%s9359_s4 + $0x498] sm:$0xff]  }
 0x30c   :  { %5470 = vmatprep.subr.bf16.mxu1 %v8530_v7  ;;  %v6238_v7 = vld [vmem:[%s9359_s4 + $0x4e0] sm:$0xff]  }
 0x30e   :  { %5449 = vmatpush3.bf16.msra.mxu0 %v6235_v63 }
 0x30f   :  { %5471 = vmatpush3.bf16.msra.mxu1 %v8542_v42  ;;  %5450 = vmatprep.subr.bf16.mxu0 %v6236_v59 }
 0x310   :  { %5472 = vmatprep.subr.bf16.mxu1 %v8554_v38 }
 0x312   :  { %5451 = vmatpush3.bf16.msra.mxu0 %v6237_v3 }
 0x313   :  { %5473 = vmatpush3.bf16.msra.mxu1 %v8566_v36  ;;  %5452 = vmatprep.subr.bf16.mxu0 %v6238_v7 }
 0x314   :  { %5474 = vmatprep.subr.bf16.mxu1 %v8578_v40 }
 0x316   :  { %5453 = vmatpush3.bf16.msra.mxu0 %v8383_v6 }
 0x317   :  { %5475 = vmatpush3.bf16.msra.mxu1 %v8590_v28  ;;  %5454 = vmatprep.subr.bf16.mxu0 %v8395_v35 }
 0x318   :  { %v5165_v42 = vpop.f32.mrb[68].mxu0  ;;  %5476 = vmatprep.subr.bf16.mxu1 %v8602_v31  ;;  %v4421_v31 = vcombine.low %v9245_v41, %v9245_v41 }
 0x319   :  { %v5166_v38 = vpop.f32.mrb[69].mxu0  ;;  %v5187_v54 = vpop.f32.mrb[68].mxu1 }
 0x31a   :  { %v5167_v62 = vadd.f32 %v5166_v38, %v5165_v42  ;;  %v5168_v36 = vpop.f32.mrb[70].mxu0  ;;  %5455 = vmatpush3.bf16.msra.mxu0 %v8407_v26  ;;  %v5188_v32 = vpop.f32.mrb[69].mxu1  ;;  %v4419_v26 = vcombine.low %v9235_v27, %v9235_v27 }
 0x31b   :  { %v5169_v0 = vpop.f32.mrb[71].mxu0  ;;  %v5189_v52 = vadd.f32 %v5188_v32, %v5187_v54  ;;  %5477 = vmatpush3.bf16.msra.mxu1 %v8614_v33  ;;  %v5190_v40 = vpop.f32.mrb[70].mxu1  ;;  %5456 = vmatprep.subr.bf16.mxu0 %v8420_v60  ;;  %v3498_v60 = vld [vmem:[%s9363_s3 + $0x58] sm:$0xff] }
 0x31c   :  { %v3322_v6 = vadd.f32 %v5167_v62, %v9220_v29  ;;  %v5191_v35 = vpop.f32.mrb[71].mxu1  ;;  %5478 = vmatprep.subr.bf16.mxu1 %v8626_v21  ;;  %v4423_v8 = vcombine.low %v3498_v60, %v3498_v60 }
 0x31e   :  { %v3362_v28 = vadd.f32 %v5189_v52, %v3322_v6  ;;  %5457 = vmatpush3.bf16.msra.mxu0 %v8434_v57  ;;  %v4424_v57 = vcombine.high %v3498_v60, %v3498_v60 }
 0x31f   :  { %5479 = vmatpush3.bf16.msra.mxu1 %v8641_v25  ;;  %5458 = vmatprep.subr.bf16.mxu0 %v8446_v34  ;;  %v9785_v34 = vld [vmem:[#allocation16_spill] sm:$0xff]  ;;  %v9791_v25 = vld [vmem:[#allocation5_spill] sm:$0xff] }
 0x320   :  { %5480 = vmatprep.subr.bf16.mxu1 %v8653_v53 }
 0x322   :  { %5459 = vmatpush3.bf16.msra.mxu0 %v8472_v30  ;;  %v9786_v30 = vld [vmem:[#allocation25_spill] sm:$0xff] }
 0x323   :  { %5481 = vmatpush3.bf16.msra.mxu1 %v8667_v19  ;;  %5488 = vmatprep.subr.bf16.mxu0 %v8484_v16  ;;  %v9787_v16 = vld [vmem:[#allocation3_spill] sm:$0xff] }
 0x324   :  { %5579 = vmatprep.subr.bf16.mxu1 %v9528_v56 }
 0x325   :  { %3981 = vmatmul.mubr.bf16.vlgmr.msra.gmra.mrb[96].mxu0 %v4419_v26 }
 0x326   :  { %5489 = vmatpush3.bf16.msra.mxu0 %v8500_v55  ;;  %4021 = vmatmul.mubr.bf16.vlgmr.msra.gmra.mrb[96].mxu1 %v4421_v31  ;;  %v9788_v55 = vld [vmem:[#allocation4_spill] sm:$0xff] }
 0x327   :  { %5580 = vmatpush3.bf16.msra.mxu1 %v8692_v13  ;;  %5490 = vmatprep.subr.bf16.mxu0 %v8512_v1  ;;  %v9789_v1 = vld [vmem:[#allocation9_spill] sm:$0xff] }
 0x328   :  { %5581 = vmatprep.subr.bf16.mxu1 %v9528_v56  ;;  %4060 = vmatprep.mubr.bf16.mxu0 %v4424_v57 }
 0x329   :  { %5595 = vmatprep.mubr.msk.bf16.mxu1 %vm6240_vm0, %v9528_v56 }
 0x32a   :  { %5491 = vmatpush3.bf16.msra.mxu0 %v8524_v12  ;;  %v9790_v12 = vld [vmem:[#allocation19_spill] sm:$0xff] }
 0x32b   :  { %5582 = vmatpush3.bf16.msra.mxu1 %v8707_v22  ;;  %5492 = vmatprep.subr.bf16.mxu0 %v8536_v9  ;;  %v9792_v22 = vld [vmem:[#allocation10_spill] sm:$0xff] }
 0x32c   :  { %5583 = vmatprep.subr.bf16.mxu1 %v9528_v56 }
 0x32e   :  { %5493 = vmatpush3.bf16.msra.mxu0 %v8548_v11 }
 0x32f   :  { %5584 = vmatpush3.bf16.msra.mxu1 %v8720_v43  ;;  %5494 = vmatprep.subr.bf16.mxu0 %v8560_v20 }
 0x330   :  { %5585 = vmatprep.subr.bf16.mxu1 %v9528_v56 }
 0x332   :  { %5495 = vmatpush3.bf16.msra.mxu0 %v9785_v34 }
 0x333   :  { %5586 = vmatpush3.bf16.msra.mxu1 %v9786_v30  ;;  %5496 = vmatprep.subr.bf16.mxu0 %v9787_v16 }
 0x334   :  { %5587 = vmatprep.subr.bf16.mxu1 %v9528_v56 }
 0x336   :  { %5497 = vmatpush3.bf16.msra.mxu0 %v9788_v55 }
 0x337   :  { %5588 = vmatpush3.bf16.msra.mxu1 %v9789_v1  ;;  %5498 = vmatprep.subr.bf16.mxu0 %v9790_v12 }
 0x338   :  { %v5209_v9 = vpop.f32.mrb[72].mxu0  ;;  %5589 = vmatprep.subr.bf16.mxu1 %v9528_v56 }
 0x339   :  { %v5210_v11 = vpop.f32.mrb[73].mxu0  ;;  %v5231_v20 = vpop.f32.mrb[72].mxu1 }
 0x33a   :  { %v5211_v33 = vadd.f32 %v5210_v11, %v5209_v9  ;;  %v5212_v21 = vpop.f32.mrb[74].mxu0  ;;  %5499 = vmatpush3.bf16.msra.mxu0 %v9791_v25  ;;  %v5232_v53 = vpop.f32.mrb[73].mxu1 }
 0x33b   :  { %v5213_v19 = vpop.f32.mrb[75].mxu0  ;;  %v5233_v13 = vadd.f32 %v5232_v53, %v5231_v20  ;;  %5590 = vmatpush3.bf16.msra.mxu1 %v9792_v22  ;;  %v5234_v43 = vpop.f32.mrb[74].mxu1  ;;  %5500 = vmatprep.subr.bf16.mxu0 %v9793_v47 }
 0x33c   :  { %v3402_v37 = vadd.f32 %v5211_v33, %v3362_v28  ;;  %v5235_v10 = vpop.f32.mrb[75].mxu1  ;;  %5591 = vmatprep.subr.bf16.mxu1 %v9528_v56 }
 0x33e   :  { %5501 = vmatpush3.bf16.msra.mxu0 %v9794_v2  ;;  %v3442_v18 = vadd.f32 %v5233_v13, %v3402_v37 }
 0x33f   :  { %5592 = vmatpush3.bf16.msra.mxu1 %v9795_v46  ;;  %5502 = vmatprep.subr.bf16.mxu0 %v9796_v4 }
 0x340   :  { %5593 = vmatprep.subr.bf16.mxu1 %v9528_v56 }
 0x342   :  { %5503 = vmatpush3.bf16.msra.mxu0 %v9797_v17 }
 0x343   :  { %5594 = vmatpush3.bf16.msra.mxu1 %v9798_v24 }
 0x345   :  { %4061 = vmatmul.mubr.bf16.vlgmr.msra.gmra.mrb[100].mxu0 %v4423_v8 }
 0x346   :  { %5596 = vmatmul.mubr.bf16.vlgmr.msra.gmra.mrb[100].mxu1 %v5900_v49 }
 0x358   :  { %v3481_v29 = vpop.f32.mrb[76].mxu0 }
 0x359   :  { %v9347_v14 = vadd.f32 %v3481_v29, %v3442_v18  ;;  %v5577_v15 = vpop.f32.mrb[77].mxu0  ;;  %v5262_v44 = vpop.f32.mrb[76].mxu1 }
 0x35a   :  { %v3484_v27 = vpop.f32.mrb[78].mxu0  ;;  %v5263_v61 = vpop.f32.mrb[77].mxu1 }
 0x35b   :  { %v5578_v23 = vpop.f32.mrb[79].mxu0  ;;  %v5264_v56 = vadd.f32 %v5263_v61, %v5262_v44  ;;  %v5265_v41 = vpop.f32.mrb[78].mxu1 }
 0x35c   :  { %v5266_v58 = vpop.f32.mrb[79].mxu1 }
 0x378   :  { %v5284_v50 = vpop.f32.mrb[80].mxu0 }
 0x379   :  { %v5285_v39 = vpop.f32.mrb[81].mxu0  ;;  %v5306_v5 = vpop.f32.mrb[80].mxu1 }
 0x37a   :  { %v5286_v48 = vadd.f32 %v5285_v39, %v5284_v50  ;;  %v5287_v45 = vpop.f32.mrb[82].mxu0  ;;  %v5307_v51 = vpop.f32.mrb[81].mxu1 }
 0x37b   :  { %v5288_v63 = vpop.f32.mrb[83].mxu0  ;;  %v5308_v59 = vadd.f32 %v5307_v51, %v5306_v5  ;;  %v5309_v3 = vpop.f32.mrb[82].mxu1 }
 0x37c   :  { %v3663_v7 = vadd.f32 %v5286_v48, %v5264_v56  ;;  %v5310_v42 = vpop.f32.mrb[83].mxu1 }
 0x37d   :  { %v9799_v42 = vld [vmem:[#allocation2_spill] sm:$0xff] }
 0x37e   :  { %v3703_v38 = vadd.f32 %v5308_v59, %v3663_v7  ;;  %v4426_v7 = vld [vmem:[%s9364_s5] ss:$0 sm:$0xff] }
 0x398   :  { %v5328_v54 = vpop.f32.mrb[84].mxu0 }
 0x399   :  { %v5329_v62 = vpop.f32.mrb[85].mxu0  ;;  %v5350_v36 = vpop.f32.mrb[84].mxu1 }
 0x39a   :  { %v5330_v32 = vadd.f32 %v5329_v62, %v5328_v54  ;;  %v5331_v0 = vpop.f32.mrb[86].mxu0  ;;  %v5351_v52 = vpop.f32.mrb[85].mxu1 }
 0x39b   :  { %v5332_v40 = vpop.f32.mrb[87].mxu0  ;;  %v5352_v6 = vadd.f32 %v5351_v52, %v5350_v36  ;;  %v5353_v35 = vpop.f32.mrb[86].mxu1 }
 0x39c   :  { %v3743_v28 = vadd.f32 %v5330_v32, %v3703_v38  ;;  %v5354_v26 = vpop.f32.mrb[87].mxu1  ;;  %v9800_v38 = vld [vmem:[#allocation28_spill] sm:$0xff] }
 0x39d   :  { %v9801_v54 = vmax.f32 %v9799_v42, %v9800_v38 }
 0x39e   :  { %v3783_v60 = vadd.f32 %v5352_v6, %v3743_v28 }
 0x3b8   :  { %v5372_v31 = vpop.f32.mrb[88].mxu0 }
 0x3b9   :  { %v5373_v57 = vpop.f32.mrb[89].mxu0  ;;  %v5394_v34 = vpop.f32.mrb[88].mxu1 }
 0x3ba   :  { %v5374_v30 = vadd.f32 %v5373_v57, %v5372_v31  ;;  %v5375_v16 = vpop.f32.mrb[90].mxu0  ;;  %v5395_v55 = vpop.f32.mrb[89].mxu1 }
 0x3bb   :  { %v5376_v1 = vpop.f32.mrb[91].mxu0  ;;  %v5396_v12 = vadd.f32 %v5395_v55, %v5394_v34  ;;  %v5397_v9 = vpop.f32.mrb[90].mxu1 }
 0x3bc   :  { %v3823_v11 = vadd.f32 %v5374_v30, %v3783_v60  ;;  %v5398_v20 = vpop.f32.mrb[91].mxu1 }
 0x3be   :  { %v3863_v33 = vadd.f32 %v5396_v12, %v3823_v11 }
 0x3d8   :  { %v5416_v21 = vpop.f32.mrb[92].mxu0 }
 0x3d9   :  { %v5417_v25 = vpop.f32.mrb[93].mxu0  ;;  %v5438_v53 = vpop.f32.mrb[92].mxu1 }
 0x3da   :  { %v5418_v19 = vadd.f32 %v5417_v25, %v5416_v21  ;;  %v5419_v13 = vpop.f32.mrb[94].mxu0  ;;  %v5439_v22 = vpop.f32.mrb[93].mxu1 }
 0x3db   :  { %v5420_v43 = vpop.f32.mrb[95].mxu0  ;;  %v5440_v47 = vadd.f32 %v5439_v22, %v5438_v53  ;;  %v5441_v37 = vpop.f32.mrb[94].mxu1 }
 0x3dc   :  { %v3903_v10 = vadd.f32 %v5418_v19, %v3863_v33  ;;  %v5442_v2 = vpop.f32.mrb[95].mxu1 }
 0x3de   :  { %v3943_v18 = vadd.f32 %v5440_v47, %v3903_v10 }
 0x3f8   :  { %v5460_v46 = vpop.f32.mrb[96].mxu0 }
 0x3f9   :  { %v5461_v4 = vpop.f32.mrb[97].mxu0  ;;  %v5482_v8 = vpop.f32.mrb[96].mxu1 }
 0x3fa   :  { %v5462_v17 = vadd.f32 %v5461_v4, %v5460_v46  ;;  %v5463_v49 = vpop.f32.mrb[98].mxu0  ;;  %v5483_v24 = vpop.f32.mrb[97].mxu1 }
 0x3fb   :  { %v5464_v29 = vpop.f32.mrb[99].mxu0  ;;  %v5484_v15 = vadd.f32 %v5483_v24, %v5482_v8  ;;  %v5485_v44 = vpop.f32.mrb[98].mxu1 }
 0x3fc   :  { %v3983_v27 = vadd.f32 %v5462_v17, %v3943_v18  ;;  %v5486_v61 = vpop.f32.mrb[99].mxu1 }
 0x3fe   :  { %v4023_v23 = vadd.f32 %v5484_v15, %v3983_v27 }
 0x418   :  { %v5504_v56 = vpop.f32.mrb[100].mxu0 }
 0x419   :  { %v5505_v41 = vpop.f32.mrb[101].mxu0  ;;  %v4102_v58 = vpop.f32.mrb[100].mxu1 }
 0x41a   :  { %v5506_v50 = vadd.f32 %v5505_v41, %v5504_v56  ;;  %v5507_v39 = vpop.f32.mrb[102].mxu0  ;;  %v5597_v5 = vpop.f32.mrb[101].mxu1 }
 0x41b   :  { %v5508_v48 = vpop.f32.mrb[103].mxu0  ;;  %v4105_v45 = vpop.f32.mrb[102].mxu1 }
 0x41c   :  { %v4063_v51 = vadd.f32 %v5506_v50, %v4023_v23  ;;  %v5598_v63 = vpop.f32.mrb[103].mxu1 }
 0x41e   :  { %v4103_v59 = vadd.f32 %v4102_v58, %v4063_v51 }
 0x420   :  { %v4109_v3 = vmax.f32 %v9347_v14, %v4103_v59 }
 0x422   :  { %v4110_v62 = vmax.f32 %v9801_v54, %v4109_v3 }
 0x424   :  { %v4118_v36 = vadd.f32 %v4426_v7, %v4110_v62 }
 0x426   :  { %v4119_v32 = vmax.f32 %v4118_v36, 0.0 }
 0x428   :  { %v4120_v0 = vpack.c.bf16 %v4119_v32, %v4119_v32 }
 0x42a   :  { %4121 = vst [vmem:[%s9365_s6] sm:$0xf] %v4120_v0 }

</bundles_post_ra>
